<compile_context>
chip_gen: v7x
topology: tpu7x:2x2x1
jax: 0.10.0
libtpu: 0.0.40
codegen_flags: <defaults>
</compile_context>

<pallas_src>
import jax
import jax.numpy as jnp
import numpy as np
from jax.experimental import pallas as pl
from jax.experimental.pallas import tpu as pltpu


_LANE = 128
_BF16_ROWS = 16     # bf16 packs 2 rows per sublane -> HW tiles multiple of 16


def _round_up(v, m):
    return (v + m - 1) // m * m


def _pad_last(a, target):
    pad = target - a.shape[-1]
    if pad == 0:
        return a
    return jnp.pad(a, [(0, 0)] * (a.ndim - 1) + [(0, pad)])


def _device_defaults():
    """(hw_tile, vmem_limit_bytes) per TPU generation (single-buffered weights)."""
    vmem = None
    try:
        vmem = int(pltpu.get_tpu_info().vmem_capacity_bytes)
    except Exception:
        vmem = None
    if vmem is None:
        try:
            kind = jax.devices()[0].device_kind.lower()
        except Exception:
            kind = ""
        vmem = 64 * 2**20 if "v7" in kind else 128 * 2**20
    if vmem >= 100 * 2**20:          # v5e / v6e: 128 MiB VMEM
        return 2048, 100 * 2**20
    return 2048, 56 * 2**20          # v7x: 64 MiB / TC -> conservative limit


def _make_fused_kernel(*, hw, hw_tile, num_tiles, tiles_per_split, pre_norm,
                       compute_stats, split):
    """Fused [prev GroupNorm+ReLU fold] -> 1x1 conv [-> GN stat accumulation]."""
    needs_mask = (hw % hw_tile) != 0

    def kernel(*refs):
        if pre_norm:
            x_ref, scale_ref, shift_ref, w_ref, b_ref = refs[:5]
            out_refs = refs[5:]
        else:
            x_ref, w_ref, b_ref = refs[:3]
            out_refs = refs[3:]
        if compute_stats:
            y_ref, sum_ref, sq_ref = out_refs
        else:
            (y_ref,) = out_refs

        x = x_ref[0]                                     # (hw_tile, cin_pad) bf16
        if pre_norm:
            # Previous layer's GroupNorm + ReLU folded into a bf16 per-channel
            # scale/shift (built from accumulated stats in the wrapper).
            # NOTE: rows past HW in the last partial tile hold undefined data;
            # they are masked out of the stats below and their stores are
            # clipped, and there is no cross-row dependence in this kernel.
            x = jnp.maximum(x * scale_ref[0] + shift_ref[0], 0).astype(jnp.bfloat16)

        # 1x1 conv == per-pixel matmul over channels (bf16 MXU, f32 accumulate).
        y = jnp.dot(x, w_ref[...], preferred_element_type=jnp.float32)
        y = y + b_ref[...]                               # (1, cout_pad) f32 bias

        if compute_stats:
            if split > 1:
                t = pl.program_id(2)
                g = pl.program_id(1) * tiles_per_split + t   # global HW tile
            else:
                t = pl.program_id(1)
                g = t

            @pl.when(t == 0)
            def _init():
                sum_ref[...] = jnp.zeros_like(sum_ref)
                sq_ref[...] = jnp.zeros_like(sq_ref)

            def _accumulate(ys):
                sum_ref[0] += jnp.sum(ys, axis=0, keepdims=True)
                sq_ref[0] += jnp.sum(ys * ys, axis=0, keepdims=True)

            if needs_mask:
                last = num_tiles - 1

                @pl.when(g == last)
                def _partial_tile():
                    row = jax.lax.broadcasted_iota(jnp.int32, (hw_tile, 1), 0)
                    valid = (g * hw_tile + row) < hw
                    _accumulate(jnp.where(valid, y, 0.0))

                @pl.when(g != last)
                def _full_tile():
                    _accumulate(y)
            else:
                _accumulate(y)

        y_ref[0] = y.astype(y_ref.dtype)

    return kernel


def conv1x1_fused(x, w, b, scale=None, shift=None, *, compute_stats, hw_tile,
                  out_dtype, vmem_limit_bytes, stats_splits=2,
                  single_buffer_resident=True):
    """One fused layer.

    x:            (N, HW, cin_pad) bf16, cin_pad % 128 == 0
    w:            (cin_pad, cout_pad) bf16
    b:            (1, cout_pad) f32
    scale/shift:  optional (N, 1, cin_pad) bf16 -- previous GroupNorm+ReLU fold.
    Returns y (N, HW, cout_pad) in out_dtype and, if compute_stats, per-channel
    sum / sum-of-squares (N, split, cout_pad) f32 accumulated over HW chunks.
    """
    N, HW, cin_pad = x.shape
    cout_pad = w.shape[1]
    pre_norm = scale is not None

    tile = min(hw_tile, HW)
    if tile < HW:
        tile = max(_BF16_ROWS, (tile // _BF16_ROWS) * _BF16_ROWS)
    num_tiles = pl.cdiv(HW, tile)

    # Second *parallel* axis over HW chunks so both v7x TensorCores work even
    # when N == 1 (the per-chunk partial stats are summed in the wrapper).
    split = 1
    if (compute_stats and stats_splits > 1
            and num_tiles % stats_splits == 0 and num_tiles >= 2 * stats_splits):
        split = stats_splits
    tiles_per_split = num_tiles // split

    kernel = _make_fused_kernel(hw=HW, hw_tile=tile, num_tiles=num_tiles,
                                tiles_per_split=tiles_per_split,
                                pre_norm=pre_norm, compute_stats=compute_stats,
                                split=split)

    if compute_stats:
        if split > 1:
            grid = (N, split, tiles_per_split)
            dims = ("parallel", "parallel", "arbitrary")
            x_map = lambda n, s, t: (n, s * tiles_per_split + t, 0)
            vec_map = lambda n, s, t: (n, 0, 0)
            const_map = lambda n, s, t: (0, 0)
            stat_map = lambda n, s, t: (n, s, 0)
        else:
            grid = (N, num_tiles)
            dims = ("parallel", "arbitrary")
            x_map = lambda n, t: (n, t, 0)
            vec_map = lambda n, t: (n, 0, 0)
            const_map = lambda n, t: (0, 0)
            stat_map = lambda n, t: (n, 0, 0)
    else:
        grid = (N, num_tiles)
        dims = ("parallel", "parallel")      # pure matmul pass: fully parallel
        x_map = lambda n, t: (n, t, 0)
        vec_map = lambda n, t: (n, 0, 0)
        const_map = lambda n, t: (0, 0)
        stat_map = None

    def build(use_single_buffer):
        # Weight / bias (and scale / shift) are (near-)resident: a second
        # pipeline buffer for them is pure VMEM waste, so single-buffer them.
        res_kwargs = dict(pipeline_mode=pl.Buffered(1)) if use_single_buffer else {}

        in_specs = [pl.BlockSpec((1, tile, cin_pad), x_map)]
        if pre_norm:
            in_specs += [pl.BlockSpec((1, 1, cin_pad), vec_map, **res_kwargs),
                         pl.BlockSpec((1, 1, cin_pad), vec_map, **res_kwargs)]
        in_specs += [pl.BlockSpec((cin_pad, cout_pad), const_map, **res_kwargs),
                     pl.BlockSpec((1, cout_pad), const_map, **res_kwargs)]

        y_spec = pl.BlockSpec((1, tile, cout_pad), x_map)
        if compute_stats:
            out_specs = [y_spec,
                         pl.BlockSpec((1, 1, cout_pad), stat_map),
                         pl.BlockSpec((1, 1, cout_pad), stat_map)]
            out_shape = (jax.ShapeDtypeStruct((N, HW, cout_pad), out_dtype),
                         jax.ShapeDtypeStruct((N, split, cout_pad), jnp.float32),
                         jax.ShapeDtypeStruct((N, split, cout_pad), jnp.float32))
        else:
            out_specs = y_spec
            out_shape = jax.ShapeDtypeStruct((N, HW, cout_pad), out_dtype)

        return pl.pallas_call(
            kernel,
            out_shape=out_shape,
            grid_spec=pltpu.PrefetchScalarGridSpec(
                num_scalar_prefetch=0,
                grid=grid,
                in_specs=in_specs,
                out_specs=out_specs),
            compiler_params=pltpu.CompilerParams(
                dimension_semantics=dims,
                vmem_limit_bytes=vmem_limit_bytes))

    inputs = [x]
    if pre_norm:
        inputs += [scale, shift]
    inputs += [w, b]

    if single_buffer_resident:
        try:
            return build(True)(*inputs)
        except Exception:
            pass   # fall back to default double-buffered resident operands
    return build(False)(*inputs)


def init_params(key, in_size, num_classes):
    # (cin, cout, has_groupnorm_relu) per layer, mirroring the nn.Module.
    dims = [(in_size, 1000, True),
            (1000, 1000, True),
            (1000, 512, True),
            (512, num_classes, False)]
    params = []
    for cin, cout, gn in dims:
        key, k1, k2, k3, k4 = jax.random.split(key, 5)
        w = jax.random.normal(k1, (cin, cout), jnp.float32) / np.sqrt(cin)
        b = jax.random.normal(k2, (cout,), jnp.float32) * 0.01
        # Non-trivial GN affine so the folded scale/shift path is exercised.
        gamma = 1.0 + 0.1 * jax.random.normal(k3, (cout,), jnp.float32)
        beta = 0.1 * jax.random.normal(k4, (cout,), jnp.float32)
        params.append((w, b, gamma, beta, gn))
    return params


def simple_seg_classifier_forward(x_nchw, params, *, num_groups=4, eps=1e-5,
                                  hw_tile=None, vmem_limit_bytes=None):
    """x_nchw: (N, C, H, W) f32 -> (N, num_classes, H, W) f32."""
    N, C, H, W = x_nchw.shape
    HW = H * W

    if hw_tile is None or vmem_limit_bytes is None:
        d_tile, d_vmem = _device_defaults()
        hw_tile = hw_tile or d_tile
        vmem_limit_bytes = vmem_limit_bytes or d_vmem

    # Cast to bf16 BEFORE the NCHW->NHWC transpose (halves the layout-change
    # bytes), then pad the channel dim to a lane multiple.
    x = jnp.transpose(x_nchw.astype(jnp.bfloat16), (0, 2, 3, 1)).reshape(N, HW, C)
    x = _pad_last(x, _round_up(C, _LANE))

    scale = shift = None
    for (w, b, gamma, beta, gn) in params:
        cin, cout = w.shape
        cin_pad = _round_up(cin, _LANE)
        cout_pad = _round_up(cout, _LANE)
        assert x.shape[-1] == cin_pad

        w_p = jnp.pad(w, ((0, cin_pad - cin), (0, cout_pad - cout))).astype(jnp.bfloat16)
        b_p = _pad_last(b.reshape(1, cout), cout_pad).astype(jnp.float32)

        outs = conv1x1_fused(x, w_p, b_p, scale, shift, compute_stats=gn,
                             hw_tile=hw_tile, out_dtype=jnp.bfloat16,
                             vmem_limit_bytes=vmem_limit_bytes)

        if gn:
            y, s_sum, s_sq = outs
            # Sum the per-core partial stats, then the tiny per-group reduction
            # (real channels only) in plain JAX.
            G, Cg = num_groups, cout // num_groups
            s_sum = jnp.sum(s_sum, axis=1)[:, :cout]              # (N, cout)
            s_sq = jnp.sum(s_sq, axis=1)[:, :cout]
            gs = s_sum.reshape(N, G, Cg).sum(-1)                  # (N, G)
            gsq = s_sq.reshape(N, G, Cg).sum(-1)
            n_elem = jnp.float32(HW * Cg)
            mean = gs / n_elem
            var = jnp.maximum(gsq / n_elem - mean * mean, 0.0)    # clamp cancellation
            inv = jax.lax.rsqrt(var + eps)
            inv_c = jnp.repeat(inv, Cg, axis=1)                   # (N, cout)
            mean_c = jnp.repeat(mean, Cg, axis=1)
            scale_c = gamma[None, :] * inv_c
            shift_c = beta[None, :] - mean_c * scale_c
            scale = _pad_last(scale_c, cout_pad).reshape(N, 1, cout_pad).astype(jnp.bfloat16)
            shift = _pad_last(shift_c, cout_pad).reshape(N, 1, cout_pad).astype(jnp.bfloat16)
        else:
            y = outs
            scale = shift = None
        x = y

    num_classes = params[-1][0].shape[1]
    out = x[:, :, :num_classes].astype(jnp.float32).reshape(N, H, W, num_classes)
    return jnp.transpose(out, (0, 3, 1, 2))


def reference_forward(x_nchw, params, num_groups=4, eps=1e-5):
    """Pure-JAX reference matching the kernel's precision path
    (bf16 matmuls / inter-layer storage, f32 GN stats, bf16 folded affine)."""
    N, C, H, W = x_nchw.shape
    HW = H * W
    x = jnp.transpose(x_nchw.astype(jnp.bfloat16), (0, 2, 3, 1)).reshape(N, HW, C)
    for (w, b, gamma, beta, gn) in params:
        y = jnp.einsum('nsc,co->nso', x, w.astype(jnp.bfloat16),
                       preferred_element_type=jnp.float32) + b
        if gn:
            cout = y.shape[-1]
            G, Cg = num_groups, cout // num_groups
            yg = y.reshape(N, HW, G, Cg)
            mean = jnp.mean(yg, axis=(1, 3))                      # (N, G)
            var = jnp.maximum(jnp.mean(jnp.square(yg), axis=(1, 3)) - mean * mean, 0.0)
            inv = jax.lax.rsqrt(var + eps)
            inv_c = jnp.repeat(inv, Cg, axis=1)                   # (N, cout)
            mean_c = jnp.repeat(mean, Cg, axis=1)
            scale_c = gamma[None, :] * inv_c
            shift_c = beta[None, :] - mean_c * scale_c
            sc = scale_c.astype(jnp.bfloat16)[:, None, :]
            sh = shift_c.astype(jnp.bfloat16)[:, None, :]
            # Stats from the f32 conv output; the normalize+ReLU is applied to
            # the bf16-stored activation in bf16 -- exactly like the kernels.
            y16 = y.astype(jnp.bfloat16)
            x = jnp.maximum(y16 * sc + sh, 0)
        else:
            x = y.astype(jnp.bfloat16)                            # bf16 head store
    cout = x.shape[-1]
    out = x.astype(jnp.float32).reshape(N, H, W, cout)
    return jnp.transpose(out, (0, 3, 1, 2))


if __name__ == "__main__":
    key = jax.random.PRNGKey(0)
    in_size = 96          # small stand-in for the default 2880 (not a lane multiple)
    num_classes = 21
    N = 2

    kx, kp = jax.random.split(key)
    params = init_params(kp, in_size, num_classes)

    # Case 1: HW=36, tile=16 -> 3 tiles, masked partial last tile, no TC split.
    # Case 2: HW=56, tile=16 -> 4 tiles, stats split across 2 parallel chunks,
    #         last tile partial (exercises split + mask together).
    # Case 3: device-default tile covers all of HW in one block.
    cases = [((6, 6), 16), ((7, 8), 16), ((6, 6), None)]
    for (H, W), hw_tile in cases:
        x = jax.random.normal(kx, (N, in_size, H, W), jnp.float32)   # NCHW like PyTorch
        ref = jax.block_until_ready(reference_forward(x, params))
        out = jax.block_until_ready(
            simple_seg_classifier_forward(x, params, hw_tile=hw_tile))
        assert out.shape == (N, num_classes, H, W)
        np.testing.assert_allclose(np.asarray(out), np.asarray(ref),
                                   rtol=2e-2, atol=2e-2)

    print("KERNEL_OK")
</pallas_src>

<mosaic_0001>
module attributes {stable_mosaic.version = 11 : i64} {
  func.func @kernel(%arg0: i32, %arg1: i32, %arg2: memref<1x16x128xbf16, #tpu.memory_space<vmem>>, %arg3: memref<128x1024xbf16, #tpu.memory_space<vmem>>, %arg4: memref<1x1024xf32, #tpu.memory_space<vmem>>, %arg5: memref<1x16x1024xbf16, #tpu.memory_space<vmem>>, %arg6: memref<1x1x1024xf32, #tpu.memory_space<vmem>>, %arg7: memref<1x1x1024xf32, #tpu.memory_space<vmem>>) attributes {dimension_semantics = [#tpu.dimension_semantics<parallel>, #tpu.dimension_semantics<arbitrary>], iteration_bounds = array<i64: 2, 3>, scalar_prefetch = 0 : i64, scratch_operands = 0 : i64, tpu.core_type = #tpu.core_type<tc>, window_params = [{transform_indices = @transform_0, window_bounds = array<i64: 1, 16, 128>}, {pipeline_mode = #tpu.pipeline_mode<synchronous>, transform_indices = @transform_1, window_bounds = array<i64: 128, 1024>}, {pipeline_mode = #tpu.pipeline_mode<synchronous>, transform_indices = @transform_2, window_bounds = array<i64: 1, 1024>}, {transform_indices = @transform_3, window_bounds = array<i64: 1, 16, 1024>}, {transform_indices = @transform_4, window_bounds = array<i64: 1, 1, 1024>}, {transform_indices = @transform_5, window_bounds = array<i64: 1, 1, 1024>}]} {
    %c0 = arith.constant 0 : index
    %c0_0 = arith.constant 0 : index
    %c0_1 = arith.constant 0 : index
    %0 = vector.load %arg2[%c0, %c0_0, %c0_1] : memref<1x16x128xbf16, #tpu.memory_space<vmem>>, vector<1x16x128xbf16>
    %1 = vector.shape_cast %0 : vector<1x16x128xbf16> to vector<16x128xbf16>
    %c0_2 = arith.constant 0 : index
    %c0_3 = arith.constant 0 : index
    %2 = vector.load %arg3[%c0_2, %c0_3] : memref<128x1024xbf16, #tpu.memory_space<vmem>>, vector<128x1024xbf16>
    %cst = arith.constant dense<0.000000e+00> : vector<16x1024xf32>
    %3 = tpu.matmul %1, %2, %cst {dimension_numbers = #tpu.dot_dimension_numbers<[1], [0], [0], [1], [0, 0, 1, 1], [], []>} : vector<16x128xbf16>, vector<128x1024xbf16>, vector<16x1024xf32> -> vector<16x1024xf32>
    %c0_4 = arith.constant 0 : index
    %c0_5 = arith.constant 0 : index
    %4 = vector.load %arg4[%c0_4, %c0_5] : memref<1x1024xf32, #tpu.memory_space<vmem>>, vector<1x1024xf32>
    %5 = vector.broadcast %4 : vector<1x1024xf32> to vector<16x1024xf32>
    %6 = arith.addf %3, %5 : vector<16x1024xf32>
    %c0_i32 = arith.constant 0 : i32
    %7 = arith.cmpi eq, %arg1, %c0_i32 : i32
    %8 = arith.extui %7 : i1 to i32
    %c0_i32_6 = arith.constant 0 : i32
    %9 = arith.cmpi ne, %8, %c0_i32_6 : i32
    scf.if %9 {
      %cst_13 = arith.constant 0.000000e+00 : f32
      %20 = vector.broadcast %cst_13 : f32 to vector<1x1x1024xf32>
      %c0_14 = arith.constant 0 : index
      %c0_15 = arith.constant 0 : index
      %c0_16 = arith.constant 0 : index
      %21 = vector.load %arg6[%c0_14, %c0_15, %c0_16] : memref<1x1x1024xf32, #tpu.memory_space<vmem>>, vector<1x1x1024xf32>
      tpu.vector_store %arg6[%c0_14, %c0_15, %c0_16], %20 {strides = array<i32>} : memref<1x1x1024xf32, #tpu.memory_space<vmem>>, vector<1x1x1024xf32>,
      %cst_17 = arith.constant 0.000000e+00 : f32
      %22 = vector.broadcast %cst_17 : f32 to vector<1x1x1024xf32>
      %c0_18 = arith.constant 0 : index
      %c0_19 = arith.constant 0 : index
      %c0_20 = arith.constant 0 : index
      %23 = vector.load %arg7[%c0_18, %c0_19, %c0_20] : memref<1x1x1024xf32, #tpu.memory_space<vmem>>, vector<1x1x1024xf32>
      tpu.vector_store %arg7[%c0_18, %c0_19, %c0_20], %22 {strides = array<i32>} : memref<1x1x1024xf32, #tpu.memory_space<vmem>>, vector<1x1x1024xf32>,
    } else {
    }
    %c2_i32 = arith.constant 2 : i32
    %10 = arith.cmpi eq, %arg1, %c2_i32 : i32
    %11 = arith.extui %10 : i1 to i32
    %c0_i32_7 = arith.constant 0 : i32
    %12 = arith.cmpi ne, %11, %c0_i32_7 : i32
    scf.if %12 {
      %20 = tpu.iota {dimensions = array<i32: 0>} : vector<16x1xi32>
      %c16_i32 = arith.constant 16 : i32
      %21 = arith.muli %arg1, %c16_i32 : i32
      %22 = vector.broadcast %21 : i32 to vector<16x1xi32>
      %23 = arith.addi %22, %20 : vector<16x1xi32>
      %c36_i32 = arith.constant 36 : i32
      %24 = vector.broadcast %c36_i32 : i32 to vector<16x1xi32>
      %25 = arith.cmpi slt, %23, %24 : vector<16x1xi32>
      %cst_13 = arith.constant 0.000000e+00 : f32
      %26 = vector.shape_cast %25 : vector<16x1xi1> to vector<16x1xi1>
      %27 = vector.broadcast %26 : vector<16x1xi1> to vector<16x1024xi1>
      %28 = vector.broadcast %cst_13 : f32 to vector<16x1024xf32>
      %29 = arith.select %27, %6, %28 : vector<16x1024xi1>, vector<16x1024xf32>
      %c0_14 = arith.constant 0 : index
      %c0_15 = arith.constant 0 : index
      %c0_16 = arith.constant 0 : index
      %30 = vector.load %arg6[%c0_14, %c0_15, %c0_16] : memref<1x1x1024xf32, #tpu.memory_space<vmem>>, vector<1x1x1024xf32>
      %31 = vector.shape_cast %30 : vector<1x1x1024xf32> to vector<1x1024xf32>
      %cst_17 = arith.constant dense<0.000000e+00> : vector<1024xf32>
      %32 = vector.multi_reduction <add>, %29, %cst_17 [0] : vector<16x1024xf32> to vector<1024xf32>
      %33 = vector.shape_cast %32 : vector<1024xf32> to vector<1x1024xf32>
      %34 = arith.addf %31, %33 : vector<1x1024xf32>
      %c0_18 = arith.constant 0 : index
      %c0_19 = arith.constant 0 : index
      %c0_20 = arith.constant 0 : index
      %35 = vector.load %arg6[%c0_18, %c0_19, %c0_20] : memref<1x1x1024xf32, #tpu.memory_space<vmem>>, vector<1x1x1024xf32>
      %36 = vector.shape_cast %35 : vector<1x1x1024xf32> to vector<1x1024xf32>
      %37 = vector.shape_cast %34 : vector<1x1024xf32> to vector<1x1x1024xf32>
      tpu.vector_store %arg6[%c0_18, %c0_19, %c0_20], %37 {strides = array<i32>} : memref<1x1x1024xf32, #tpu.memory_space<vmem>>, vector<1x1x1024xf32>,
      %c0_21 = arith.constant 0 : index
      %c0_22 = arith.constant 0 : index
      %c0_23 = arith.constant 0 : index
      %38 = vector.load %arg7[%c0_21, %c0_22, %c0_23] : memref<1x1x1024xf32, #tpu.memory_space<vmem>>, vector<1x1x1024xf32>
      %39 = vector.shape_cast %38 : vector<1x1x1024xf32> to vector<1x1024xf32>
      %40 = arith.mulf %29, %29 : vector<16x1024xf32>
      %cst_24 = arith.constant dense<0.000000e+00> : vector<1024xf32>
      %41 = vector.multi_reduction <add>, %40, %cst_24 [0] : vector<16x1024xf32> to vector<1024xf32>
      %42 = vector.shape_cast %41 : vector<1024xf32> to vector<1x1024xf32>
      %43 = arith.addf %39, %42 : vector<1x1024xf32>
      %c0_25 = arith.constant 0 : index
      %c0_26 = arith.constant 0 : index
      %c0_27 = arith.constant 0 : index
      %44 = vector.load %arg7[%c0_25, %c0_26, %c0_27] : memref<1x1x1024xf32, #tpu.memory_space<vmem>>, vector<1x1x1024xf32>
      %45 = vector.shape_cast %44 : vector<1x1x1024xf32> to vector<1x1024xf32>
      %46 = vector.shape_cast %43 : vector<1x1024xf32> to vector<1x1x1024xf32>
      tpu.vector_store %arg7[%c0_25, %c0_26, %c0_27], %46 {strides = array<i32>} : memref<1x1x1024xf32, #tpu.memory_space<vmem>>, vector<1x1x1024xf32>,
    } else {
    }
    %c2_i32_8 = arith.constant 2 : i32
    %13 = arith.cmpi ne, %arg1, %c2_i32_8 : i32
    %14 = arith.extui %13 : i1 to i32
    %c0_i32_9 = arith.constant 0 : i32
    %15 = arith.cmpi ne, %14, %c0_i32_9 : i32
    scf.if %15 {
      %c0_13 = arith.constant 0 : index
      %c0_14 = arith.constant 0 : index
      %c0_15 = arith.constant 0 : index
      %20 = vector.load %arg6[%c0_13, %c0_14, %c0_15] : memref<1x1x1024xf32, #tpu.memory_space<vmem>>, vector<1x1x1024xf32>
      %21 = vector.shape_cast %20 : vector<1x1x1024xf32> to vector<1x1024xf32>
      %cst_16 = arith.constant dense<0.000000e+00> : vector<1024xf32>
      %22 = vector.multi_reduction <add>, %6, %cst_16 [0] : vector<16x1024xf32> to vector<1024xf32>
      %23 = vector.shape_cast %22 : vector<1024xf32> to vector<1x1024xf32>
      %24 = arith.addf %21, %23 : vector<1x1024xf32>
      %c0_17 = arith.constant 0 : index
      %c0_18 = arith.constant 0 : index
      %c0_19 = arith.constant 0 : index
      %25 = vector.load %arg6[%c0_17, %c0_18, %c0_19] : memref<1x1x1024xf32, #tpu.memory_space<vmem>>, vector<1x1x1024xf32>
      %26 = vector.shape_cast %25 : vector<1x1x1024xf32> to vector<1x1024xf32>
      %27 = vector.shape_cast %24 : vector<1x1024xf32> to vector<1x1x1024xf32>
      tpu.vector_store %arg6[%c0_17, %c0_18, %c0_19], %27 {strides = array<i32>} : memref<1x1x1024xf32, #tpu.memory_space<vmem>>, vector<1x1x1024xf32>,
      %c0_20 = arith.constant 0 : index
      %c0_21 = arith.constant 0 : index
      %c0_22 = arith.constant 0 : index
      %28 = vector.load %arg7[%c0_20, %c0_21, %c0_22] : memref<1x1x1024xf32, #tpu.memory_space<vmem>>, vector<1x1x1024xf32>
      %29 = vector.shape_cast %28 : vector<1x1x1024xf32> to vector<1x1024xf32>
      %30 = arith.mulf %6, %6 : vector<16x1024xf32>
      %cst_23 = arith.constant dense<0.000000e+00> : vector<1024xf32>
      %31 = vector.multi_reduction <add>, %30, %cst_23 [0] : vector<16x1024xf32> to vector<1024xf32>
      %32 = vector.shape_cast %31 : vector<1024xf32> to vector<1x1024xf32>
      %33 = arith.addf %29, %32 : vector<1x1024xf32>
      %c0_24 = arith.constant 0 : index
      %c0_25 = arith.constant 0 : index
      %c0_26 = arith.constant 0 : index
      %34 = vector.load %arg7[%c0_24, %c0_25, %c0_26] : memref<1x1x1024xf32, #tpu.memory_space<vmem>>, vector<1x1x1024xf32>
      %35 = vector.shape_cast %34 : vector<1x1x1024xf32> to vector<1x1024xf32>
      %36 = vector.shape_cast %33 : vector<1x1024xf32> to vector<1x1x1024xf32>
      tpu.vector_store %arg7[%c0_24, %c0_25, %c0_26], %36 {strides = array<i32>} : memref<1x1x1024xf32, #tpu.memory_space<vmem>>, vector<1x1x1024xf32>,
    } else {
    }
    %16 = arith.truncf %6 : vector<16x1024xf32> to vector<16x1024xbf16>
    %c0_10 = arith.constant 0 : index
    %c0_11 = arith.constant 0 : index
    %c0_12 = arith.constant 0 : index
    %17 = vector.load %arg5[%c0_10, %c0_11, %c0_12] : memref<1x16x1024xbf16, #tpu.memory_space<vmem>>, vector<1x16x1024xbf16>
    %18 = vector.shape_cast %17 : vector<1x16x1024xbf16> to vector<16x1024xbf16>
    %19 = vector.shape_cast %16 : vector<16x1024xbf16> to vector<1x16x1024xbf16>
    tpu.vector_store %arg5[%c0_10, %c0_11, %c0_12], %19 {strides = array<i32>} : memref<1x16x1024xbf16, #tpu.memory_space<vmem>>, vector<1x16x1024xbf16>,
    return
  }
  func.func @transform_0(%arg0: i32, %arg1: i32) -> (i32, i32, i32) {
    %c0_i32 = arith.constant 0 : i32
    %c0_i32_0 = arith.constant 0 : i32
    return %arg0, %arg1, %c0_i32 : i32, i32, i32
  }
  func.func @transform_1(%arg0: i32, %arg1: i32) -> (i32, i32) {
    %c0_i32 = arith.constant 0 : i32
    %c0_i32_0 = arith.constant 0 : i32
    %c0_i32_1 = arith.constant 0 : i32
    return %c0_i32, %c0_i32_0 : i32, i32
  }
  func.func @transform_2(%arg0: i32, %arg1: i32) -> (i32, i32) {
    %c0_i32 = arith.constant 0 : i32
    %c0_i32_0 = arith.constant 0 : i32
    %c0_i32_1 = arith.constant 0 : i32
    return %c0_i32, %c0_i32_0 : i32, i32
  }
  func.func @transform_3(%arg0: i32, %arg1: i32) -> (i32, i32, i32) {
    %c0_i32 = arith.constant 0 : i32
    %c0_i32_0 = arith.constant 0 : i32
    return %arg0, %arg1, %c0_i32 : i32, i32, i32
  }
  func.func @transform_4(%arg0: i32, %arg1: i32) -> (i32, i32, i32) {
    %c0_i32 = arith.constant 0 : i32
    %c0_i32_0 = arith.constant 0 : i32
    %c0_i32_1 = arith.constant 0 : i32
    return %arg0, %c0_i32, %c0_i32_0 : i32, i32, i32
  }
  func.func @transform_5(%arg0: i32, %arg1: i32) -> (i32, i32, i32) {
    %c0_i32 = arith.constant 0 : i32
    %c0_i32_0 = arith.constant 0 : i32
    %c0_i32_1 = arith.constant 0 : i32
    return %arg0, %c0_i32, %c0_i32_0 : i32, i32, i32
  }
}

module attributes {stable_mosaic.version = 11 : i64} {
  func.func @kernel(%arg0: i32, %arg1: i32, %arg2: memref<1x16x128xbf16, #tpu.memory_space<vmem>>, %arg3: memref<128x1024xbf16, #tpu.memory_space<vmem>>, %arg4: memref<1x1024xf32, #tpu.memory_space<vmem>>, %arg5: memref<1x16x1024xbf16, #tpu.memory_space<vmem>>, %arg6: memref<1x1x1024xf32, #tpu.memory_space<vmem>>, %arg7: memref<1x1x1024xf32, #tpu.memory_space<vmem>>) attributes {dimension_semantics = [#tpu.dimension_semantics<parallel>, #tpu.dimension_semantics<arbitrary>], iteration_bounds = array<i64: 2, 3>, scalar_prefetch = 0 : i64, scratch_operands = 0 : i64, tpu.core_type = #tpu.core_type<tc>, window_params = [{transform_indices = @transform_0, window_bounds = array<i64: 1, 16, 128>}, {pipeline_mode = #tpu.pipeline_mode<synchronous>, transform_indices = @transform_1, window_bounds = array<i64: 128, 1024>}, {pipeline_mode = #tpu.pipeline_mode<synchronous>, transform_indices = @transform_2, window_bounds = array<i64: 1, 1024>}, {transform_indices = @transform_3, window_bounds = array<i64: 1, 16, 1024>}, {transform_indices = @transform_4, window_bounds = array<i64: 1, 1, 1024>}, {transform_indices = @transform_5, window_bounds = array<i64: 1, 1, 1024>}]} {
    %c0 = arith.constant 0 : index
    %c0_0 = arith.constant 0 : index
    %c0_1 = arith.constant 0 : index
    %0 = vector.load %arg2[%c0, %c0_0, %c0_1] : memref<1x16x128xbf16, #tpu.memory_space<vmem>>, vector<1x16x128xbf16>
    %1 = vector.shape_cast %0 : vector<1x16x128xbf16> to vector<16x128xbf16>
    %c0_2 = arith.constant 0 : index
    %c0_3 = arith.constant 0 : index
    %2 = vector.load %arg3[%c0_2, %c0_3] : memref<128x1024xbf16, #tpu.memory_space<vmem>>, vector<128x1024xbf16>
    %cst = arith.constant dense<0.000000e+00> : vector<16x1024xf32>
    %3 = tpu.matmul %1, %2, %cst {dimension_numbers = #tpu.dot_dimension_numbers<[1], [0], [0], [1], [0, 0, 1, 1], [], []>} : vector<16x128xbf16>, vector<128x1024xbf16>, vector<16x1024xf32> -> vector<16x1024xf32>
    %c0_4 = arith.constant 0 : index
    %c0_5 = arith.constant 0 : index
    %4 = vector.load %arg4[%c0_4, %c0_5] : memref<1x1024xf32, #tpu.memory_space<vmem>>, vector<1x1024xf32>
    %5 = vector.broadcast %4 : vector<1x1024xf32> to vector<16x1024xf32>
    %6 = arith.addf %3, %5 : vector<16x1024xf32>
    %c0_i32 = arith.constant 0 : i32
    %7 = arith.cmpi eq, %arg1, %c0_i32 : i32
    %8 = arith.extui %7 : i1 to i32
    %c0_i32_6 = arith.constant 0 : i32
    %9 = arith.cmpi ne, %8, %c0_i32_6 : i32
    scf.if %9 {
      %cst_13 = arith.constant 0.000000e+00 : f32
      %20 = vector.broadcast %cst_13 : f32 to vector<1x1x1024xf32>
      %c0_14 = arith.constant 0 : index
      %c0_15 = arith.constant 0 : index
      %c0_16 = arith.constant 0 : index
      %21 = vector.load %arg6[%c0_14, %c0_15, %c0_16] : memref<1x1x1024xf32, #tpu.memory_space<vmem>>, vector<1x1x1024xf32>
      tpu.vector_store %arg6[%c0_14, %c0_15, %c0_16], %20 {strides = array<i32>} : memref<1x1x1024xf32, #tpu.memory_space<vmem>>, vector<1x1x1024xf32>,
      %cst_17 = arith.constant 0.000000e+00 : f32
      %22 = vector.broadcast %cst_17 : f32 to vector<1x1x1024xf32>
      %c0_18 = arith.constant 0 : index
      %c0_19 = arith.constant 0 : index
      %c0_20 = arith.constant 0 : index
      %23 = vector.load %arg7[%c0_18, %c0_19, %c0_20] : memref<1x1x1024xf32, #tpu.memory_space<vmem>>, vector<1x1x1024xf32>
      tpu.vector_store %arg7[%c0_18, %c0_19, %c0_20], %22 {strides = array<i32>} : memref<1x1x1024xf32, #tpu.memory_space<vmem>>, vector<1x1x1024xf32>,
    } else {
    }
    %c2_i32 = arith.constant 2 : i32
    %10 = arith.cmpi eq, %arg1, %c2_i32 : i32
    %11 = arith.extui %10 : i1 to i32
    %c0_i32_7 = arith.constant 0 : i32
    %12 = arith.cmpi ne, %11, %c0_i32_7 : i32
    scf.if %12 {
      %20 = tpu.iota {dimensions = array<i32: 0>} : vector<16x1xi32>
      %c16_i32 = arith.constant 16 : i32
      %21 = arith.muli %arg1, %c16_i32 : i32
      %22 = vector.broadcast %21 : i32 to vector<16x1xi32>
      %23 = arith.addi %22, %20 : vector<16x1xi32>
      %c36_i32 = arith.constant 36 : i32
      %24 = vector.broadcast %c36_i32 : i32 to vector<16x1xi32>
      %25 = arith.cmpi slt, %23, %24 : vector<16x1xi32>
      %cst_13 = arith.constant 0.000000e+00 : f32
      %26 = vector.shape_cast %25 : vector<16x1xi1> to vector<16x1xi1>
      %27 = vector.broadcast %26 : vector<16x1xi1> to vector<16x1024xi1>
      %28 = vector.broadcast %cst_13 : f32 to vector<16x1024xf32>
      %29 = arith.select %27, %6, %28 : vector<16x1024xi1>, vector<16x1024xf32>
      %c0_14 = arith.constant 0 : index
      %c0_15 = arith.constant 0 : index
      %c0_16 = arith.constant 0 : index
      %30 = vector.load %arg6[%c0_14, %c0_15, %c0_16] : memref<1x1x1024xf32, #tpu.memory_space<vmem>>, vector<1x1x1024xf32>
      %31 = vector.shape_cast %30 : vector<1x1x1024xf32> to vector<1x1024xf32>
      %cst_17 = arith.constant dense<0.000000e+00> : vector<1024xf32>
      %32 = vector.multi_reduction <add>, %29, %cst_17 [0] : vector<16x1024xf32> to vector<1024xf32>
      %33 = vector.shape_cast %32 : vector<1024xf32> to vector<1x1024xf32>
      %34 = arith.addf %31, %33 : vector<1x1024xf32>
      %c0_18 = arith.constant 0 : index
      %c0_19 = arith.constant 0 : index
      %c0_20 = arith.constant 0 : index
      %35 = vector.load %arg6[%c0_18, %c0_19, %c0_20] : memref<1x1x1024xf32, #tpu.memory_space<vmem>>, vector<1x1x1024xf32>
      %36 = vector.shape_cast %35 : vector<1x1x1024xf32> to vector<1x1024xf32>
      %37 = vector.shape_cast %34 : vector<1x1024xf32> to vector<1x1x1024xf32>
      tpu.vector_store %arg6[%c0_18, %c0_19, %c0_20], %37 {strides = array<i32>} : memref<1x1x1024xf32, #tpu.memory_space<vmem>>, vector<1x1x1024xf32>,
      %c0_21 = arith.constant 0 : index
      %c0_22 = arith.constant 0 : index
      %c0_23 = arith.constant 0 : index
      %38 = vector.load %arg7[%c0_21, %c0_22, %c0_23] : memref<1x1x1024xf32, #tpu.memory_space<vmem>>, vector<1x1x1024xf32>
      %39 = vector.shape_cast %38 : vector<1x1x1024xf32> to vector<1x1024xf32>
      %40 = arith.mulf %29, %29 : vector<16x1024xf32>
      %cst_24 = arith.constant dense<0.000000e+00> : vector<1024xf32>
      %41 = vector.multi_reduction <add>, %40, %cst_24 [0] : vector<16x1024xf32> to vector<1024xf32>
      %42 = vector.shape_cast %41 : vector<1024xf32> to vector<1x1024xf32>
      %43 = arith.addf %39, %42 : vector<1x1024xf32>
      %c0_25 = arith.constant 0 : index
      %c0_26 = arith.constant 0 : index
      %c0_27 = arith.constant 0 : index
      %44 = vector.load %arg7[%c0_25, %c0_26, %c0_27] : memref<1x1x1024xf32, #tpu.memory_space<vmem>>, vector<1x1x1024xf32>
      %45 = vector.shape_cast %44 : vector<1x1x1024xf32> to vector<1x1024xf32>
      %46 = vector.shape_cast %43 : vector<1x1024xf32> to vector<1x1x1024xf32>
      tpu.vector_store %arg7[%c0_25, %c0_26, %c0_27], %46 {strides = array<i32>} : memref<1x1x1024xf32, #tpu.memory_space<vmem>>, vector<1x1x1024xf32>,
    } else {
    }
    %c2_i32_8 = arith.constant 2 : i32
    %13 = arith.cmpi ne, %arg1, %c2_i32_8 : i32
    %14 = arith.extui %13 : i1 to i32
    %c0_i32_9 = arith.constant 0 : i32
    %15 = arith.cmpi ne, %14, %c0_i32_9 : i32
    scf.if %15 {
      %c0_13 = arith.constant 0 : index
      %c0_14 = arith.constant 0 : index
      %c0_15 = arith.constant 0 : index
      %20 = vector.load %arg6[%c0_13, %c0_14, %c0_15] : memref<1x1x1024xf32, #tpu.memory_space<vmem>>, vector<1x1x1024xf32>
      %21 = vector.shape_cast %20 : vector<1x1x1024xf32> to vector<1x1024xf32>
      %cst_16 = arith.constant dense<0.000000e+00> : vector<1024xf32>
      %22 = vector.multi_reduction <add>, %6, %cst_16 [0] : vector<16x1024xf32> to vector<1024xf32>
      %23 = vector.shape_cast %22 : vector<1024xf32> to vector<1x1024xf32>
      %24 = arith.addf %21, %23 : vector<1x1024xf32>
      %c0_17 = arith.constant 0 : index
      %c0_18 = arith.constant 0 : index
      %c0_19 = arith.constant 0 : index
      %25 = vector.load %arg6[%c0_17, %c0_18, %c0_19] : memref<1x1x1024xf32, #tpu.memory_space<vmem>>, vector<1x1x1024xf32>
      %26 = vector.shape_cast %25 : vector<1x1x1024xf32> to vector<1x1024xf32>
      %27 = vector.shape_cast %24 : vector<1x1024xf32> to vector<1x1x1024xf32>
      tpu.vector_store %arg6[%c0_17, %c0_18, %c0_19], %27 {strides = array<i32>} : memref<1x1x1024xf32, #tpu.memory_space<vmem>>, vector<1x1x1024xf32>,
      %c0_20 = arith.constant 0 : index
      %c0_21 = arith.constant 0 : index
      %c0_22 = arith.constant 0 : index
      %28 = vector.load %arg7[%c0_20, %c0_21, %c0_22] : memref<1x1x1024xf32, #tpu.memory_space<vmem>>, vector<1x1x1024xf32>
      %29 = vector.shape_cast %28 : vector<1x1x1024xf32> to vector<1x1024xf32>
      %30 = arith.mulf %6, %6 : vector<16x1024xf32>
      %cst_23 = arith.constant dense<0.000000e+00> : vector<1024xf32>
      %31 = vector.multi_reduction <add>, %30, %cst_23 [0] : vector<16x1024xf32> to vector<1024xf32>
      %32 = vector.shape_cast %31 : vector<1024xf32> to vector<1x1024xf32>
      %33 = arith.addf %29, %32 : vector<1x1024xf32>
      %c0_24 = arith.constant 0 : index
      %c0_25 = arith.constant 0 : index
      %c0_26 = arith.constant 0 : index
      %34 = vector.load %arg7[%c0_24, %c0_25, %c0_26] : memref<1x1x1024xf32, #tpu.memory_space<vmem>>, vector<1x1x1024xf32>
      %35 = vector.shape_cast %34 : vector<1x1x1024xf32> to vector<1x1024xf32>
      %36 = vector.shape_cast %33 : vector<1x1024xf32> to vector<1x1x1024xf32>
      tpu.vector_store %arg7[%c0_24, %c0_25, %c0_26], %36 {strides = array<i32>} : memref<1x1x1024xf32, #tpu.memory_space<vmem>>, vector<1x1x1024xf32>,
    } else {
    }
    %16 = arith.truncf %6 : vector<16x1024xf32> to vector<16x1024xbf16>
    %c0_10 = arith.constant 0 : index
    %c0_11 = arith.constant 0 : index
    %c0_12 = arith.constant 0 : index
    %17 = vector.load %arg5[%c0_10, %c0_11, %c0_12] : memref<1x16x1024xbf16, #tpu.memory_space<vmem>>, vector<1x16x1024xbf16>
    %18 = vector.shape_cast %17 : vector<1x16x1024xbf16> to vector<16x1024xbf16>
    %19 = vector.shape_cast %16 : vector<16x1024xbf16> to vector<1x16x1024xbf16>
    tpu.vector_store %arg5[%c0_10, %c0_11, %c0_12], %19 {strides = array<i32>} : memref<1x16x1024xbf16, #tpu.memory_space<vmem>>, vector<1x16x1024xbf16>,
    return
  }
  func.func @transform_0(%arg0: i32, %arg1: i32) -> (i32, i32, i32) {
    %c0_i32 = arith.constant 0 : i32
    %c0_i32_0 = arith.constant 0 : i32
    return %arg0, %arg1, %c0_i32 : i32, i32, i32
  }
  func.func @transform_1(%arg0: i32, %arg1: i32) -> (i32, i32) {
    %c0_i32 = arith.constant 0 : i32
    %c0_i32_0 = arith.constant 0 : i32
    %c0_i32_1 = arith.constant 0 : i32
    return %c0_i32, %c0_i32_0 : i32, i32
  }
  func.func @transform_2(%arg0: i32, %arg1: i32) -> (i32, i32) {
    %c0_i32 = arith.constant 0 : i32
    %c0_i32_0 = arith.constant 0 : i32
    %c0_i32_1 = arith.constant 0 : i32
    return %c0_i32, %c0_i32_0 : i32, i32
  }
  func.func @transform_3(%arg0: i32, %arg1: i32) -> (i32, i32, i32) {
    %c0_i32 = arith.constant 0 : i32
    %c0_i32_0 = arith.constant 0 : i32
    return %arg0, %arg1, %c0_i32 : i32, i32, i32
  }
  func.func @transform_4(%arg0: i32, %arg1: i32) -> (i32, i32, i32) {
    %c0_i32 = arith.constant 0 : i32
    %c0_i32_0 = arith.constant 0 : i32
    %c0_i32_1 = arith.constant 0 : i32
    return %arg0, %c0_i32, %c0_i32_0 : i32, i32, i32
  }
  func.func @transform_5(%arg0: i32, %arg1: i32) -> (i32, i32, i32) {
    %c0_i32 = arith.constant 0 : i32
    %c0_i32_0 = arith.constant 0 : i32
    %c0_i32_1 = arith.constant 0 : i32
    return %arg0, %c0_i32, %c0_i32_0 : i32, i32, i32
  }
}

</mosaic_0001>

<bundles_post_ra>
// kernel: tpu_custom_call.1
= control target key start
LH: loop header
LB: loop body
LE: loop exit
PB: predicated region body
PF: predicated region fallthrough
CT: control target
= control target key end

     0   :  { %s3028_s0 = inlined_call_operand.hbm [shape: bf16[2,36,128], index: 0, kind: input, shape index: {}]   ;;  %s3029_s1 = inlined_call_operand.hbm [shape: bf16[128,1024], index: 1, kind: input, shape index: {}]   ;;  %s3030_s2 = inlined_call_operand.hbm [shape: f32[1,1024], index: 2, kind: input, shape index: {}]   ;;  %s3031_s3 = inlined_call_operand.hbm [shape: bf16[2,36,1024], index: 3, kind: output, shape index: {0}]   ;;  %s3032_s4 = inlined_call_operand.hbm [shape: f32[2,1,1024], index: 4, kind: output, shape index: {1}]   ;;  %s3033_s5 = inlined_call_operand.hbm [shape: f32[2,1,1024], index: 5, kind: output, shape index: {2}]  }
   0x1   :  { %3061 = sst [smem:[#allocation31_spill]] %s3032_s4 }
   0x2   :  { %3062 = sst [smem:[#allocation32_spill]] %s3033_s5 }
   0x3   :  { %11 = vsyncpa [#allocation3], 0 }
   0x4   :  { %13 = vsyncpa [#allocation3 + $0x1], 0 }
   0x5   :  { %14 = vsyncpa [#allocation6], 0 }
   0x6   :  { %15 = vsyncpa [#allocation4], 0 }
   0x7   :  { %17 = vsyncpa [#allocation4 + $0x1], 0 }
   0x8   :  { %18 = vsyncpa [#allocation10], 0 }
   0x9   :  { %20 = vsyncpa [#allocation10 + $0x1], 0  ;;  %s2344_s18 = smov 0   ;;  %s2346_s19 = smov 0  }
   0xa   :  { %s2348_s20 = smov 0   ;;  %s2350_s21 = smov 0  }
   0xb   :  { %s2352_s22 = smov 0   ;;  %s2354_s23 = smov 0  }
   0xc   :  { %s2356_s24 = smov 0   ;;  %s2358_s25 = smov 0  }
   0xd   :  { %s2360_s26 = smov 0   ;;  %s2362_s27 = smov 0  }
   0xe   :  { %s2364_s28 = smov 0  }
   0xf LB: > { %3063 = sst [smem:[#allocation16_spill]] %s2264_s20  ;;  %s2400_s29 = sadd.s32 4294967295, %s2296_s28   ;;  %s2296_s28 = sphi %s2364_s28, %s26_s28   ;;  %s2292_s27 = sphi %s2362_s27, %s3130_s27   ;;  %s2288_s26 = sphi %s2360_s26, %s3129_s26   ;;  %s2284_s25 = sphi %s2358_s25, %s3128_s25   ;;  %s2280_s24 = sphi %s2356_s24, %s3127_s24   ;;  %s2276_s23 = sphi %s2354_s23, %s3126_s23   ;;  %s2272_s22 = sphi %s2352_s22, %s3125_s22   ;;  %s2268_s21 = sphi %s2350_s21, %s3124_s21   ;;  %s2264_s20 = sphi %s2348_s20, %s3118_s20   ;;  %s2260_s19 = sphi %s2346_s19, %s3123_s19   ;;  %s2256_s18 = sphi %s2344_s18, %s3122_s18  }
  0x10   : > { %3064 = sst [smem:[#allocation17_spill]] %s2268_s21  ;;  %s3036_s30 = sadd.s32 4294967294, %s2296_s28  }
  0x11   : > { %s35_s6 = sadd.s32 1, %s2288_s26  ;;  %s38_s7 = sadd.s32 1, %s2292_s27 }
  0x12   : > { %p36_p0 = scmp.ge.s32.totalorder %s35_s6, 3  ;;  %s47_s8 = sadd.s32 1, %s2276_s23 }
  0x13   : > { %p54_p1 = scmp.ne.s32.totalorder %s2276_s23, %s2272_s22  ;;  %p55_p2 = scmp.eq.s32.totalorder %s2296_s28, 0 }
  0x14   : > { %s3132_s6 = smov (%p36_p0, %s35_s6), 0  ;;  %s3134_s7 = smov (!%p36_p0, %s38_s7), %s2292_s27 }
  0x15   : > { %3065 = sst [smem:[#allocation18_spill]] %s3132_s6  ;;  %s43_s9 = ssub.s32 %s2288_s26, %s3132_s6 }
  0x16   : > { %p2414_p3 = por %p55_p2, %p54_p1  ;;  %p40_p4 = scmp.ge.s32.totalorder %s3134_s7, 2 }
  0x17   : > { %p60_p5 = scmp.ne.s32.totalorder %s2272_s22, %s2268_s21  ;;  %p3037_p6 = scmp.eq.s32.totalorder %s2400_s29, 0 }
  0x18   : > { %s3066_s10 = scalar_select %p2414_p3, 1, 0 }
  0x19   : > { %p128_p7 = scmp.eq.s32.totalorder %s2400_s29, 5  ;;  %s3136_s7 = smov (%p40_p4, %s3134_s7), 0 }
  0x1a   : > { %3067 = sst [smem:[#allocation19_spill]] %s3136_s7  ;;  %p2426_p8 = por %p3037_p6, %p60_p5 }
  0x1b   : > { %p2432_p9 = por %p128_p7, %p54_p1  ;;  %s42_s13 = ssub.s32 %s2292_s27, %s3136_s7 }
  0x1c   : > { %s3068_s11 = scalar_select %p2426_p8, 1, 0 }
  0x1d   : > { %s3069_s12 = scalar_select %p2432_p9, 1, 0 }
  0x1e   : > { %p2440_p10 = scmp.eq.s32.totalorder %s3036_s30, 5  ;;  %s44_s15 = sor.u32 %s43_s9, %s42_s13 }
  0x1f   : > { %p141_p11 = scmp.eq.s32.totalorder %s42_s13, 0  ;;  %p45_p12 = scmp.eq.s32.totalorder %s44_s15, 0 }
  0x20   : > { %p2446_p13 = por %p2440_p10, %p60_p5  ;;  %s143_s17 = sadd.s32 1, %s2264_s20 }
  0x21   : > { %p153_p0 = scmp.ne.s32.totalorder %s2264_s20, %s2260_s19  ;;  %p159_p2 = scmp.ne.s32.totalorder %s2260_s19, %s2256_s18 }
  0x22   : > { %s3071_s16 = scalar_select %p2446_p13, 1, 0 }
  0x23   : > { %s2454_s6 = scalar_select %p45_p12, %s2276_s23, %s47_s8  }
  0x24   : > { %3072 = sst [smem:[#allocation20_spill]] %s3071_s16  ;;  %p2461_p1 = por %p153_p0, %p128_p7 }
  0x25   : > { %3073 = sst [smem:[#allocation21_spill]] %s2454_s6  ;;  %p1763_p4 = scmp.ge.s32.totalorder %s2296_s28, 1 }
  0x26   : > { %s2457_s7 = scalar_select %p141_p11, %s2264_s20, %s143_s17  }
  0x27   : > { %s3075_s30 = scalar_select %p2461_p1, 1, 0 }
  0x28   : > { %3074 = sst [smem:[#allocation22_spill]] %s2457_s7  ;;  %p193_p6 = scmp.lt.s32.totalorder %s2296_s28, 7 }
  0x29   : > { %3076 = sst [smem:[#allocation23_spill]] %s3075_s30  ;;  %p2471_p9 = por %p159_p2, %p2440_p10 }
  0x2a   : > { %p2475_p5 = pnand %p1763_p4, %p193_p6  ;;  %s2298_s8 = smov [#allocation5]  }
  0x2b   : > { %s3077_s9 = scalar_select %p2471_p9, 1, 0 }
  0x2c   : > { %s3079_s13 = scalar_select %p2475_p5, 1, 0 }
  0x2d   : > { %3078 = sst [smem:[#allocation24_spill]] %s3077_s9  ;;  %s205_s15 = sshll.u32 %s2298_s8, 4  ;;  %s206_s15 = int_to_ptr.vmem [resolvable:$true] %s205_s15 }
  0x2e   : > { %p1903_p7 = pneg %p2475_p5  ;;  %p3080_p11 = scmp.eq.s32.totalorder %s2400_s29, 0 }
  0x2f   : > { %s2299_s14 = smov [#allocation7]   ;;  %s2026_s20 = scalar_lea.hbm %s3029_s1, 8192 }
  0x30   : > { %p2483_p12 = pnand %p1903_p7, %p3080_p11  ;;  %s219_s17 = sshll.u32 %s2299_s14, 4  ;;  %s2487_s17 = int_to_ptr.vmem [resolvable:$true] %s219_s17 }
  0x31   : > { %p2027_p6 = scmp.ne.s32.totalorder %s3029_s1, %s2026_s20  ;;  %p2033_p4 = scmp.lt.u32.totalorder %s2026_s20, %s3029_s1 }
  0x32   : > { %p2028_p10 = pneg %p2483_p12 }
  0x34   : > { %p2029_p0 = pnand %p2028_p10, %p2027_p6 }
  0x36   : > { %p2030_p2 = pneg %p2029_p0 }
  0x38   : > { %p2035_p7 = pnand %p2033_p4, %p2030_p2 }
  0x3a   : > { %2038 = shalt.err (!%p2035_p7)
}
  0x3b   : > { %s2039_s14 = scalar_lea.vmem %s206_s15, 8192  ;;  %p2047_p1 = scmp.lt.s32.totalorder %s206_s15, %s206_s15 }
  0x3c   : > { %p2040_p11 = scmp.ne.s32.totalorder %s206_s15, %s2039_s14  ;;  %p2048_p8 = scmp.lt.s32.totalorder %s2039_s14, %s2039_s14 }
  0x3e   : > { %p2042_p9 = pnand %p2040_p11, %p2028_p10  ;;  %p2049_p5 = por %p2048_p8, %p2047_p1 }
  0x40   : > { %p2043_p13 = pneg %p2042_p9 }
  0x42   : > { %p2050_p3 = pnand %p2049_p5, %p2043_p13 }
  0x44   : > { %2053 = shalt.err (!%p2050_p3)
}
  0x45   : > { %s2300_s6 = smov 512   ;;  %s2301_s7 = smov 32  }
  0x46   : > { %1906 = dma.hbm_to_vmem [thread:$0]  (!%p2483_p12), %s3029_s1, 8192, %s206_s15, [#allocation6], %s2300_s6, %s2300_s6, %s2301_s7  }
  0x47   : > { %s2054_s8 = scalar_lea.hbm %s3030_s2, 128 }
  0x48   : > { %p2055_p9 = scmp.ne.s32.totalorder %s3030_s2, %s2054_s8  ;;  %p2061_p13 = scmp.lt.u32.totalorder %s2054_s8, %s3030_s2 }
  0x4a   : > { %p2057_p3 = pnand %p2055_p9, %p2028_p10 }
  0x4c   : > { %p2058_p8 = pneg %p2057_p3 }
  0x4e   : > { %p2063_p1 = pnand %p2061_p13, %p2058_p8 }
  0x50   : > { %2066 = shalt.err (!%p2063_p1)
}
  0x51   : > { %s2067_s15 = scalar_lea.vmem %s2487_s17, 128  ;;  %p2075_p2 = scmp.lt.s32.totalorder %s2487_s17, %s2487_s17 }
  0x52   : > { %p2068_p5 = scmp.ne.s32.totalorder %s2487_s17, %s2067_s15  ;;  %p2076_p4 = scmp.lt.s32.totalorder %s2067_s15, %s2067_s15 }
  0x54   : > { %p2070_p6 = pnand %p2068_p5, %p2028_p10  ;;  %p2077_p7 = por %p2076_p4, %p2075_p2 }
  0x56   : > { %p2071_p0 = pneg %p2070_p6 }
  0x58   : > { %p2078_p11 = pnand %p2077_p7, %p2071_p0 }
  0x5a   : > { %2081 = shalt.err (!%p2078_p11)
}
  0x5b   : > { %1909 = dma.hbm_to_vmem [thread:$0]  (!%p2483_p12), %s3030_s2, 128, %s2487_s17, [#allocation6]  }
  0x5c   : > { %p1766_p9 = scmp.ge.s32.totalorder %s2296_s28, 6 }
  0x5d   : > { %p3082_p3 = scmp.ne.s32.totalorder (!%p1766_p9), %s3066_s10, 0 }
  0x5e   : > { %226 = sbr.rel (%p1766_p9) target bundleno = 138 (0x8a), region = 24 }
  0x65   : > { %229 = sbr.rel (!%p3082_p3) target bundleno = 138 (0x8a), region = 28  ;;  %s230_s30 = sand.u32 (%p3082_p3), 1, %s2276_s23  }
  0x66   : > { %s1768_s6 = sshll.u32 (%p3082_p3), %s2288_s26, 1  ;;  %s1767_s7 = sshll.u32 (%p3082_p3), %s230_s30, 3 }
  0x67   : > { %s236_s20 = ssub.s32 (%p3082_p3), 5, %s1768_s6  ;;  %s2544_s16 = scalar_lea.sflag (%p3082_p3), [#allocation3], %s230_s30 }
  0x68   : > { %p237_p10 = scmp.lt.s32.totalorder (%p3082_p3), %s236_s20, 2  ;;  %s234_s17 = scalar_lea.vmem (%p3082_p3), [#allocation2], %s1767_s7 }
  0x6c   : > { %s3138_s20 = smov (!%p237_p10, %s236_s20), 2 }
  0x6d   : > { %s2541_s18 = sshll.u32 %s3138_s20, 6 }
  0x6e   : > { %s241_s21 = ssub.s32 128, %s2541_s18 }
  0x6f   : > { %242 = vsyncadd %s2544_s16, %s241_s21  ;;  %p1770_p12 = scmp.ne.s32.totalorder %s2541_s18, 0  ;;  %s1887_s10 = smul.u32 5, %s2292_s27 }
  0x70   : > { %s249_s9 = sshll.u32 %s234_s17, 4  ;;  %s2549_s9 = int_to_ptr.vmem [resolvable:$true] %s249_s9 }
  0x71   : > { %s245_s8 = sadd.s32 %s1887_s10, %s1768_s6  ;;  %s2086_s6 = scalar_lea.hbm %s3028_s0, 640 }
  0x72   : > { %s1771_s14 = sshll.u32 %s245_s8, 6 }
  0x73   : > { %s2554_s5 = scalar_lea.hbm %s3028_s0, %s1771_s14 }
  0x74   : > { %s2082_s30 = scalar_lea.hbm %s2554_s5, %s2541_s18  ;;  %p2087_p5 = scmp.lt.u32.totalorder %s2554_s5, %s3028_s0 }
  0x75   : > { %p2083_p8 = scmp.ne.s32.totalorder %s2554_s5, %s2082_s30  ;;  %p2088_p6 = scmp.lt.u32.totalorder %s2086_s6, %s2082_s30 }
  0x76   : > { %p2090_p2 = scmp.lt.u32.totalorder %s2082_s30, %s2554_s5 }
  0x77   : > { %p2084_p13 = pnand %p2083_p8, %p1770_p12  ;;  %p2089_p0 = por %p2088_p6, %p2087_p5 }
  0x79   : > { %p2085_p1 = pneg %p2084_p13  ;;  %p2091_p4 = por %p2090_p2, %p2089_p0 }
  0x7b   : > { %p2092_p7 = pnand %p2091_p4, %p2085_p1 }
  0x7d   : > { %2095 = shalt.err (!%p2092_p7)
}
  0x7e   : > { %s2096_s10 = scalar_lea.vmem %s2549_s9, %s2541_s18  ;;  %s2302_s8 = smov [#allocation2]  }
  0x7f   : > { %p2097_p11 = scmp.ne.s32.totalorder %s2549_s9, %s2096_s10  ;;  %s2100_s14 = sshll.u32 %s2302_s8, 4  ;;  %s2101_s14 = int_to_ptr.vmem [resolvable:$false] %s2100_s14 }
  0x80   : > { %s2102_s15 = scalar_lea.vmem %s2101_s14, 256  ;;  %p2103_p10 = scmp.lt.s32.totalorder %s2549_s9, %s2101_s14 }
  0x81   : > { %p2098_p9 = pnand %p2097_p11, %p1770_p12  ;;  %p2104_p8 = scmp.lt.s32.totalorder %s2102_s15, %s2096_s10 }
  0x83   : > { %p2099_p3 = pneg %p2098_p9  ;;  %p2105_p13 = por %p2104_p8, %p2103_p10 }
  0x85   : > { %p2106_p5 = pnand %p2105_p13, %p2099_p3 }
  0x87   : > { %2109 = shalt.err (!%p2106_p5)
}
  0x88   : > { %s2303_s4 = smov 64   ;;  %s2304_s30 = smov 4  }
  0x89   : > { %255 = dma.hbm_to_vmem [thread:$0]  (%p1770_p12), %s2554_s5, %s2541_s18, %s2549_s9, %s2544_s16, %s2303_s4, %s2303_s4, %s2304_s30  }
  0x8a PF: > { %p3083_p1 = scmp.ne.s32.totalorder %s3079_s13, 0 }
  0x8c   : > { %261 = sbr.rel (%p3083_p1) target bundleno = 656 (0x290), region = 32 }
  0x93   : > { %s2584_s7 = sand.u32 1, %s2272_s22   ;;  %p3084_p6 = scmp.ne.s32.totalorder %s3068_s11, 0 }
  0x94   : > { %s1775_s20 = sshll.u32 %s2584_s7, 3  ;;  %s264_s6 = scalar_lea.sflag [#allocation3], %s2584_s7 }
  0x95   : > { %s2588_s21 = scalar_lea.vmem [#allocation2], %s1775_s20 }
  0x96   : > { %2239 = dma.done.wait (%p3084_p6), %s264_s6, 128  }
  0x97   : > { %2241 = vsyncadd (%p3084_p6), %s264_s6, 4294967168  ;;  %p3085_p12 = scmp.eq.s32.totalorder %s2400_s29, 0 }
  0x99   : > { %2243 = dma.done.wait (%p3085_p12), [#allocation6], 8320   ;;  %p3086_p0 = pmov %p3085_p12 }
  0x9a   : > { %s1778_s13 = sshll.u32 %s2584_s7, 6  ;;  %s302_s18 = sand.u32 1, %s2260_s19   ;;  %v2305_v0 = vmov 0   ;;  %v326_v1 = vld [vmem:[#allocation5] sm:$0xff]  ;;  %v327_v3 = vld [vmem:[#allocation5 + $0x8] sm:$0xff]  ;;  %v328_v63 = vld [vmem:[#allocation5 + $0x10] sm:$0xff] }
  0x9b   : > { %2245 = vsyncadd (%p3086_p0), [#allocation6], 4294958976  ;;  %s2600_s16 = sshll.u32 %s302_s18, 3  ;;  %790 = vmatprep.mubr.bf16.mxu0 %v2305_v0  ;;  %833 = vmatprep.mubr.bf16.mxu1 %v2305_v0  ;;  %v330_v2 = vld [vmem:[#allocation5 + $0x20] sm:$0xff]  ;;  %v331_v5 = vld [vmem:[#allocation5 + $0x28] sm:$0xff]  ;;  %s2657_s11 = scalar_lea.vmem [#allocation8], %s1778_s13 }
  0x9c   : > { %v1783_v4 = vcombine.high %v326_v1, %v330_v2  ;;  %v1782_v6 = vcombine.low %v326_v1, %v330_v2  ;;  %v334_v7 = vld [vmem:[#allocation5 + $0x40] sm:$0xff]  ;;  %v1785_v9 = vcombine.high %v327_v3, %v331_v5  ;;  %v1784_v10 = vcombine.low %v327_v3, %v331_v5  ;;  %v335_v12 = vld [vmem:[#allocation5 + $0x48] sm:$0xff]  ;;  %v332_v1 = vld [vmem:[#allocation5 + $0x30] sm:$0xff]  ;;  %s2660_s9 = scalar_lea.vmem [#allocation9], %s2600_s16  ;;  %s2663_s5 = scalar_lea.vmem [#allocation11], %s2600_s16 }
  0x9d   : > { %v338_v8 = vld [vmem:[#allocation5 + $0x60] sm:$0xff]  ;;  %v339_v13 = vld [vmem:[#allocation5 + $0x68] sm:$0xff]  ;;  %v329_v2 = vld [vmem:[#allocation5 + $0x18] sm:$0xff]  ;;  %p1846_p2 = scmp.ne.s32.totalorder %s2280_s24, 0 }
  0x9e   : > { %v1791_v11 = vcombine.high %v334_v7, %v338_v8  ;;  %v342_v14 = vld [vmem:[#allocation5 + $0x80] sm:$0xff]  ;;  %758 = vmatprep.subr.bf16.mxu0 %v1783_v4  ;;  %v1793_v15 = vcombine.high %v335_v12, %v339_v13  ;;  %v343_v17 = vld [vmem:[#allocation5 + $0x88] sm:$0xff]  ;;  %801 = vmatprep.subr.bf16.mxu1 %v1785_v9  ;;  %v1790_v19 = vcombine.low %v334_v7, %v338_v8  ;;  %v333_v3 = vld [vmem:[#allocation5 + $0x38] sm:$0xff] }
  0x9f   : > { %v346_v16 = vld [vmem:[#allocation5 + $0xa0] sm:$0xff]  ;;  %v347_v18 = vld [vmem:[#allocation5 + $0xa8] sm:$0xff]  ;;  %759 = vmatpush1.bf16.msra.mxu0 %v1782_v6  ;;  %802 = vmatpush1.bf16.msra.mxu1 %v1784_v10  ;;  %v1792_v20 = vcombine.low %v335_v12, %v339_v13  ;;  %v1787_v6 = vcombine.high %v328_v63, %v332_v1  ;;  %v1789_v7 = vcombine.high %v329_v2, %v333_v3  ;;  %v336_v8 = vld [vmem:[#allocation5 + $0x50] sm:$0xff] }
  0xa0   : > { %760 = vmatprep.subr.bf16.mxu0 %v1791_v11  ;;  %v1799_v21 = vcombine.high %v342_v14, %v346_v16  ;;  %803 = vmatprep.subr.bf16.mxu1 %v1793_v15  ;;  %v1801_v22 = vcombine.high %v343_v17, %v347_v18  ;;  %v350_v23 = vld [vmem:[#allocation5 + $0xc0] sm:$0xff]  ;;  %v351_v25 = vld [vmem:[#allocation5 + $0xc8] sm:$0xff]  ;;  %v1798_v27 = vcombine.low %v342_v14, %v346_v16  ;;  %v340_v9 = vld [vmem:[#allocation5 + $0x70] sm:$0xff] }
  0xa1   : > { %v354_v24 = vld [vmem:[#allocation5 + $0xe0] sm:$0xff]  ;;  %v355_v26 = vld [vmem:[#allocation5 + $0xe8] sm:$0xff]  ;;  %v1800_v28 = vcombine.low %v343_v17, %v347_v18  ;;  %v2605_v10 = vld [vmem:[%s2588_s21] sm:$0xff]   ;;  %v1786_v13 = vcombine.low %v328_v63, %v332_v1  ;;  %v1788_v14 = vcombine.low %v329_v2, %v333_v3  ;;  %v1795_v15 = vcombine.high %v336_v8, %v340_v9 }
  0xa2   : > { %v1807_v29 = vcombine.high %v350_v23, %v354_v24  ;;  %v1809_v30 = vcombine.high %v351_v25, %v355_v26  ;;  %v358_v31 = vld [vmem:[#allocation5 + $0x100] sm:$0xff]  ;;  %v359_v33 = vld [vmem:[#allocation5 + $0x108] sm:$0xff]  ;;  %v1806_v35 = vcombine.low %v350_v23, %v354_v24  ;;  %v1808_v36 = vcombine.low %v351_v25, %v355_v26  ;;  %v337_v11 = vld [vmem:[#allocation5 + $0x58] sm:$0xff] }
  0xa3   : > { %761 = vmatpush1.bf16.msra.mxu0 %v1790_v19  ;;  %804 = vmatpush1.bf16.msra.mxu1 %v1792_v20  ;;  %v362_v32 = vld [vmem:[#allocation5 + $0x120] sm:$0xff]  ;;  %v363_v34 = vld [vmem:[#allocation5 + $0x128] sm:$0xff]  ;;  %v341_v12 = vld [vmem:[#allocation5 + $0x78] sm:$0xff]  ;;  %v392_v3 = vlaneseq }
  0xa4   : > { %762 = vmatprep.subr.bf16.mxu0 %v1799_v21  ;;  %805 = vmatprep.subr.bf16.mxu1 %v1801_v22  ;;  %v1815_v37 = vcombine.high %v358_v31, %v362_v32  ;;  %v1817_v38 = vcombine.high %v359_v33, %v363_v34  ;;  %v366_v39 = vld [vmem:[#allocation5 + $0x140] sm:$0xff]  ;;  %v367_v41 = vld [vmem:[#allocation5 + $0x148] sm:$0xff]  ;;  %v1814_v43 = vcombine.low %v358_v31, %v362_v32  ;;  %v344_v17 = vld [vmem:[#allocation5 + $0x90] sm:$0xff] }
  0xa5   : > { %v370_v40 = vld [vmem:[#allocation5 + $0x160] sm:$0xff]  ;;  %v371_v42 = vld [vmem:[#allocation5 + $0x168] sm:$0xff]  ;;  %v1816_v44 = vcombine.low %v359_v33, %v363_v34  ;;  %v1797_v16 = vcombine.high %v337_v11, %v341_v12  ;;  %v348_v18 = vld [vmem:[#allocation5 + $0xb0] sm:$0xff]  ;;  %v1794_v21 = vcombine.low %v336_v8, %v340_v9  ;;  %v1796_v22 = vcombine.low %v337_v11, %v341_v12 }
  0xa6   : > { %v1823_v45 = vcombine.high %v366_v39, %v370_v40  ;;  %v1825_v46 = vcombine.high %v367_v41, %v371_v42  ;;  %v374_v47 = vld [vmem:[#allocation5 + $0x180] sm:$0xff]  ;;  %v375_v49 = vld [vmem:[#allocation5 + $0x188] sm:$0xff]  ;;  %v1822_v51 = vcombine.low %v366_v39, %v370_v40  ;;  %v1824_v52 = vcombine.low %v367_v41, %v371_v42  ;;  %v345_v19 = vld [vmem:[#allocation5 + $0x98] sm:$0xff] }
  0xa7   : > { %763 = vmatpush1.bf16.msra.mxu0 %v1798_v27  ;;  %806 = vmatpush1.bf16.msra.mxu1 %v1800_v28  ;;  %v378_v48 = vld [vmem:[#allocation5 + $0x1a0] sm:$0xff]  ;;  %v379_v50 = vld [vmem:[#allocation5 + $0x1a8] sm:$0xff]  ;;  %v349_v20 = vld [vmem:[#allocation5 + $0xb8] sm:$0xff]  ;;  %v1803_v23 = vcombine.high %v344_v17, %v348_v18 }
  0xa8   : > { %764 = vmatprep.subr.bf16.mxu0 %v1807_v29  ;;  %807 = vmatprep.subr.bf16.mxu1 %v1809_v30  ;;  %v1831_v53 = vcombine.high %v374_v47, %v378_v48  ;;  %v1833_v54 = vcombine.high %v375_v49, %v379_v50  ;;  %v382_v55 = vld [vmem:[#allocation5 + $0x1c0] sm:$0xff]  ;;  %v383_v57 = vld [vmem:[#allocation5 + $0x1c8] sm:$0xff]  ;;  %v1830_v59 = vcombine.low %v374_v47, %v378_v48  ;;  %v352_v25 = vld [vmem:[#allocation5 + $0xd0] sm:$0xff] }
  0xa9   : > { %v386_v56 = vld [vmem:[#allocation5 + $0x1e0] sm:$0xff]  ;;  %v387_v58 = vld [vmem:[#allocation5 + $0x1e8] sm:$0xff]  ;;  %v1832_v60 = vcombine.low %v375_v49, %v379_v50  ;;  %v1805_v24 = vcombine.high %v345_v19, %v349_v20  ;;  %v356_v26 = vld [vmem:[#allocation5 + $0xf0] sm:$0xff]  ;;  %v1802_v29 = vcombine.low %v344_v17, %v348_v18  ;;  %v1804_v30 = vcombine.low %v345_v19, %v349_v20 }
  0xaa   : > { %v1839_v61 = vcombine.high %v382_v55, %v386_v56  ;;  %v1841_v62 = vcombine.high %v383_v57, %v387_v58  ;;  %v1838_v4 = vcombine.low %v382_v55, %v386_v56  ;;  %v1840_v5 = vcombine.low %v383_v57, %v387_v58  ;;  %v353_v27 = vld [vmem:[#allocation5 + $0xd8] sm:$0xff]  ;;  %v360_v33 = vld [vmem:[#allocation5 + $0x110] sm:$0xff] }
  0xab   : > { %765 = vmatpush1.bf16.msra.mxu0 %v1806_v35  ;;  %808 = vmatpush1.bf16.msra.mxu1 %v1808_v36  ;;  %v357_v28 = vld [vmem:[#allocation5 + $0xf8] sm:$0xff]  ;;  %v1811_v31 = vcombine.high %v352_v25, %v356_v26  ;;  %v364_v34 = vld [vmem:[#allocation5 + $0x130] sm:$0xff] }
  0xac   : > { %766 = vmatprep.subr.bf16.mxu0 %v1815_v37  ;;  %809 = vmatprep.subr.bf16.mxu1 %v1817_v38  ;;  %v1813_v32 = vcombine.high %v353_v27, %v357_v28  ;;  %v361_v35 = vld [vmem:[#allocation5 + $0x118] sm:$0xff]  ;;  %v1810_v37 = vcombine.low %v352_v25, %v356_v26  ;;  %v1812_v38 = vcombine.low %v353_v27, %v357_v28  ;;  %v368_v40 = vld [vmem:[#allocation5 + $0x150] sm:$0xff] }
  0xad   : > { %v365_v36 = vld [vmem:[#allocation5 + $0x138] sm:$0xff]  ;;  %v1819_v39 = vcombine.high %v360_v33, %v364_v34  ;;  %v372_v41 = vld [vmem:[#allocation5 + $0x170] sm:$0xff] }
  0xae   : > { %v369_v42 = vld [vmem:[#allocation5 + $0x158] sm:$0xff]  ;;  %v376_v48 = vld [vmem:[#allocation5 + $0x190] sm:$0xff] }
  0xaf   : > { %767 = vmatpush1.bf16.msra.mxu0 %v1814_v43  ;;  %810 = vmatpush1.bf16.msra.mxu1 %v1816_v44  ;;  %v373_v43 = vld [vmem:[#allocation5 + $0x178] sm:$0xff]  ;;  %v1818_v44 = vcombine.low %v360_v33, %v364_v34  ;;  %v380_v49 = vld [vmem:[#allocation5 + $0x1b0] sm:$0xff] }
  0xb0   : > { %768 = vmatprep.subr.bf16.mxu0 %v1823_v45  ;;  %811 = vmatprep.subr.bf16.mxu1 %v1825_v46  ;;  %v1820_v45 = vcombine.low %v361_v35, %v365_v36  ;;  %v1827_v46 = vcombine.high %v368_v40, %v372_v41  ;;  %v1829_v47 = vcombine.high %v369_v42, %v373_v43  ;;  %v377_v50 = vld [vmem:[#allocation5 + $0x198] sm:$0xff]  ;;  %v384_v56 = vld [vmem:[#allocation5 + $0x1d0] sm:$0xff] }
  0xb1   : > { %v388_v57 = vld [vmem:[#allocation5 + $0x1f0] sm:$0xff]  ;;  %v385_v58 = vld [vmem:[#allocation5 + $0x1d8] sm:$0xff] }
  0xb2   : > { %v1842_v1 = vcombine.low %v384_v56, %v388_v57 }
  0xb3   : > { %769 = vmatpush1.bf16.msra.mxu0 %v1822_v51  ;;  %812 = vmatpush1.bf16.msra.mxu1 %v1824_v52  ;;  %v381_v51 = vld [vmem:[#allocation5 + $0x1b8] sm:$0xff]  ;;  %v1826_v52 = vcombine.low %v368_v40, %v372_v41 }
  0xb4   : > { %770 = vmatprep.subr.bf16.mxu0 %v1831_v53  ;;  %813 = vmatprep.subr.bf16.mxu1 %v1833_v54  ;;  %v1828_v53 = vcombine.low %v369_v42, %v373_v43  ;;  %v1835_v54 = vcombine.high %v376_v48, %v380_v49  ;;  %v1837_v55 = vcombine.high %v377_v50, %v381_v51 }
  0xb7   : > { %771 = vmatpush1.bf16.msra.mxu0 %v1830_v59  ;;  %814 = vmatpush1.bf16.msra.mxu1 %v1832_v60  ;;  %v389_v59 = vld [vmem:[#allocation5 + $0x1f8] sm:$0xff]  ;;  %v1834_v60 = vcombine.low %v376_v48, %v380_v49 }
  0xb8   : > { %772 = vmatprep.subr.bf16.mxu0 %v1839_v61  ;;  %815 = vmatprep.subr.bf16.mxu1 %v1841_v62  ;;  %v1836_v61 = vcombine.low %v377_v50, %v381_v51  ;;  %v1843_v62 = vcombine.high %v384_v56, %v388_v57  ;;  %v1845_v63 = vcombine.high %v385_v58, %v389_v59 }
  0xb9   : > { %v1844_v2 = vcombine.low %v385_v58, %v389_v59 }
  0xbb   : > { %773 = vmatpush1.bf16.msra.mxu0 %v1838_v4  ;;  %816 = vmatpush1.bf16.msra.mxu1 %v1840_v5  ;;  %v2613_v4 = vshrl.u32 %v392_v3, 7 }
  0xbc   : > { %844 = vmatprep.subr.bf16.mxu0 %v1787_v6  ;;  %887 = vmatprep.subr.bf16.mxu1 %v1789_v7  ;;  %v390_v6 = vld [vmem:[#allocation7] sm:$0xff] }
  0xbd   : > { %v394_v5 = vsub.s32 0, %v2613_v4  ;;  %v402_v7 = vsub.s32 2, %v2613_v4  ;;  %v398_v8 = vsub.s32 1, %v2613_v4  ;;  %v406_v9 = vsub.s32 3, %v2613_v4 }
  0xbe   : > { %791 = vmatmul.mubr.bf16.vlgmr.msra.gmra.mrb[0].mxu0 %v2605_v10  ;;  %834 = vmatmul.mubr.bf16.vlgmr.msra.gmra.mrb[0].mxu1 %v2605_v10  ;;  %v422_v33 = vsub.s32 7, %v2613_v4 }
  0xbf   : > { %845 = vmatpush1.bf16.msra.mxu0 %v1786_v13  ;;  %888 = vmatpush1.bf16.msra.mxu1 %v1788_v14  ;;  %v395_v11 = vrot.slane %v390_v6, %v394_v5  ;;  %v403_v12 = vrot.slane %v390_v6, %v402_v7  ;;  %v399_v13 = vrot.slane %v390_v6, %v398_v8 }
  0xc0   : > { %846 = vmatprep.subr.bf16.mxu0 %v1795_v15  ;;  %889 = vmatprep.subr.bf16.mxu1 %v1797_v16  ;;  %v407_v14 = vrot.slane %v390_v6, %v406_v9 }
  0xc1   : > { %876 = vmatprep.mubr.bf16.mxu0 %v2305_v0  ;;  %919 = vmatprep.mubr.bf16.mxu1 %v2305_v0  ;;  %v1821_v0 = vcombine.high %v361_v35, %v365_v36 }
  0xc3   : > { %847 = vmatpush1.bf16.msra.mxu0 %v1794_v21  ;;  %890 = vmatpush1.bf16.msra.mxu1 %v1796_v22 }
  0xc4   : > { %848 = vmatprep.subr.bf16.mxu0 %v1803_v23  ;;  %891 = vmatprep.subr.bf16.mxu1 %v1805_v24 }
  0xc7   : > { %849 = vmatpush1.bf16.msra.mxu0 %v1802_v29  ;;  %892 = vmatpush1.bf16.msra.mxu1 %v1804_v30  ;;  %v410_v30 = vsub.s32 4, %v2613_v4 }
  0xc8   : > { %850 = vmatprep.subr.bf16.mxu0 %v1811_v31  ;;  %893 = vmatprep.subr.bf16.mxu1 %v1813_v32  ;;  %v418_v31 = vsub.s32 6, %v2613_v4  ;;  %v414_v32 = vsub.s32 5, %v2613_v4 }
  0xc9   : > { %v411_v34 = vrot.slane %v390_v6, %v410_v30 }
  0xca   : > { %v419_v35 = vrot.slane %v390_v6, %v418_v31  ;;  %v415_v36 = vrot.slane %v390_v6, %v414_v32 }
  0xcb   : > { %851 = vmatpush1.bf16.msra.mxu0 %v1810_v37  ;;  %894 = vmatpush1.bf16.msra.mxu1 %v1812_v38  ;;  %v423_v37 = vrot.slane %v390_v6, %v422_v33 }
  0xcc   : > { %852 = vmatprep.subr.bf16.mxu0 %v1819_v39  ;;  %895 = vmatprep.subr.bf16.mxu1 %v1821_v0 }
  0xcf   : > { %853 = vmatpush1.bf16.msra.mxu0 %v1818_v44  ;;  %896 = vmatpush1.bf16.msra.mxu1 %v1820_v45 }
  0xd0   : > { %854 = vmatprep.subr.bf16.mxu0 %v1827_v46  ;;  %897 = vmatprep.subr.bf16.mxu1 %v1829_v47 }
  0xd3   : > { %855 = vmatpush1.bf16.msra.mxu0 %v1826_v52  ;;  %898 = vmatpush1.bf16.msra.mxu1 %v1828_v53  ;;  %v2306_v53 = vmov (!%p1846_p2), 0.0  }
  0xd4   : > { %856 = vmatprep.subr.bf16.mxu0 %v1835_v54  ;;  %899 = vmatprep.subr.bf16.mxu1 %v1837_v55  ;;  %934 = vst [vmem:[%s2660_s9] sm:$0xff] (!%p1846_p2), %v2306_v53  ;;  %935 = vst [vmem:[%s2663_s5] sm:$0xff] (!%p1846_p2), %v2306_v53 }
  0xd7   : > { %857 = vmatpush1.bf16.msra.mxu0 %v1834_v60  ;;  %900 = vmatpush1.bf16.msra.mxu1 %v1836_v61 }
  0xd8   : > { %858 = vmatprep.subr.bf16.mxu0 %v1843_v62  ;;  %901 = vmatprep.subr.bf16.mxu1 %v1845_v63 }
  0xdb   : > { %859 = vmatpush1.bf16.msra.mxu0 %v1842_v1  ;;  %902 = vmatpush1.bf16.msra.mxu1 %v1844_v2 }
  0xde   : > { %877 = vmatmul.mubr.bf16.vlgmr.msra.gmra.mrb[4].mxu0 %v2605_v10  ;;  %920 = vmatmul.mubr.bf16.vlgmr.msra.gmra.mrb[4].mxu1 %v2605_v10 }
 0x191   : > { %v792_v15 = vpop.f32.mrb[0].mxu0  ;;  %v835_v10 = vpop.f32.mrb[0].mxu1 }
 0x192   : > { %v2619_v16 = vadd.f32 %v792_v15, %v395_v11  ;;  %v794_v17 = vpop.f32.mrb[1].mxu0  ;;  %v2621_v18 = vadd.f32 %v835_v10, %v403_v12  ;;  %v837_v20 = vpop.f32.mrb[1].mxu1 }
 0x193   : > { %v2623_v19 = vadd.f32 %v794_v17, %v399_v13  ;;  %v796_v21 = vpop.f32.mrb[2].mxu0  ;;  %v2625_v22 = vadd.f32 %v837_v20, %v407_v14  ;;  %v839_v24 = vpop.f32.mrb[2].mxu1 }
 0x194   : > { %v2627_v23 = vadd.f32 %v796_v21, %v395_v11  ;;  %v798_v25 = vpop.f32.mrb[3].mxu0  ;;  %v2629_v26 = vadd.f32 %v839_v24, %v403_v12  ;;  %v841_v28 = vpop.f32.mrb[3].mxu1 }
 0x195   : > { %v2631_v27 = vadd.f32 %v798_v25, %v399_v13  ;;  %v2633_v29 = vadd.f32 %v841_v28, %v407_v14 }
 0x1b1   : > { %v878_v38 = vpop.f32.mrb[4].mxu0  ;;  %v921_v0 = vpop.f32.mrb[4].mxu1  ;;  %933 = sbr.rel (%p1846_p2) target bundleno = 440 (0x1b8), region = 48 }
 0x1b2   : > { %v2639_v39 = vadd.f32 %v878_v38, %v411_v34  ;;  %v880_v40 = vpop.f32.mrb[5].mxu0  ;;  %v2641_v41 = vadd.f32 %v921_v0, %v419_v35  ;;  %v923_v43 = vpop.f32.mrb[5].mxu1 }
 0x1b3   : > { %v2643_v42 = vadd.f32 %v880_v40, %v415_v36  ;;  %v882_v44 = vpop.f32.mrb[6].mxu0  ;;  %v2645_v45 = vadd.f32 %v923_v43, %v423_v37  ;;  %v925_v47 = vpop.f32.mrb[6].mxu1 }
 0x1b4   : > { %3087 = vst [vmem:[#allocation25_spill] sm:$0xff] %v2641_v41  ;;  %v2647_v46 = vadd.f32 %v882_v44, %v411_v34  ;;  %v884_v48 = vpop.f32.mrb[7].mxu0  ;;  %v2649_v49 = vadd.f32 %v925_v47, %v419_v35  ;;  %v927_v51 = vpop.f32.mrb[7].mxu1 }
 0x1b5   : > { %3088 = vst [vmem:[#allocation26_spill] sm:$0xff] %v2643_v42  ;;  %3089 = vst [vmem:[#allocation27_spill] sm:$0xff] %v2645_v45  ;;  %v2651_v50 = vadd.f32 %v884_v48, %v415_v36  ;;  %v2653_v52 = vadd.f32 %v927_v51, %v423_v37 }
 0x1b6   : > { %3090 = vst [vmem:[#allocation28_spill] sm:$0xff] %v2649_v49 }
 0x1b7   : > { %3091 = vst [vmem:[#allocation29_spill] sm:$0xff] %v2651_v50  ;;  %3092 = vst [vmem:[#allocation30_spill] sm:$0xff] %v2653_v52 }
 0x1b8 PF: > { %p1847_p4 = scmp.ne.s32.totalorder %s2280_s24, 2 }
 0x1b9   : > { %v942_v54 = vadd.s32 (!%p1847_p4), 8, %v2613_v4  ;;  %s1848_s17 = sshll.u32 (!%p1847_p4), %s2280_s24, 4  ;;  %v2307_v56 = vmov (!%p1847_p4), 1966171168  }
 0x1ba   : > { %939 = sbr.rel (%p1847_p4) target bundleno = 505 (0x1f9), region = 52  ;;  %v944_v55 = vstv (!%p1847_p4), %s1848_s17  ;;  %v2671_v57 = vunpack.c.l.s4 (!%p1847_p4), %v2307_v56 }
 0x1bb   : > { %v945_v58 = vadd.s32 (!%p1847_p4), %v944_v55, %v2613_v4  ;;  %v946_v59 = vadd.s32 (!%p1847_p4), %v944_v55, %v942_v54 }
 0x1bd   : > { %vm947_vm0 = vcmp.lt.s32.totalorder (!%p1847_p4), %v945_v58, 36  ;;  %vm948_vm1 = vcmp.lt.s32.totalorder (!%p1847_p4), %v946_v59, 36 }
 0x1be   : > { %v2676_v61 = vsel (!%p1847_p4), %vm947_vm0, %v2619_v16, 0.0  ;;  %v2679_v62 = vsel (!%p1847_p4), %vm947_vm0, %v2623_v19, 0.0  ;;  %v2682_v63 = vsel (!%p1847_p4), %vm947_vm0, %v2621_v18, 0.0  ;;  %v2685_v1 = vsel (!%p1847_p4), %vm947_vm0, %v2625_v22, 0.0 }
 0x1bf   : > { %v2688_v2 = vsel (!%p1847_p4), %vm947_vm0, %v2639_v39, 0.0  ;;  %v2691_v3 = vsel (!%p1847_p4), %vm947_vm0, %v2643_v42, 0.0  ;;  %v2694_v5 = vsel (!%p1847_p4), %vm947_vm0, %v2641_v41, 0.0  ;;  %v2697_v6 = vsel (!%p1847_p4), %vm947_vm0, %v2645_v45, 0.0 }
 0x1c0   : > { %v2701_v7 = vsel (!%p1847_p4), %vm948_vm1, %v2627_v23, 0.0  ;;  %v2705_v8 = vsel (!%p1847_p4), %vm948_vm1, %v2631_v27, 0.0  ;;  %v2709_v9 = vsel (!%p1847_p4), %vm948_vm1, %v2629_v26, 0.0  ;;  %v2713_v11 = vsel (!%p1847_p4), %vm948_vm1, %v2633_v29, 0.0 }
 0x1c1   : > { %v2717_v12 = vsel %vm948_vm1, %v2647_v46, 0.0  ;;  %v2721_v13 = vsel %vm948_vm1, %v2651_v50, 0.0  ;;  %v2725_v14 = vsel %vm948_vm1, %v2649_v49, 0.0  ;;  %v2729_v15 = vsel %vm948_vm1, %v2653_v52, 0.0 }
 0x1c2   : > { %v970_v10 = vadd.f32 %v2701_v7, %v2676_v61  ;;  %v977_v17 = vadd.f32 %v2705_v8, %v2679_v62  ;;  %v984_v20 = vadd.f32 %v2709_v9, %v2682_v63  ;;  %v991_v21 = vadd.f32 %v2713_v11, %v2685_v1 }
 0x1c3   : > { %v998_v24 = vadd.f32 %v2717_v12, %v2688_v2  ;;  %v1005_v25 = vadd.f32 %v2721_v13, %v2691_v3  ;;  %v1012_v28 = vadd.f32 %v2725_v14, %v2694_v5  ;;  %v1019_v30 = vadd.f32 %v2729_v15, %v2697_v6 }
 0x1c4   : > { %v971_v31 = vrot.slane %v970_v10, 4  ;;  %v978_v32 = vrot.slane %v977_v17, 4  ;;  %v985_v33 = vrot.slane %v984_v20, 4  ;;  %v992_v34 = vrot.slane %v991_v21, 4 }
 0x1c5   : > { %v999_v35 = vrot.slane %v998_v24, 4  ;;  %v1006_v36 = vrot.slane %v1005_v25, 4  ;;  %v1013_v37 = vrot.slane %v1012_v28, 4  ;;  %v1020_v38 = vrot.slane %v1019_v30, 4 }
 0x1c6   : > { %v972_v0 = vadd.f32 %v971_v31, %v970_v10  ;;  %v979_v40 = vadd.f32 %v978_v32, %v977_v17  ;;  %v986_v43 = vadd.f32 %v985_v33, %v984_v20  ;;  %v993_v44 = vadd.f32 %v992_v34, %v991_v21 }
 0x1c7   : > { %v1000_v47 = vadd.f32 %v999_v35, %v998_v24  ;;  %v1007_v48 = vadd.f32 %v1006_v36, %v1005_v25  ;;  %v1014_v51 = vadd.f32 %v1013_v37, %v1012_v28  ;;  %v1021_v53 = vadd.f32 %v1020_v38, %v1019_v30 }
 0x1c8   : > { %v973_v54 = vrot.slane %v972_v0, 2  ;;  %v980_v55 = vrot.slane %v979_v40, 2  ;;  %v987_v56 = vrot.slane %v986_v43, 2  ;;  %v994_v58 = vrot.slane %v993_v44, 2 }
 0x1c9   : > { %v1001_v59 = vrot.slane %v1000_v47, 2  ;;  %v1008_v60 = vrot.slane %v1007_v48, 2  ;;  %v1015_v52 = vrot.slane %v1014_v51, 2  ;;  %v1022_v45 = vrot.slane %v1021_v53, 2 }
 0x1ca   : > { %v974_v49 = vadd.f32 %v973_v54, %v972_v0  ;;  %v981_v41 = vadd.f32 %v980_v55, %v979_v40  ;;  %v988_v50 = vadd.f32 %v987_v56, %v986_v43  ;;  %v995_v42 = vadd.f32 %v994_v58, %v993_v44 }
 0x1cb   : > { %v1002_v10 = vadd.f32 %v1001_v59, %v1000_v47  ;;  %v1009_v17 = vadd.f32 %v1008_v60, %v1007_v48  ;;  %v1016_v20 = vadd.f32 %v1015_v52, %v1014_v51  ;;  %v1023_v21 = vadd.f32 %v1022_v45, %v1021_v53 }
 0x1cc   : > { %v975_v24 = vrot.slane %v974_v49, 1  ;;  %v982_v25 = vrot.slane %v981_v41, 1  ;;  %v989_v28 = vrot.slane %v988_v50, 1  ;;  %v996_v30 = vrot.slane %v995_v42, 1 }
 0x1cd   : > { %v1003_v31 = vrot.slane %v1002_v10, 1  ;;  %v1010_v32 = vrot.slane %v1009_v17, 1  ;;  %v1017_v33 = vrot.slane %v1016_v20, 1  ;;  %v1024_v34 = vrot.slane %v1023_v21, 1 }
 0x1ce   : > { %v976_v35 = vadd.f32 %v975_v24, %v974_v49  ;;  %v983_v36 = vadd.f32 %v982_v25, %v981_v41  ;;  %v990_v37 = vadd.f32 %v989_v28, %v988_v50  ;;  %v997_v38 = vadd.f32 %v996_v30, %v995_v42 }
 0x1cf   : > { %v1004_v0 = vadd.f32 %v1003_v31, %v1002_v10  ;;  %v1011_v40 = vadd.f32 %v1010_v32, %v1009_v17  ;;  %v1018_v43 = vadd.f32 %v1017_v33, %v1016_v20  ;;  %v1025_v44 = vadd.f32 %v1024_v34, %v1023_v21 }
 0x1d0   : > { %v1034_v47 = vcombine.low %v976_v35, %v983_v36  ;;  %v1035_v60 = vcombine.low %v990_v37, %v997_v38  ;;  %v3093_v45 = vunpack.c.0.s8 %v2671_v57  ;;  %v1087_v48 = vmul.f32 %v2676_v61, %v2676_v61 }
 0x1d1   : > { %v1036_v51 = vcombine.low %v1004_v0, %v1011_v40  ;;  %v1037_v53 = vcombine.low %v1018_v43, %v1025_v44  ;;  %v1088_v41 = vmul.f32 %v2679_v62, %v2679_v62  ;;  %v1089_v42 = vmul.f32 %v2682_v63, %v2682_v63 }
 0x1d2   : > { %v2750_v52 = vsub.s32 %v3093_v45, %v2613_v4  ;;  %v1090_v57 = vmul.f32 %v2685_v1, %v2685_v1  ;;  %v1091_v54 = vmul.f32 %v2688_v2, %v2688_v2  ;;  %v1092_v62 = vmul.f32 %v2691_v3, %v2691_v3 }
 0x1d3   : > { %v1093_v63 = vmul.f32 %v2694_v5, %v2694_v5  ;;  %v1094_v58 = vmul.f32 %v2697_v6, %v2697_v6  ;;  %v1095_v1 = vmul.f32 %v2701_v7, %v2701_v7  ;;  %v1096_v2 = vmul.f32 %v2705_v8, %v2705_v8 }
 0x1d4   : > { %v1044_v49 = vrot.slane %v1034_v47, %v2750_v52  ;;  %v1051_v50 = vrot.slane %v1035_v60, %v2750_v52  ;;  %v1058_v61 = vrot.slane %v1036_v51, %v2750_v52  ;;  %v1065_v55 = vrot.slane %v1037_v53, %v2750_v52 }
 0x1d5   : > { %v1097_v10 = vmul.f32 %v2709_v9, %v2709_v9  ;;  %v1098_v3 = vmul.f32 %v2713_v11, %v2713_v11  ;;  %v1099_v5 = vmul.f32 %v2717_v12, %v2717_v12  ;;  %v1100_v6 = vmul.f32 %v2721_v13, %v2721_v13  ;;  %v969_v11 = vld [vmem:[%s2660_s9] sm:$0xff] }
 0x1d6   : > { %v1066_v56 = vcombine.low %v1044_v49, %v1051_v50  ;;  %v1067_v59 = vcombine.low %v1058_v61, %v1065_v55  ;;  %v1101_v7 = vmul.f32 %v2725_v14, %v2725_v14  ;;  %v1102_v8 = vmul.f32 %v2729_v15, %v2729_v15 }
 0x1d7   : > { %v1103_v9 = vadd.f32 %v1095_v1, %v1087_v48  ;;  %v1110_v21 = vadd.f32 %v1096_v2, %v1088_v41  ;;  %v1117_v24 = vadd.f32 %v1097_v10, %v1089_v42  ;;  %v1124_v25 = vadd.f32 %v1098_v3, %v1090_v57 }
 0x1d8   : > { %v1074_v17 = vrot.slane %v1066_v56, %v2750_v52  ;;  %v1081_v20 = vrot.slane %v1067_v59, %v2750_v52  ;;  %v1131_v28 = vadd.f32 %v1099_v5, %v1091_v54  ;;  %v1138_v12 = vadd.f32 %v1100_v6, %v1092_v62 }
 0x1d9   : > { %v1145_v30 = vadd.f32 %v1101_v7, %v1093_v63  ;;  %v1104_v32 = vrot.slane %v1103_v9, 4  ;;  %v1111_v13 = vrot.slane %v1110_v21, 4  ;;  %v1118_v33 = vrot.slane %v1117_v24, 4 }
 0x1da   : > { %v1082_v31 = vcombine.low %v1074_v17, %v1081_v20  ;;  %v1125_v34 = vrot.slane %v1124_v25, 4  ;;  %v1132_v14 = vrot.slane %v1131_v28, 4  ;;  %v1139_v35 = vrot.slane %v1138_v12, 4 }
 0x1db   : > { %v1146_v36 = vrot.slane %v1145_v30, 4  ;;  %v1105_v37 = vadd.f32 %v1104_v32, %v1103_v9  ;;  %v1112_v38 = vadd.f32 %v1111_v13, %v1110_v21  ;;  %v1119_v0 = vadd.f32 %v1118_v33, %v1117_v24 }
 0x1dc   : > { %v1084_v15 = vadd.f32 %v1082_v31, %v969_v11  ;;  %v1126_v40 = vadd.f32 %v1125_v34, %v1124_v25  ;;  %v1133_v43 = vadd.f32 %v1132_v14, %v1131_v28  ;;  %v1140_v44 = vadd.f32 %v1139_v35, %v1138_v12 }
 0x1dd   : > { %v1147_v47 = vadd.f32 %v1146_v36, %v1145_v30  ;;  %v1106_v60 = vrot.slane %v1105_v37, 2  ;;  %v1113_v45 = vrot.slane %v1112_v38, 2  ;;  %v1120_v48 = vrot.slane %v1119_v0, 2 }
 0x1de   : > { %1085 = vst [vmem:[%s2660_s9] sm:$0xff] %v1084_v15  ;;  %v1152_v51 = vadd.f32 %v1102_v8, %v1094_v58  ;;  %v1127_v53 = vrot.slane %v1126_v40, 2  ;;  %v1134_v41 = vrot.slane %v1133_v43, 2  ;;  %v1141_v42 = vrot.slane %v1140_v44, 2 }
 0x1df   : > { %v1148_v49 = vrot.slane %v1147_v47, 2  ;;  %v1107_v50 = vadd.f32 %v1106_v60, %v1105_v37  ;;  %v1114_v57 = vadd.f32 %v1113_v45, %v1112_v38  ;;  %v1121_v54 = vadd.f32 %v1120_v48, %v1119_v0  ;;  %v1086_v0 = vld [vmem:[%s2663_s5] sm:$0xff] }
 0x1e0   : > { %v1153_v61 = vrot.slane %v1152_v51, 4  ;;  %v1128_v55 = vadd.f32 %v1127_v53, %v1126_v40  ;;  %v1135_v62 = vadd.f32 %v1134_v41, %v1133_v43  ;;  %v1142_v63 = vadd.f32 %v1141_v42, %v1140_v44 }
 0x1e1   : > { %v1149_v56 = vadd.f32 %v1148_v49, %v1147_v47  ;;  %v1108_v1 = vrot.slane %v1107_v50, 1  ;;  %v1115_v2 = vrot.slane %v1114_v57, 1  ;;  %v1122_v59 = vrot.slane %v1121_v54, 1 }
 0x1e2   : > { %v1154_v10 = vadd.f32 %v1153_v61, %v1152_v51  ;;  %v1129_v3 = vrot.slane %v1128_v55, 1  ;;  %v1136_v5 = vrot.slane %v1135_v62, 1  ;;  %v1143_v17 = vrot.slane %v1142_v63, 1 }
 0x1e3   : > { %v1150_v58 = vrot.slane %v1149_v56, 1  ;;  %v1109_v6 = vadd.f32 %v1108_v1, %v1107_v50  ;;  %v1116_v7 = vadd.f32 %v1115_v2, %v1114_v57  ;;  %v1123_v8 = vadd.f32 %v1122_v59, %v1121_v54 }
 0x1e4   : > { %v1155_v20 = vrot.slane %v1154_v10, 2  ;;  %v1130_v9 = vadd.f32 %v1129_v3, %v1128_v55  ;;  %v1137_v21 = vadd.f32 %v1136_v5, %v1135_v62  ;;  %v1144_v24 = vadd.f32 %v1143_v17, %v1142_v63 }
 0x1e5   : > { %v1167_v25 = vcombine.low %v1109_v6, %v1116_v7  ;;  %v1151_v12 = vadd.f32 %v1150_v58, %v1149_v56 }
 0x1e6   : > { %v1156_v11 = vadd.f32 %v1155_v20, %v1154_v10  ;;  %v1168_v28 = vcombine.low %v1123_v8, %v1130_v9  ;;  %v1169_v31 = vcombine.low %v1137_v21, %v1144_v24 }
 0x1e7   : > { %v1177_v32 = vrot.slane %v1167_v25, %v2750_v52 }
 0x1e8   : > { %v1157_v30 = vrot.slane %v1156_v11, 1  ;;  %v1184_v13 = vrot.slane %v1168_v28, %v2750_v52  ;;  %v1191_v14 = vrot.slane %v1169_v31, %v2750_v52 }
 0x1ea   : > { %v1158_v33 = vadd.f32 %v1157_v30, %v1156_v11  ;;  %v1199_v35 = vcombine.low %v1177_v32, %v1184_v13 }
 0x1ec   : > { %v1170_v34 = vcombine.low %v1151_v12, %v1158_v33  ;;  %v1207_v37 = vrot.slane %v1199_v35, %v2750_v52 }
 0x1ee   : > { %v1198_v36 = vrot.slane %v1170_v34, %v2750_v52 }
 0x1f0   : > { %v1200_v15 = vcombine.low %v1191_v14, %v1198_v36 }
 0x1f2   : > { %v1214_v38 = vrot.slane %v1200_v15, %v2750_v52 }
 0x1f4   : > { %v1215_v40 = vcombine.low %v1207_v37, %v1214_v38 }
 0x1f6   : > { %v1217_v43 = vadd.f32 %v1215_v40, %v1086_v0 }
 0x1f8   : > { %1218 = vst [vmem:[%s2663_s5] sm:$0xff] %v1217_v43 }
 0x1f9 PF: > { %p1849_p7 = scmp.eq.s32.totalorder %s2280_s24, 2 }
 0x1fa   : > { %v1224_v44 = vadd.f32 (!%p1849_p7), %v2627_v23, %v2619_v16  ;;  %v1231_v47 = vadd.f32 (!%p1849_p7), %v2631_v27, %v2623_v19  ;;  %v1238_v60 = vadd.f32 (!%p1849_p7), %v2629_v26, %v2621_v18  ;;  %v1245_v52 = vadd.f32 (!%p1849_p7), %v2633_v29, %v2625_v22  ;;  %v3094_v48 = vld [vmem:[#allocation26_spill] sm:$0xff] (!%p1849_p7)  ;;  %v3095_v51 = vld [vmem:[#allocation29_spill] sm:$0xff] (!%p1849_p7)  ;;  %v3097_v42 = vld [vmem:[#allocation28_spill] sm:$0xff] (!%p1849_p7) }
 0x1fb   : > { %1222 = sbr.rel (%p1849_p7) target bundleno = 565 (0x235), region = 56  ;;  %v1252_v45 = vadd.f32 (!%p1849_p7), %v2647_v46, %v2639_v39  ;;  %v1259_v53 = vadd.f32 (!%p1849_p7), %v3095_v51, %v3094_v48  ;;  %v3096_v41 = vld [vmem:[#allocation25_spill] sm:$0xff] (!%p1849_p7)  ;;  %v3098_v50 = vld [vmem:[#allocation27_spill] sm:$0xff] (!%p1849_p7)  ;;  %v3099_v57 = vld [vmem:[#allocation30_spill] sm:$0xff] (!%p1849_p7) }
 0x1fc   : > { %v1266_v49 = vadd.f32 (!%p1849_p7), %v3097_v42, %v3096_v41  ;;  %v1273_v54 = vadd.f32 (!%p1849_p7), %v3099_v57, %v3098_v50  ;;  %v1225_v61 = vrot.slane (!%p1849_p7), %v1224_v44, 4  ;;  %v1232_v55 = vrot.slane (!%p1849_p7), %v1231_v47, 4 }
 0x1fd   : > { %v1239_v62 = vrot.slane (!%p1849_p7), %v1238_v60, 4  ;;  %v1246_v63 = vrot.slane (!%p1849_p7), %v1245_v52, 4  ;;  %v1253_v56 = vrot.slane (!%p1849_p7), %v1252_v45, 4  ;;  %v1260_v1 = vrot.slane (!%p1849_p7), %v1259_v53, 4 }
 0x1fe   : > { %v1267_v2 = vrot.slane (!%p1849_p7), %v1266_v49, 4  ;;  %v1274_v59 = vrot.slane (!%p1849_p7), %v1273_v54, 4  ;;  %v1226_v10 = vadd.f32 (!%p1849_p7), %v1225_v61, %v1224_v44  ;;  %v1233_v3 = vadd.f32 (!%p1849_p7), %v1232_v55, %v1231_v47 }
 0x1ff   : > { %v1240_v5 = vadd.f32 (!%p1849_p7), %v1239_v62, %v1238_v60  ;;  %v1247_v17 = vadd.f32 (!%p1849_p7), %v1246_v63, %v1245_v52  ;;  %v1254_v58 = vadd.f32 (!%p1849_p7), %v1253_v56, %v1252_v45  ;;  %v1261_v6 = vadd.f32 (!%p1849_p7), %v1260_v1, %v1259_v53 }
 0x200   : > { %v1268_v7 = vadd.f32 (!%p1849_p7), %v1267_v2, %v1266_v49  ;;  %v1275_v8 = vadd.f32 (!%p1849_p7), %v1274_v59, %v1273_v54  ;;  %v1227_v20 = vrot.slane (!%p1849_p7), %v1226_v10, 2  ;;  %v1234_v9 = vrot.slane (!%p1849_p7), %v1233_v3, 2 }
 0x201   : > { %v1241_v21 = vrot.slane (!%p1849_p7), %v1240_v5, 2  ;;  %v1248_v24 = vrot.slane (!%p1849_p7), %v1247_v17, 2  ;;  %v1255_v11 = vrot.slane (!%p1849_p7), %v1254_v58, 2  ;;  %v1262_v25 = vrot.slane (!%p1849_p7), %v1261_v6, 2 }
 0x202   : > { %v1269_v28 = vrot.slane %v1268_v7, 2  ;;  %v1276_v12 = vrot.slane %v1275_v8, 2  ;;  %v1228_v30 = vadd.f32 %v1227_v20, %v1226_v10  ;;  %v1235_v31 = vadd.f32 %v1234_v9, %v1233_v3 }
 0x203   : > { %v1242_v32 = vadd.f32 %v1241_v21, %v1240_v5  ;;  %v1249_v13 = vadd.f32 %v1248_v24, %v1247_v17  ;;  %v1256_v33 = vadd.f32 %v1255_v11, %v1254_v58  ;;  %v1263_v34 = vadd.f32 %v1262_v25, %v1261_v6 }
 0x204   : > { %v1270_v14 = vadd.f32 %v1269_v28, %v1268_v7  ;;  %v1277_v35 = vadd.f32 %v1276_v12, %v1275_v8  ;;  %v1229_v36 = vrot.slane %v1228_v30, 1  ;;  %v1236_v15 = vrot.slane %v1235_v31, 1 }
 0x205   : > { %v1243_v37 = vrot.slane %v1242_v32, 1  ;;  %v1250_v38 = vrot.slane %v1249_v13, 1  ;;  %v1257_v0 = vrot.slane %v1256_v33, 1  ;;  %v1264_v40 = vrot.slane %v1263_v34, 1 }
 0x206   : > { %v1271_v43 = vrot.slane %v1270_v14, 1  ;;  %v1278_v44 = vrot.slane %v1277_v35, 1  ;;  %v1230_v47 = vadd.f32 %v1229_v36, %v1228_v30  ;;  %v1237_v60 = vadd.f32 %v1236_v15, %v1235_v31 }
 0x207   : > { %v1244_v52 = vadd.f32 %v1243_v37, %v1242_v32  ;;  %v1251_v45 = vadd.f32 %v1250_v38, %v1249_v13  ;;  %v1258_v53 = vadd.f32 %v1257_v0, %v1256_v33  ;;  %v1265_v49 = vadd.f32 %v1264_v40, %v1263_v34 }
 0x208   : > { %v1272_v54 = vadd.f32 %v1271_v43, %v1270_v14  ;;  %v1279_v61 = vadd.f32 %v1278_v44, %v1277_v35  ;;  %v1288_v55 = vcombine.low %v1230_v47, %v1237_v60  ;;  %v1341_v63 = vmul.f32 %v2619_v16, %v2619_v16 }
 0x209   : > { %v1289_v62 = vcombine.low %v1244_v52, %v1251_v45  ;;  %v1290_v56 = vcombine.low %v1258_v53, %v1265_v49  ;;  %v2308_v2 = vmov 1966171168   ;;  %v1342_v10 = vmul.f32 %v2623_v19, %v2623_v19  ;;  %v1223_v52 = vld [vmem:[%s2660_s9] sm:$0xff] }
 0x20a   : > { %v1291_v1 = vcombine.low %v1272_v54, %v1279_v61  ;;  %v1293_v59 = vunpack.c.l.s4 %v2308_v2  ;;  %v1343_v3 = vmul.f32 %v2621_v18, %v2621_v18  ;;  %v1344_v5 = vmul.f32 %v2625_v22, %v2625_v22 }
 0x20b   : > { %v1345_v17 = vmul.f32 %v2639_v39, %v2639_v39  ;;  %v1346_v58 = vmul.f32 %v3094_v48, %v3094_v48  ;;  %v1347_v7 = vmul.f32 %v3096_v41, %v3096_v41  ;;  %v1348_v8 = vmul.f32 %v3098_v50, %v3098_v50 }
 0x20c   : > { %v1294_v6 = vunpack.c.0.s8 %v1293_v59  ;;  %v1349_v20 = vmul.f32 %v2627_v23, %v2627_v23  ;;  %v1350_v9 = vmul.f32 %v2631_v27, %v2631_v27  ;;  %v1351_v21 = vmul.f32 %v2629_v26, %v2629_v26 }
 0x20d   : > { %v1352_v24 = vmul.f32 %v2633_v29, %v2633_v29  ;;  %v1353_v48 = vmul.f32 %v2647_v46, %v2647_v46  ;;  %v1354_v50 = vmul.f32 %v3095_v51, %v3095_v51  ;;  %v1355_v11 = vmul.f32 %v3097_v42, %v3097_v42 }
 0x20e   : > { %v2844_v41 = vsub.s32 %v1294_v6, %v2613_v4  ;;  %v1356_v25 = vmul.f32 %v3099_v57, %v3099_v57  ;;  %v1357_v28 = vadd.f32 %v1349_v20, %v1341_v63  ;;  %v1364_v12 = vadd.f32 %v1350_v9, %v1342_v10 }
 0x20f   : > { %v1371_v30 = vadd.f32 %v1351_v21, %v1343_v3  ;;  %v1378_v31 = vadd.f32 %v1352_v24, %v1344_v5  ;;  %v1385_v57 = vadd.f32 %v1353_v48, %v1345_v17  ;;  %v1392_v15 = vadd.f32 %v1354_v50, %v1346_v58 }
 0x210   : > { %v1298_v32 = vrot.slane %v1288_v55, %v2844_v41  ;;  %v1305_v13 = vrot.slane %v1289_v62, %v2844_v41  ;;  %v1312_v4 = vrot.slane %v1290_v56, %v2844_v41  ;;  %v1319_v33 = vrot.slane %v1291_v1, %v2844_v41 }
 0x211   : > { %v1358_v34 = vrot.slane %v1357_v28, 4  ;;  %v1365_v51 = vrot.slane %v1364_v12, 4  ;;  %v1372_v14 = vrot.slane %v1371_v30, 4  ;;  %v1379_v42 = vrot.slane %v1378_v31, 4 }
 0x212   : > { %v1320_v35 = vcombine.low %v1298_v32, %v1305_v13  ;;  %v1321_v36 = vcombine.low %v1312_v4, %v1319_v33  ;;  %v1386_v47 = vrot.slane %v1385_v57, 4  ;;  %v1393_v60 = vrot.slane %v1392_v15, 4 }
 0x213   : > { %v1359_v37 = vadd.f32 %v1358_v34, %v1357_v28  ;;  %v1366_v38 = vadd.f32 %v1365_v51, %v1364_v12  ;;  %v1373_v0 = vadd.f32 %v1372_v14, %v1371_v30  ;;  %v1380_v40 = vadd.f32 %v1379_v42, %v1378_v31 }
 0x214   : > { %v1328_v43 = vrot.slane %v1320_v35, %v2844_v41  ;;  %v1335_v44 = vrot.slane %v1321_v36, %v2844_v41  ;;  %v1387_v55 = vadd.f32 %v1386_v47, %v1385_v57  ;;  %v1394_v62 = vadd.f32 %v1393_v60, %v1392_v15 }
 0x215   : > { %v1360_v45 = vrot.slane %v1359_v37, 2  ;;  %v1367_v53 = vrot.slane %v1366_v38, 2  ;;  %v1374_v49 = vrot.slane %v1373_v0, 2  ;;  %v1381_v54 = vrot.slane %v1380_v40, 2 }
 0x216   : > { %v1336_v61 = vcombine.low %v1328_v43, %v1335_v44  ;;  %v1399_v63 = vadd.f32 %v1355_v11, %v1347_v7  ;;  %v1388_v3 = vrot.slane %v1387_v55, 2  ;;  %v1395_v5 = vrot.slane %v1394_v62, 2 }
 0x217   : > { %v1361_v56 = vadd.f32 %v1360_v45, %v1359_v37  ;;  %v1368_v1 = vadd.f32 %v1367_v53, %v1366_v38  ;;  %v1375_v2 = vadd.f32 %v1374_v49, %v1373_v0  ;;  %v1382_v59 = vadd.f32 %v1381_v54, %v1380_v40  ;;  %v1340_v53 = vld [vmem:[%s2663_s5] sm:$0xff] }
 0x218   : > { %v1338_v10 = vadd.f32 %v1336_v61, %v1223_v52  ;;  %v1400_v17 = vrot.slane %v1399_v63, 4  ;;  %v1389_v21 = vadd.f32 %v1388_v3, %v1387_v55  ;;  %v1396_v24 = vadd.f32 %v1395_v5, %v1394_v62 }
 0x219   : > { %v1362_v58 = vrot.slane %v1361_v56, 1  ;;  %v1369_v6 = vrot.slane %v1368_v1, 1  ;;  %v1376_v20 = vrot.slane %v1375_v2, 1  ;;  %v1383_v9 = vrot.slane %v1382_v59, 1 }
 0x21a   : > { %1339 = vst [vmem:[%s2660_s9] sm:$0xff] %v1338_v10  ;;  %v1401_v48 = vadd.f32 %v1400_v17, %v1399_v63  ;;  %v1406_v50 = vadd.f32 %v1356_v25, %v1348_v8  ;;  %v1390_v30 = vrot.slane %v1389_v21, 1  ;;  %v1397_v31 = vrot.slane %v1396_v24, 1 }
 0x21b   : > { %v1363_v28 = vadd.f32 %v1362_v58, %v1361_v56  ;;  %v1370_v12 = vadd.f32 %v1369_v6, %v1368_v1  ;;  %v1377_v7 = vadd.f32 %v1376_v20, %v1375_v2  ;;  %v1384_v11 = vadd.f32 %v1383_v9, %v1382_v59 }
 0x21c   : > { %v1402_v32 = vrot.slane %v1401_v48, 2  ;;  %v1407_v13 = vrot.slane %v1406_v50, 4  ;;  %v1391_v14 = vadd.f32 %v1390_v30, %v1389_v21  ;;  %v1398_v42 = vadd.f32 %v1397_v31, %v1396_v24 }
 0x21d   : > { %v1421_v34 = vcombine.low %v1363_v28, %v1370_v12  ;;  %v1422_v51 = vcombine.low %v1377_v7, %v1384_v11 }
 0x21e   : > { %v1403_v4 = vadd.f32 %v1402_v32, %v1401_v48  ;;  %v1408_v33 = vadd.f32 %v1407_v13, %v1406_v50  ;;  %v1423_v37 = vcombine.low %v1391_v14, %v1398_v42 }
 0x21f   : > { %v1431_v8 = vrot.slane %v1421_v34, %v2844_v41  ;;  %v1438_v38 = vrot.slane %v1422_v51, %v2844_v41 }
 0x220   : > { %v1404_v35 = vrot.slane %v1403_v4, 1  ;;  %v1409_v36 = vrot.slane %v1408_v33, 2  ;;  %v1445_v43 = vrot.slane %v1423_v37, %v2844_v41 }
 0x221   : > { %v1453_v44 = vcombine.low %v1431_v8, %v1438_v38 }
 0x222   : > { %v1410_v57 = vadd.f32 %v1409_v36, %v1408_v33  ;;  %v1405_v25 = vadd.f32 %v1404_v35, %v1403_v4 }
 0x223   : > { %v1461_v52 = vrot.slane %v1453_v44, %v2844_v41 }
 0x224   : > { %v1411_v15 = vrot.slane %v1410_v57, 1 }
 0x226   : > { %v1412_v0 = vadd.f32 %v1411_v15, %v1410_v57 }
 0x228   : > { %v1424_v40 = vcombine.low %v1405_v25, %v1412_v0 }
 0x22a   : > { %v1452_v47 = vrot.slane %v1424_v40, %v2844_v41 }
 0x22c   : > { %v1454_v60 = vcombine.low %v1445_v43, %v1452_v47 }
 0x22e   : > { %v1468_v45 = vrot.slane %v1454_v60, %v2844_v41 }
 0x230   : > { %v1469_v49 = vcombine.low %v1461_v52, %v1468_v45 }
 0x232   : > { %v1471_v54 = vadd.f32 %v1469_v49, %v1340_v53 }
 0x234   : > { %1472 = vst [vmem:[%s2663_s5] sm:$0xff] %v1471_v54 }
 0x235 PF: > { %v1875_v61 = vpack.c.bf16 %v2623_v19, %v2619_v16  ;;  %v1876_v41 = vpack.c.bf16 %v2625_v22, %v2621_v18  ;;  %v3100_v55 = vld [vmem:[#allocation26_spill] sm:$0xff]  ;;  %v3101_v63 = vld [vmem:[#allocation25_spill] sm:$0xff]  ;;  %v3102_v56 = vld [vmem:[#allocation27_spill] sm:$0xff]  ;;  %s1534_s10 = sand.u32 1, %s2400_s29   ;;  %v1879_v2 = vpack.c.bf16 %v2631_v27, %v2627_v23  ;;  %v1880_v59 = vpack.c.bf16 %v2633_v29, %v2629_v26  ;;  %s1530_s29 = scalar_lea.sflag [#allocation4], %s2584_s7 }
 0x236   : > { %v1877_v62 = vpack.c.bf16 %v3100_v55, %v2639_v39  ;;  %v1878_v1 = vpack.c.bf16 %v3102_v56, %v3101_v63  ;;  %v3103_v16 = vld [vmem:[#allocation29_spill] sm:$0xff]  ;;  %v3104_v10 = vld [vmem:[#allocation28_spill] sm:$0xff]  ;;  %v3105_v3 = vld [vmem:[#allocation30_spill] sm:$0xff]  ;;  %s2894_s8 = scalar_lea.sflag [#allocation10], %s1534_s10  ;;  %p3106_p11 = scmp.ne.s32.totalorder %s3069_s12, 0 }
 0x237   : > { %v1881_v19 = vpack.c.bf16 %v3103_v16, %v2647_v46  ;;  %v1882_v18 = vpack.c.bf16 %v3105_v3, %v3104_v10  ;;  %1521 = vst [vmem:[%s2657_s11] sm:$0xff] %v1875_v61  ;;  %1522 = vst [vmem:[%s2657_s11 + $0x8] sm:$0xff] %v1876_v41  ;;  %s1861_s14 = sshll.u32 (%p3106_p11), %s2280_s24, 1 }
 0x238   : > { %1523 = vst [vmem:[%s2657_s11 + $0x10] sm:$0xff] %v1877_v62  ;;  %1524 = vst [vmem:[%s2657_s11 + $0x18] sm:$0xff] %v1878_v1  ;;  %1546 = sbr.rel (!%p3106_p11) target bundleno = 605 (0x25d), region = 60  ;;  %s1548_s15 = ssub.s32 (%p3106_p11), 5, %s1861_s14 }
 0x239   : > { %1525 = vst [vmem:[%s2657_s11 + $0x20] sm:$0xff] %v1879_v2  ;;  %1526 = vst [vmem:[%s2657_s11 + $0x28] sm:$0xff] %v1880_v59  ;;  %p1549_p9 = scmp.lt.s32.totalorder (%p3106_p11), %s1548_s15, 2 }
 0x23a   : > { %1527 = vst [vmem:[%s2657_s11 + $0x30] sm:$0xff] %v1881_v19  ;;  %1528 = vst [vmem:[%s2657_s11 + $0x38] sm:$0xff] %v1882_v18 }
 0x23f   : > { %s3140_s15 = smov (!%p1549_p9, %s1548_s15), 2 }
 0x240   : > { %s2899_s4 = sshll.u32 %s3140_s15, 9 }
 0x241   : > { %s1554_s30 = ssub.s32 1024, %s2899_s4 }
 0x242   : > { %1555 = vsyncadd %s1530_s29, %s1554_s30  ;;  %p1864_p3 = scmp.ne.s32.totalorder %s2899_s4, 0  ;;  %s1884_s12 = sshll.u32 %s2280_s24, 4 }
 0x243   : > { %s1888_s20 = smul.u32 40, %s2284_s25  ;;  %s1563_s6 = sshll.u32 %s2657_s11, 4  ;;  %s2908_s6 = int_to_ptr.vmem [resolvable:$true] %s1563_s6 }
 0x244   : > { %s2110_s10 = scalar_lea.vmem %s2908_s6, %s2899_s4  ;;  %s2309_s24 = smov [#allocation8]  }
 0x245   : > { %s1559_s21 = sadd.s32 %s1888_s20, %s1884_s12  ;;  %p2111_p10 = scmp.ne.s32.totalorder %s2908_s6, %s2110_s10 }
 0x246   : > { %s1866_s13 = sshll.u32 %s1559_s21, 6  ;;  %s2114_s14 = sshll.u32 %s2309_s24, 4  ;;  %s2115_s14 = int_to_ptr.vmem [resolvable:$false] %s2114_s14 }
 0x247   : > { %s2913_s17 = scalar_lea.hbm %s3031_s3, %s1866_s13  ;;  %p2112_p8 = pnand %p2111_p10, %p1864_p3 }
 0x248   : > { %s2116_s11 = scalar_lea.vmem %s2115_s14, 2048  ;;  %p2117_p5 = scmp.lt.s32.totalorder %s2908_s6, %s2115_s14 }
 0x249   : > { %p2113_p13 = pneg %p2112_p8  ;;  %p2118_p1 = scmp.lt.s32.totalorder %s2116_s11, %s2110_s10 }
 0x24b   : > { %p2119_p6 = por %p2118_p1, %p2117_p5 }
 0x24d   : > { %p2120_p12 = pnand %p2119_p6, %p2113_p13 }
 0x24f   : > { %2123 = shalt.err (!%p2120_p12)
}
 0x250   : > { %s2124_s15 = scalar_lea.hbm %s2913_s17, %s2899_s4  ;;  %s2128_s20 = scalar_lea.hbm %s3031_s3, 5120 }
 0x251   : > { %p2125_p0 = scmp.ne.s32.totalorder %s2913_s17, %s2124_s15  ;;  %p2129_p7 = scmp.lt.u32.totalorder %s2913_s17, %s3031_s3 }
 0x252   : > { %p2130_p11 = scmp.lt.u32.totalorder %s2128_s20, %s2124_s15  ;;  %p2132_p10 = scmp.lt.u32.totalorder %s2124_s15, %s2913_s17 }
 0x253   : > { %p2126_p2 = pnand %p2125_p0, %p1864_p3 }
 0x254   : > { %p2131_p9 = por %p2130_p11, %p2129_p7 }
 0x255   : > { %p2127_p4 = pneg %p2126_p2 }
 0x256   : > { %p2133_p8 = por %p2132_p10, %p2131_p9 }
 0x258   : > { %p2134_p13 = pnand %p2133_p8, %p2127_p4 }
 0x25a   : > { %2137 = shalt.err (!%p2134_p13)
}
 0x25b   : > { %s2310_s18 = smov 512   ;;  %s2311_s16 = smov 32  }
 0x25c   : > { %1569 = dma.vmem_to_hbm [thread:$0]  (%p1864_p3), %s2908_s6, %s2899_s4, %s2913_s17, %s1530_s29, %s2310_s18, %s2310_s18, %s2311_s16  }
 0x25d PF: > { %s3107_s10 = sld [smem:[#allocation23_spill]]  ;;  %s1885_s24 = sshll.u32 %s2284_s25, 7 }
 0x25e   : > { %s1580_s14 = sshll.u32 %s2660_s9, 4  ;;  %s3108_s30 = sld [smem:[#allocation31_spill]]  ;;  %s1581_s14 = int_to_ptr.vmem [resolvable:$true] %s1580_s14 }
 0x25f   : > { %s2138_s20 = scalar_lea.vmem %s1581_s14, 128  ;;  %s2312_s7 = smov [#allocation9]  }
 0x260   : > { %p2139_p5 = scmp.ne.s32.totalorder %s1581_s14, %s2138_s20  ;;  %s2142_s29 = sshll.u32 %s2312_s7, 4  ;;  %s2143_s29 = int_to_ptr.vmem [resolvable:$false] %s2142_s29 }
 0x261   : > { %s2144_s4 = scalar_lea.vmem %s2143_s29, 256  ;;  %p2145_p3 = scmp.lt.s32.totalorder %s1581_s14, %s2143_s29 }
 0x262   : > { %p2146_p0 = scmp.lt.s32.totalorder %s2144_s4, %s2138_s20 }
 0x263   : > { %p3109_p1 = scmp.ne.s32.totalorder %s3107_s10, 0 }
 0x264   : > { %s1578_s12 = scalar_lea.hbm %s3108_s30, %s1885_s24  ;;  %p2147_p2 = por %p2146_p0, %p2145_p3 }
 0x265   : > { %p2140_p6 = pnand %p2139_p5, %p3109_p1 }
 0x267   : > { %p2141_p12 = pneg %p2140_p6 }
 0x269   : > { %p2148_p4 = pnand %p2147_p2, %p2141_p12 }
 0x26b   : > { %2151 = shalt.err (!%p2148_p4)
}
 0x26c   : > { %s2152_s9 = scalar_lea.hbm %s1578_s12, 128  ;;  %s2156_s21 = scalar_lea.hbm %s3108_s30, 256 }
 0x26d   : > { %p2153_p7 = scmp.ne.s32.totalorder %s1578_s12, %s2152_s9  ;;  %p2157_p10 = scmp.lt.u32.totalorder %s1578_s12, %s3108_s30 }
 0x26e   : > { %p2158_p8 = scmp.lt.u32.totalorder %s2156_s21, %s2152_s9  ;;  %p2160_p5 = scmp.lt.u32.totalorder %s2152_s9, %s1578_s12 }
 0x26f   : > { %p2154_p11 = pnand %p2153_p7, %p3109_p1 }
 0x270   : > { %p2159_p13 = por %p2158_p8, %p2157_p10 }
 0x271   : > { %p2155_p9 = pneg %p2154_p11 }
 0x272   : > { %p2161_p6 = por %p2160_p5, %p2159_p13 }
 0x274   : > { %p2162_p12 = pnand %p2161_p6, %p2155_p9 }
 0x276   : > { %2165 = shalt.err (!%p2162_p12)
}
 0x277   : > { %1898 = dma.vmem_to_hbm [thread:$0]  (%p3109_p1), %s1581_s14, 128, %s1578_s12, %s2894_s8  }
 0x278   : > { %s3110_s15 = sld [smem:[#allocation32_spill]]  ;;  %s1594_s7 = sshll.u32 %s2663_s5, 4  ;;  %s1595_s7 = int_to_ptr.vmem [resolvable:$true] %s1594_s7 }
 0x279   : > { %s2166_s29 = scalar_lea.vmem %s1595_s7, 128  ;;  %s2313_s4 = smov [#allocation11]  }
 0x27a   : > { %p2167_p3 = scmp.ne.s32.totalorder %s1595_s7, %s2166_s29  ;;  %s2170_s9 = sshll.u32 %s2313_s4, 4  ;;  %s2171_s9 = int_to_ptr.vmem [resolvable:$false] %s2170_s9 }
 0x27b   : > { %s2172_s6 = scalar_lea.vmem %s2171_s9, 256  ;;  %p2173_p4 = scmp.lt.s32.totalorder %s1595_s7, %s2171_s9 }
 0x27c   : > { %p2168_p0 = pnand %p2167_p3, %p3109_p1  ;;  %p2174_p7 = scmp.lt.s32.totalorder %s2172_s6, %s2166_s29 }
 0x27e   : > { %s2966_s20 = scalar_lea.hbm %s3110_s15, %s1885_s24  ;;  %p2169_p2 = pneg %p2168_p0 }
 0x27f   : > { %p2175_p11 = por %p2174_p7, %p2173_p4 }
 0x281   : > { %p2176_p9 = pnand %p2175_p11, %p2169_p2 }
 0x283   : > { %2179 = shalt.err (!%p2176_p9)
}
 0x284   : > { %s2180_s25 = scalar_lea.hbm %s2966_s20, 128  ;;  %s2184_s14 = scalar_lea.hbm %s3110_s15, 256 }
 0x285   : > { %p2181_p10 = scmp.ne.s32.totalorder %s2966_s20, %s2180_s25  ;;  %p2185_p5 = scmp.lt.u32.totalorder %s2966_s20, %s3110_s15 }
 0x286   : > { %p2186_p6 = scmp.lt.u32.totalorder %s2184_s14, %s2180_s25  ;;  %p2188_p3 = scmp.lt.u32.totalorder %s2180_s25, %s2966_s20 }
 0x287   : > { %p2182_p8 = pnand %p2181_p10, %p3109_p1 }
 0x288   : > { %p2187_p12 = por %p2186_p6, %p2185_p5 }
 0x289   : > { %p2183_p13 = pneg %p2182_p8 }
 0x28a   : > { %p2189_p0 = por %p2188_p3, %p2187_p12 }
 0x28c   : > { %p2190_p2 = pnand %p2189_p0, %p2183_p13 }
 0x28e   : > { %2193 = shalt.err (!%p2190_p2)
}
 0x28f   : > { %1899 = dma.vmem_to_hbm [thread:$0]  (%p3109_p1), %s1595_s7, 128, %s2966_s20, %s2894_s8  }
 0x290 PF: > { %s3111_s21 = sld [smem:[#allocation17_spill]]  ;;  %s3112_s13 = sld [smem:[#allocation20_spill]] }
 0x291   : > { %p1924_p4 = scmp.ge.s32.totalorder %s2296_s28, 2 }
 0x296   : > { %s1606_s18 = sand.u32 1, %s3111_s21   ;;  %p3113_p7 = scmp.ne.s32.totalorder %s3112_s13, 0 }
 0x297   : > { %s1607_s16 = scalar_lea.sflag [#allocation4], %s1606_s18 }
 0x298   : > { %p1911_p11 = pnand %p1924_p4, %p3113_p7 }
 0x29a   : > { %2247 = dma.done.wait (!%p1911_p11), %s1607_s16, 1024  }
 0x29b   : > { %2249 = vsyncadd (!%p1911_p11), %s1607_s16, 4294966272  ;;  %s3114_s11 = sadd.s32 4294967294, %s2296_s28   ;;  %s3115_s29 = sld [smem:[#allocation24_spill]] }
 0x29c   : > { %s1615_s4 = sand.u32 1, %s3114_s11  }
 0x29d   : > { %s1616_s10 = scalar_lea.sflag [#allocation10], %s1615_s4 }
 0x2a1   : > { %p3116_p9 = scmp.ne.s32.totalorder %s3115_s29, 0 }
 0x2a3   : > { %p1914_p10 = pnand %p1924_p4, %p3116_p9 }
 0x2a5   : > { %2251 = dma.done.wait (!%p1914_p10), %s1616_s10, 256  }
 0x2a6   : > { %2253 = vsyncadd (!%p1914_p10), %s1616_s10, 4294967040  ;;  %s26_s28 = sadd.s32 1, %s2296_s28   ;;  %s3117_s8 = sld [smem:[#allocation16_spill]] }
 0x2a7   : > { %p23_p1 = scmp.ge.s32.totalorder %s26_s28, 8   ;;  %s3118_s20 = sld [smem:[#allocation22_spill]] }
 0x2a8   : > { %s3119_s7 = sld [smem:[#allocation21_spill]]  ;;  %s3120_s9 = sld [smem:[#allocation18_spill]] }
 0x2a9   : > { %s3121_s6 = sld [smem:[#allocation19_spill]]  ;;  %s3122_s18 = smov %s2260_s19 }
 0x2aa   : > { %s3124_s21 = smov %s2272_s22  ;;  %s3125_s22 = smov %s2276_s23 }
 0x2ab   : > { %s3127_s24 = smov %s2288_s26  ;;  %s3128_s25 = smov %s2292_s27 }
 0x2ac   : > { %s3123_s19 = smov %s3117_s8  ;;  %25 = sbr.rel (!%p23_p1) target bundleno = 15 (0xf), region = 129 }
 0x2ae   : > { %s3126_s23 = smov %s3119_s7  ;;  %s3129_s26 = smov %s3120_s9 }
 0x2af   : > { %s3130_s27 = smov %s3121_s6 }
 0x2b3   :  { %1630 = vsyncpa [#allocation3], 1 }
 0x2b4   :  { %1632 = vsyncpa [#allocation3 + $0x1], 1 }
 0x2b5   :  { %1633 = vsyncpa [#allocation6], 1 }
 0x2b6   :  { %1634 = vsyncpa [#allocation4], 1 }
 0x2b7   :  { %1636 = vsyncpa [#allocation4 + $0x1], 1 }
 0x2b8   :  { %1637 = vsyncpa [#allocation10], 1 }
 0x2b9   :  { %1639 = vsyncpa [#allocation10 + $0x1], 1 }

// kernel: tpu_custom_call.1
= control target key start
LH: loop header
LB: loop body
LE: loop exit
PB: predicated region body
PF: predicated region fallthrough
CT: control target
= control target key end

     0   :  { %s3028_s0 = inlined_call_operand.hbm [shape: bf16[2,36,128], index: 0, kind: input, shape index: {}]   ;;  %s3029_s1 = inlined_call_operand.hbm [shape: bf16[128,1024], index: 1, kind: input, shape index: {}]   ;;  %s3030_s2 = inlined_call_operand.hbm [shape: f32[1,1024], index: 2, kind: input, shape index: {}]   ;;  %s3031_s3 = inlined_call_operand.hbm [shape: bf16[2,36,1024], index: 3, kind: output, shape index: {0}]   ;;  %s3032_s4 = inlined_call_operand.hbm [shape: f32[2,1,1024], index: 4, kind: output, shape index: {1}]   ;;  %s3033_s5 = inlined_call_operand.hbm [shape: f32[2,1,1024], index: 5, kind: output, shape index: {2}]  }
   0x1   :  { %3061 = sst [smem:[#allocation31_spill]] %s3032_s4 }
   0x2   :  { %3062 = sst [smem:[#allocation32_spill]] %s3033_s5 }
   0x3   :  { %11 = vsyncpa [#allocation3], 0 }
   0x4   :  { %13 = vsyncpa [#allocation3 + $0x1], 0 }
   0x5   :  { %14 = vsyncpa [#allocation6], 0 }
   0x6   :  { %15 = vsyncpa [#allocation4], 0 }
   0x7   :  { %17 = vsyncpa [#allocation4 + $0x1], 0 }
   0x8   :  { %18 = vsyncpa [#allocation10], 0 }
   0x9   :  { %20 = vsyncpa [#allocation10 + $0x1], 0  ;;  %s2344_s18 = smov 0   ;;  %s2346_s19 = smov 0  }
   0xa   :  { %s2348_s20 = smov 0   ;;  %s2350_s21 = smov 0  }
   0xb   :  { %s2352_s22 = smov 0   ;;  %s2354_s23 = smov 0  }
   0xc   :  { %s2356_s24 = smov 0   ;;  %s2358_s25 = smov 0  }
   0xd   :  { %s2360_s26 = smov 0   ;;  %s2362_s27 = smov 0  }
   0xe   :  { %s2364_s28 = smov 0  }
   0xf LB: > { %3063 = sst [smem:[#allocation16_spill]] %s2264_s20  ;;  %s2400_s29 = sadd.s32 4294967295, %s2296_s28   ;;  %s2296_s28 = sphi %s2364_s28, %s26_s28   ;;  %s2292_s27 = sphi %s2362_s27, %s3130_s27   ;;  %s2288_s26 = sphi %s2360_s26, %s3129_s26   ;;  %s2284_s25 = sphi %s2358_s25, %s3128_s25   ;;  %s2280_s24 = sphi %s2356_s24, %s3127_s24   ;;  %s2276_s23 = sphi %s2354_s23, %s3126_s23   ;;  %s2272_s22 = sphi %s2352_s22, %s3125_s22   ;;  %s2268_s21 = sphi %s2350_s21, %s3124_s21   ;;  %s2264_s20 = sphi %s2348_s20, %s3118_s20   ;;  %s2260_s19 = sphi %s2346_s19, %s3123_s19   ;;  %s2256_s18 = sphi %s2344_s18, %s3122_s18  }
  0x10   : > { %3064 = sst [smem:[#allocation17_spill]] %s2268_s21  ;;  %s3036_s30 = sadd.s32 4294967294, %s2296_s28  }
  0x11   : > { %s35_s6 = sadd.s32 1, %s2288_s26  ;;  %s38_s7 = sadd.s32 1, %s2292_s27 }
  0x12   : > { %p36_p0 = scmp.ge.s32.totalorder %s35_s6, 3  ;;  %s47_s8 = sadd.s32 1, %s2276_s23 }
  0x13   : > { %p54_p1 = scmp.ne.s32.totalorder %s2276_s23, %s2272_s22  ;;  %p55_p2 = scmp.eq.s32.totalorder %s2296_s28, 0 }
  0x14   : > { %s3132_s6 = smov (%p36_p0, %s35_s6), 0  ;;  %s3134_s7 = smov (!%p36_p0, %s38_s7), %s2292_s27 }
  0x15   : > { %3065 = sst [smem:[#allocation18_spill]] %s3132_s6  ;;  %s43_s9 = ssub.s32 %s2288_s26, %s3132_s6 }
  0x16   : > { %p2414_p3 = por %p55_p2, %p54_p1  ;;  %p40_p4 = scmp.ge.s32.totalorder %s3134_s7, 2 }
  0x17   : > { %p60_p5 = scmp.ne.s32.totalorder %s2272_s22, %s2268_s21  ;;  %p3037_p6 = scmp.eq.s32.totalorder %s2400_s29, 0 }
  0x18   : > { %s3066_s10 = scalar_select %p2414_p3, 1, 0 }
  0x19   : > { %p128_p7 = scmp.eq.s32.totalorder %s2400_s29, 5  ;;  %s3136_s7 = smov (%p40_p4, %s3134_s7), 0 }
  0x1a   : > { %3067 = sst [smem:[#allocation19_spill]] %s3136_s7  ;;  %p2426_p8 = por %p3037_p6, %p60_p5 }
  0x1b   : > { %p2432_p9 = por %p128_p7, %p54_p1  ;;  %s42_s13 = ssub.s32 %s2292_s27, %s3136_s7 }
  0x1c   : > { %s3068_s11 = scalar_select %p2426_p8, 1, 0 }
  0x1d   : > { %s3069_s12 = scalar_select %p2432_p9, 1, 0 }
  0x1e   : > { %p2440_p10 = scmp.eq.s32.totalorder %s3036_s30, 5  ;;  %s44_s15 = sor.u32 %s43_s9, %s42_s13 }
  0x1f   : > { %p141_p11 = scmp.eq.s32.totalorder %s42_s13, 0  ;;  %p45_p12 = scmp.eq.s32.totalorder %s44_s15, 0 }
  0x20   : > { %p2446_p13 = por %p2440_p10, %p60_p5  ;;  %s143_s17 = sadd.s32 1, %s2264_s20 }
  0x21   : > { %p153_p0 = scmp.ne.s32.totalorder %s2264_s20, %s2260_s19  ;;  %p159_p2 = scmp.ne.s32.totalorder %s2260_s19, %s2256_s18 }
  0x22   : > { %s3071_s16 = scalar_select %p2446_p13, 1, 0 }
  0x23   : > { %s2454_s6 = scalar_select %p45_p12, %s2276_s23, %s47_s8  }
  0x24   : > { %3072 = sst [smem:[#allocation20_spill]] %s3071_s16  ;;  %p2461_p1 = por %p153_p0, %p128_p7 }
  0x25   : > { %3073 = sst [smem:[#allocation21_spill]] %s2454_s6  ;;  %p1763_p4 = scmp.ge.s32.totalorder %s2296_s28, 1 }
  0x26   : > { %s2457_s7 = scalar_select %p141_p11, %s2264_s20, %s143_s17  }
  0x27   : > { %s3075_s30 = scalar_select %p2461_p1, 1, 0 }
  0x28   : > { %3074 = sst [smem:[#allocation22_spill]] %s2457_s7  ;;  %p193_p6 = scmp.lt.s32.totalorder %s2296_s28, 7 }
  0x29   : > { %3076 = sst [smem:[#allocation23_spill]] %s3075_s30  ;;  %p2471_p9 = por %p159_p2, %p2440_p10 }
  0x2a   : > { %p2475_p5 = pnand %p1763_p4, %p193_p6  ;;  %s2298_s8 = smov [#allocation5]  }
  0x2b   : > { %s3077_s9 = scalar_select %p2471_p9, 1, 0 }
  0x2c   : > { %s3079_s13 = scalar_select %p2475_p5, 1, 0 }
  0x2d   : > { %3078 = sst [smem:[#allocation24_spill]] %s3077_s9  ;;  %s205_s15 = sshll.u32 %s2298_s8, 4  ;;  %s206_s15 = int_to_ptr.vmem [resolvable:$true] %s205_s15 }
  0x2e   : > { %p1903_p7 = pneg %p2475_p5  ;;  %p3080_p11 = scmp.eq.s32.totalorder %s2400_s29, 0 }
  0x2f   : > { %s2299_s14 = smov [#allocation7]   ;;  %s2026_s20 = scalar_lea.hbm %s3029_s1, 8192 }
  0x30   : > { %p2483_p12 = pnand %p1903_p7, %p3080_p11  ;;  %s219_s17 = sshll.u32 %s2299_s14, 4  ;;  %s2487_s17 = int_to_ptr.vmem [resolvable:$true] %s219_s17 }
  0x31   : > { %p2027_p6 = scmp.ne.s32.totalorder %s3029_s1, %s2026_s20  ;;  %p2033_p4 = scmp.lt.u32.totalorder %s2026_s20, %s3029_s1 }
  0x32   : > { %p2028_p10 = pneg %p2483_p12 }
  0x34   : > { %p2029_p0 = pnand %p2028_p10, %p2027_p6 }
  0x36   : > { %p2030_p2 = pneg %p2029_p0 }
  0x38   : > { %p2035_p7 = pnand %p2033_p4, %p2030_p2 }
  0x3a   : > { %2038 = shalt.err (!%p2035_p7)
}
  0x3b   : > { %s2039_s14 = scalar_lea.vmem %s206_s15, 8192  ;;  %p2047_p1 = scmp.lt.s32.totalorder %s206_s15, %s206_s15 }
  0x3c   : > { %p2040_p11 = scmp.ne.s32.totalorder %s206_s15, %s2039_s14  ;;  %p2048_p8 = scmp.lt.s32.totalorder %s2039_s14, %s2039_s14 }
  0x3e   : > { %p2042_p9 = pnand %p2040_p11, %p2028_p10  ;;  %p2049_p5 = por %p2048_p8, %p2047_p1 }
  0x40   : > { %p2043_p13 = pneg %p2042_p9 }
  0x42   : > { %p2050_p3 = pnand %p2049_p5, %p2043_p13 }
  0x44   : > { %2053 = shalt.err (!%p2050_p3)
}
  0x45   : > { %s2300_s6 = smov 512   ;;  %s2301_s7 = smov 32  }
  0x46   : > { %1906 = dma.hbm_to_vmem [thread:$0]  (!%p2483_p12), %s3029_s1, 8192, %s206_s15, [#allocation6], %s2300_s6, %s2300_s6, %s2301_s7  }
  0x47   : > { %s2054_s8 = scalar_lea.hbm %s3030_s2, 128 }
  0x48   : > { %p2055_p9 = scmp.ne.s32.totalorder %s3030_s2, %s2054_s8  ;;  %p2061_p13 = scmp.lt.u32.totalorder %s2054_s8, %s3030_s2 }
  0x4a   : > { %p2057_p3 = pnand %p2055_p9, %p2028_p10 }
  0x4c   : > { %p2058_p8 = pneg %p2057_p3 }
  0x4e   : > { %p2063_p1 = pnand %p2061_p13, %p2058_p8 }
  0x50   : > { %2066 = shalt.err (!%p2063_p1)
}
  0x51   : > { %s2067_s15 = scalar_lea.vmem %s2487_s17, 128  ;;  %p2075_p2 = scmp.lt.s32.totalorder %s2487_s17, %s2487_s17 }
  0x52   : > { %p2068_p5 = scmp.ne.s32.totalorder %s2487_s17, %s2067_s15  ;;  %p2076_p4 = scmp.lt.s32.totalorder %s2067_s15, %s2067_s15 }
  0x54   : > { %p2070_p6 = pnand %p2068_p5, %p2028_p10  ;;  %p2077_p7 = por %p2076_p4, %p2075_p2 }
  0x56   : > { %p2071_p0 = pneg %p2070_p6 }
  0x58   : > { %p2078_p11 = pnand %p2077_p7, %p2071_p0 }
  0x5a   : > { %2081 = shalt.err (!%p2078_p11)
}
  0x5b   : > { %1909 = dma.hbm_to_vmem [thread:$0]  (!%p2483_p12), %s3030_s2, 128, %s2487_s17, [#allocation6]  }
  0x5c   : > { %p1766_p9 = scmp.ge.s32.totalorder %s2296_s28, 6 }
  0x5d   : > { %p3082_p3 = scmp.ne.s32.totalorder (!%p1766_p9), %s3066_s10, 0 }
  0x5e   : > { %226 = sbr.rel (%p1766_p9) target bundleno = 138 (0x8a), region = 24 }
  0x65   : > { %229 = sbr.rel (!%p3082_p3) target bundleno = 138 (0x8a), region = 28  ;;  %s230_s30 = sand.u32 (%p3082_p3), 1, %s2276_s23  }
  0x66   : > { %s1768_s6 = sshll.u32 (%p3082_p3), %s2288_s26, 1  ;;  %s1767_s7 = sshll.u32 (%p3082_p3), %s230_s30, 3 }
  0x67   : > { %s236_s20 = ssub.s32 (%p3082_p3), 5, %s1768_s6  ;;  %s2544_s16 = scalar_lea.sflag (%p3082_p3), [#allocation3], %s230_s30 }
  0x68   : > { %p237_p10 = scmp.lt.s32.totalorder (%p3082_p3), %s236_s20, 2  ;;  %s234_s17 = scalar_lea.vmem (%p3082_p3), [#allocation2], %s1767_s7 }
  0x6c   : > { %s3138_s20 = smov (!%p237_p10, %s236_s20), 2 }
  0x6d   : > { %s2541_s18 = sshll.u32 %s3138_s20, 6 }
  0x6e   : > { %s241_s21 = ssub.s32 128, %s2541_s18 }
  0x6f   : > { %242 = vsyncadd %s2544_s16, %s241_s21  ;;  %p1770_p12 = scmp.ne.s32.totalorder %s2541_s18, 0  ;;  %s1887_s10 = smul.u32 5, %s2292_s27 }
  0x70   : > { %s249_s9 = sshll.u32 %s234_s17, 4  ;;  %s2549_s9 = int_to_ptr.vmem [resolvable:$true] %s249_s9 }
  0x71   : > { %s245_s8 = sadd.s32 %s1887_s10, %s1768_s6  ;;  %s2086_s6 = scalar_lea.hbm %s3028_s0, 640 }
  0x72   : > { %s1771_s14 = sshll.u32 %s245_s8, 6 }
  0x73   : > { %s2554_s5 = scalar_lea.hbm %s3028_s0, %s1771_s14 }
  0x74   : > { %s2082_s30 = scalar_lea.hbm %s2554_s5, %s2541_s18  ;;  %p2087_p5 = scmp.lt.u32.totalorder %s2554_s5, %s3028_s0 }
  0x75   : > { %p2083_p8 = scmp.ne.s32.totalorder %s2554_s5, %s2082_s30  ;;  %p2088_p6 = scmp.lt.u32.totalorder %s2086_s6, %s2082_s30 }
  0x76   : > { %p2090_p2 = scmp.lt.u32.totalorder %s2082_s30, %s2554_s5 }
  0x77   : > { %p2084_p13 = pnand %p2083_p8, %p1770_p12  ;;  %p2089_p0 = por %p2088_p6, %p2087_p5 }
  0x79   : > { %p2085_p1 = pneg %p2084_p13  ;;  %p2091_p4 = por %p2090_p2, %p2089_p0 }
  0x7b   : > { %p2092_p7 = pnand %p2091_p4, %p2085_p1 }
  0x7d   : > { %2095 = shalt.err (!%p2092_p7)
}
  0x7e   : > { %s2096_s10 = scalar_lea.vmem %s2549_s9, %s2541_s18  ;;  %s2302_s8 = smov [#allocation2]  }
  0x7f   : > { %p2097_p11 = scmp.ne.s32.totalorder %s2549_s9, %s2096_s10  ;;  %s2100_s14 = sshll.u32 %s2302_s8, 4  ;;  %s2101_s14 = int_to_ptr.vmem [resolvable:$false] %s2100_s14 }
  0x80   : > { %s2102_s15 = scalar_lea.vmem %s2101_s14, 256  ;;  %p2103_p10 = scmp.lt.s32.totalorder %s2549_s9, %s2101_s14 }
  0x81   : > { %p2098_p9 = pnand %p2097_p11, %p1770_p12  ;;  %p2104_p8 = scmp.lt.s32.totalorder %s2102_s15, %s2096_s10 }
  0x83   : > { %p2099_p3 = pneg %p2098_p9  ;;  %p2105_p13 = por %p2104_p8, %p2103_p10 }
  0x85   : > { %p2106_p5 = pnand %p2105_p13, %p2099_p3 }
  0x87   : > { %2109 = shalt.err (!%p2106_p5)
}
  0x88   : > { %s2303_s4 = smov 64   ;;  %s2304_s30 = smov 4  }
  0x89   : > { %255 = dma.hbm_to_vmem [thread:$0]  (%p1770_p12), %s2554_s5, %s2541_s18, %s2549_s9, %s2544_s16, %s2303_s4, %s2303_s4, %s2304_s30  }
  0x8a PF: > { %p3083_p1 = scmp.ne.s32.totalorder %s3079_s13, 0 }
  0x8c   : > { %261 = sbr.rel (%p3083_p1) target bundleno = 656 (0x290), region = 32 }
  0x93   : > { %s2584_s7 = sand.u32 1, %s2272_s22   ;;  %p3084_p6 = scmp.ne.s32.totalorder %s3068_s11, 0 }
  0x94   : > { %s1775_s20 = sshll.u32 %s2584_s7, 3  ;;  %s264_s6 = scalar_lea.sflag [#allocation3], %s2584_s7 }
  0x95   : > { %s2588_s21 = scalar_lea.vmem [#allocation2], %s1775_s20 }
  0x96   : > { %2239 = dma.done.wait (%p3084_p6), %s264_s6, 128  }
  0x97   : > { %2241 = vsyncadd (%p3084_p6), %s264_s6, 4294967168  ;;  %p3085_p12 = scmp.eq.s32.totalorder %s2400_s29, 0 }
  0x99   : > { %2243 = dma.done.wait (%p3085_p12), [#allocation6], 8320   ;;  %p3086_p0 = pmov %p3085_p12 }
  0x9a   : > { %s1778_s13 = sshll.u32 %s2584_s7, 6  ;;  %s302_s18 = sand.u32 1, %s2260_s19   ;;  %v2305_v0 = vmov 0   ;;  %v326_v1 = vld [vmem:[#allocation5] sm:$0xff]  ;;  %v327_v3 = vld [vmem:[#allocation5 + $0x8] sm:$0xff]  ;;  %v328_v63 = vld [vmem:[#allocation5 + $0x10] sm:$0xff] }
  0x9b   : > { %2245 = vsyncadd (%p3086_p0), [#allocation6], 4294958976  ;;  %s2600_s16 = sshll.u32 %s302_s18, 3  ;;  %790 = vmatprep.mubr.bf16.mxu0 %v2305_v0  ;;  %833 = vmatprep.mubr.bf16.mxu1 %v2305_v0  ;;  %v330_v2 = vld [vmem:[#allocation5 + $0x20] sm:$0xff]  ;;  %v331_v5 = vld [vmem:[#allocation5 + $0x28] sm:$0xff]  ;;  %s2657_s11 = scalar_lea.vmem [#allocation8], %s1778_s13 }
  0x9c   : > { %v1783_v4 = vcombine.high %v326_v1, %v330_v2  ;;  %v1782_v6 = vcombine.low %v326_v1, %v330_v2  ;;  %v334_v7 = vld [vmem:[#allocation5 + $0x40] sm:$0xff]  ;;  %v1785_v9 = vcombine.high %v327_v3, %v331_v5  ;;  %v1784_v10 = vcombine.low %v327_v3, %v331_v5  ;;  %v335_v12 = vld [vmem:[#allocation5 + $0x48] sm:$0xff]  ;;  %v332_v1 = vld [vmem:[#allocation5 + $0x30] sm:$0xff]  ;;  %s2660_s9 = scalar_lea.vmem [#allocation9], %s2600_s16  ;;  %s2663_s5 = scalar_lea.vmem [#allocation11], %s2600_s16 }
  0x9d   : > { %v338_v8 = vld [vmem:[#allocation5 + $0x60] sm:$0xff]  ;;  %v339_v13 = vld [vmem:[#allocation5 + $0x68] sm:$0xff]  ;;  %v329_v2 = vld [vmem:[#allocation5 + $0x18] sm:$0xff]  ;;  %p1846_p2 = scmp.ne.s32.totalorder %s2280_s24, 0 }
  0x9e   : > { %v1791_v11 = vcombine.high %v334_v7, %v338_v8  ;;  %v342_v14 = vld [vmem:[#allocation5 + $0x80] sm:$0xff]  ;;  %758 = vmatprep.subr.bf16.mxu0 %v1783_v4  ;;  %v1793_v15 = vcombine.high %v335_v12, %v339_v13  ;;  %v343_v17 = vld [vmem:[#allocation5 + $0x88] sm:$0xff]  ;;  %801 = vmatprep.subr.bf16.mxu1 %v1785_v9  ;;  %v1790_v19 = vcombine.low %v334_v7, %v338_v8  ;;  %v333_v3 = vld [vmem:[#allocation5 + $0x38] sm:$0xff] }
  0x9f   : > { %v346_v16 = vld [vmem:[#allocation5 + $0xa0] sm:$0xff]  ;;  %v347_v18 = vld [vmem:[#allocation5 + $0xa8] sm:$0xff]  ;;  %759 = vmatpush1.bf16.msra.mxu0 %v1782_v6  ;;  %802 = vmatpush1.bf16.msra.mxu1 %v1784_v10  ;;  %v1792_v20 = vcombine.low %v335_v12, %v339_v13  ;;  %v1787_v6 = vcombine.high %v328_v63, %v332_v1  ;;  %v1789_v7 = vcombine.high %v329_v2, %v333_v3  ;;  %v336_v8 = vld [vmem:[#allocation5 + $0x50] sm:$0xff] }
  0xa0   : > { %760 = vmatprep.subr.bf16.mxu0 %v1791_v11  ;;  %v1799_v21 = vcombine.high %v342_v14, %v346_v16  ;;  %803 = vmatprep.subr.bf16.mxu1 %v1793_v15  ;;  %v1801_v22 = vcombine.high %v343_v17, %v347_v18  ;;  %v350_v23 = vld [vmem:[#allocation5 + $0xc0] sm:$0xff]  ;;  %v351_v25 = vld [vmem:[#allocation5 + $0xc8] sm:$0xff]  ;;  %v1798_v27 = vcombine.low %v342_v14, %v346_v16  ;;  %v340_v9 = vld [vmem:[#allocation5 + $0x70] sm:$0xff] }
  0xa1   : > { %v354_v24 = vld [vmem:[#allocation5 + $0xe0] sm:$0xff]  ;;  %v355_v26 = vld [vmem:[#allocation5 + $0xe8] sm:$0xff]  ;;  %v1800_v28 = vcombine.low %v343_v17, %v347_v18  ;;  %v2605_v10 = vld [vmem:[%s2588_s21] sm:$0xff]   ;;  %v1786_v13 = vcombine.low %v328_v63, %v332_v1  ;;  %v1788_v14 = vcombine.low %v329_v2, %v333_v3  ;;  %v1795_v15 = vcombine.high %v336_v8, %v340_v9 }
  0xa2   : > { %v1807_v29 = vcombine.high %v350_v23, %v354_v24  ;;  %v1809_v30 = vcombine.high %v351_v25, %v355_v26  ;;  %v358_v31 = vld [vmem:[#allocation5 + $0x100] sm:$0xff]  ;;  %v359_v33 = vld [vmem:[#allocation5 + $0x108] sm:$0xff]  ;;  %v1806_v35 = vcombine.low %v350_v23, %v354_v24  ;;  %v1808_v36 = vcombine.low %v351_v25, %v355_v26  ;;  %v337_v11 = vld [vmem:[#allocation5 + $0x58] sm:$0xff] }
  0xa3   : > { %761 = vmatpush1.bf16.msra.mxu0 %v1790_v19  ;;  %804 = vmatpush1.bf16.msra.mxu1 %v1792_v20  ;;  %v362_v32 = vld [vmem:[#allocation5 + $0x120] sm:$0xff]  ;;  %v363_v34 = vld [vmem:[#allocation5 + $0x128] sm:$0xff]  ;;  %v341_v12 = vld [vmem:[#allocation5 + $0x78] sm:$0xff]  ;;  %v392_v3 = vlaneseq }
  0xa4   : > { %762 = vmatprep.subr.bf16.mxu0 %v1799_v21  ;;  %805 = vmatprep.subr.bf16.mxu1 %v1801_v22  ;;  %v1815_v37 = vcombine.high %v358_v31, %v362_v32  ;;  %v1817_v38 = vcombine.high %v359_v33, %v363_v34  ;;  %v366_v39 = vld [vmem:[#allocation5 + $0x140] sm:$0xff]  ;;  %v367_v41 = vld [vmem:[#allocation5 + $0x148] sm:$0xff]  ;;  %v1814_v43 = vcombine.low %v358_v31, %v362_v32  ;;  %v344_v17 = vld [vmem:[#allocation5 + $0x90] sm:$0xff] }
  0xa5   : > { %v370_v40 = vld [vmem:[#allocation5 + $0x160] sm:$0xff]  ;;  %v371_v42 = vld [vmem:[#allocation5 + $0x168] sm:$0xff]  ;;  %v1816_v44 = vcombine.low %v359_v33, %v363_v34  ;;  %v1797_v16 = vcombine.high %v337_v11, %v341_v12  ;;  %v348_v18 = vld [vmem:[#allocation5 + $0xb0] sm:$0xff]  ;;  %v1794_v21 = vcombine.low %v336_v8, %v340_v9  ;;  %v1796_v22 = vcombine.low %v337_v11, %v341_v12 }
  0xa6   : > { %v1823_v45 = vcombine.high %v366_v39, %v370_v40  ;;  %v1825_v46 = vcombine.high %v367_v41, %v371_v42  ;;  %v374_v47 = vld [vmem:[#allocation5 + $0x180] sm:$0xff]  ;;  %v375_v49 = vld [vmem:[#allocation5 + $0x188] sm:$0xff]  ;;  %v1822_v51 = vcombine.low %v366_v39, %v370_v40  ;;  %v1824_v52 = vcombine.low %v367_v41, %v371_v42  ;;  %v345_v19 = vld [vmem:[#allocation5 + $0x98] sm:$0xff] }
  0xa7   : > { %763 = vmatpush1.bf16.msra.mxu0 %v1798_v27  ;;  %806 = vmatpush1.bf16.msra.mxu1 %v1800_v28  ;;  %v378_v48 = vld [vmem:[#allocation5 + $0x1a0] sm:$0xff]  ;;  %v379_v50 = vld [vmem:[#allocation5 + $0x1a8] sm:$0xff]  ;;  %v349_v20 = vld [vmem:[#allocation5 + $0xb8] sm:$0xff]  ;;  %v1803_v23 = vcombine.high %v344_v17, %v348_v18 }
  0xa8   : > { %764 = vmatprep.subr.bf16.mxu0 %v1807_v29  ;;  %807 = vmatprep.subr.bf16.mxu1 %v1809_v30  ;;  %v1831_v53 = vcombine.high %v374_v47, %v378_v48  ;;  %v1833_v54 = vcombine.high %v375_v49, %v379_v50  ;;  %v382_v55 = vld [vmem:[#allocation5 + $0x1c0] sm:$0xff]  ;;  %v383_v57 = vld [vmem:[#allocation5 + $0x1c8] sm:$0xff]  ;;  %v1830_v59 = vcombine.low %v374_v47, %v378_v48  ;;  %v352_v25 = vld [vmem:[#allocation5 + $0xd0] sm:$0xff] }
  0xa9   : > { %v386_v56 = vld [vmem:[#allocation5 + $0x1e0] sm:$0xff]  ;;  %v387_v58 = vld [vmem:[#allocation5 + $0x1e8] sm:$0xff]  ;;  %v1832_v60 = vcombine.low %v375_v49, %v379_v50  ;;  %v1805_v24 = vcombine.high %v345_v19, %v349_v20  ;;  %v356_v26 = vld [vmem:[#allocation5 + $0xf0] sm:$0xff]  ;;  %v1802_v29 = vcombine.low %v344_v17, %v348_v18  ;;  %v1804_v30 = vcombine.low %v345_v19, %v349_v20 }
  0xaa   : > { %v1839_v61 = vcombine.high %v382_v55, %v386_v56  ;;  %v1841_v62 = vcombine.high %v383_v57, %v387_v58  ;;  %v1838_v4 = vcombine.low %v382_v55, %v386_v56  ;;  %v1840_v5 = vcombine.low %v383_v57, %v387_v58  ;;  %v353_v27 = vld [vmem:[#allocation5 + $0xd8] sm:$0xff]  ;;  %v360_v33 = vld [vmem:[#allocation5 + $0x110] sm:$0xff] }
  0xab   : > { %765 = vmatpush1.bf16.msra.mxu0 %v1806_v35  ;;  %808 = vmatpush1.bf16.msra.mxu1 %v1808_v36  ;;  %v357_v28 = vld [vmem:[#allocation5 + $0xf8] sm:$0xff]  ;;  %v1811_v31 = vcombine.high %v352_v25, %v356_v26  ;;  %v364_v34 = vld [vmem:[#allocation5 + $0x130] sm:$0xff] }
  0xac   : > { %766 = vmatprep.subr.bf16.mxu0 %v1815_v37  ;;  %809 = vmatprep.subr.bf16.mxu1 %v1817_v38  ;;  %v1813_v32 = vcombine.high %v353_v27, %v357_v28  ;;  %v361_v35 = vld [vmem:[#allocation5 + $0x118] sm:$0xff]  ;;  %v1810_v37 = vcombine.low %v352_v25, %v356_v26  ;;  %v1812_v38 = vcombine.low %v353_v27, %v357_v28  ;;  %v368_v40 = vld [vmem:[#allocation5 + $0x150] sm:$0xff] }
  0xad   : > { %v365_v36 = vld [vmem:[#allocation5 + $0x138] sm:$0xff]  ;;  %v1819_v39 = vcombine.high %v360_v33, %v364_v34  ;;  %v372_v41 = vld [vmem:[#allocation5 + $0x170] sm:$0xff] }
  0xae   : > { %v369_v42 = vld [vmem:[#allocation5 + $0x158] sm:$0xff]  ;;  %v376_v48 = vld [vmem:[#allocation5 + $0x190] sm:$0xff] }
  0xaf   : > { %767 = vmatpush1.bf16.msra.mxu0 %v1814_v43  ;;  %810 = vmatpush1.bf16.msra.mxu1 %v1816_v44  ;;  %v373_v43 = vld [vmem:[#allocation5 + $0x178] sm:$0xff]  ;;  %v1818_v44 = vcombine.low %v360_v33, %v364_v34  ;;  %v380_v49 = vld [vmem:[#allocation5 + $0x1b0] sm:$0xff] }
  0xb0   : > { %768 = vmatprep.subr.bf16.mxu0 %v1823_v45  ;;  %811 = vmatprep.subr.bf16.mxu1 %v1825_v46  ;;  %v1820_v45 = vcombine.low %v361_v35, %v365_v36  ;;  %v1827_v46 = vcombine.high %v368_v40, %v372_v41  ;;  %v1829_v47 = vcombine.high %v369_v42, %v373_v43  ;;  %v377_v50 = vld [vmem:[#allocation5 + $0x198] sm:$0xff]  ;;  %v384_v56 = vld [vmem:[#allocation5 + $0x1d0] sm:$0xff] }
  0xb1   : > { %v388_v57 = vld [vmem:[#allocation5 + $0x1f0] sm:$0xff]  ;;  %v385_v58 = vld [vmem:[#allocation5 + $0x1d8] sm:$0xff] }
  0xb2   : > { %v1842_v1 = vcombine.low %v384_v56, %v388_v57 }
  0xb3   : > { %769 = vmatpush1.bf16.msra.mxu0 %v1822_v51  ;;  %812 = vmatpush1.bf16.msra.mxu1 %v1824_v52  ;;  %v381_v51 = vld [vmem:[#allocation5 + $0x1b8] sm:$0xff]  ;;  %v1826_v52 = vcombine.low %v368_v40, %v372_v41 }
  0xb4   : > { %770 = vmatprep.subr.bf16.mxu0 %v1831_v53  ;;  %813 = vmatprep.subr.bf16.mxu1 %v1833_v54  ;;  %v1828_v53 = vcombine.low %v369_v42, %v373_v43  ;;  %v1835_v54 = vcombine.high %v376_v48, %v380_v49  ;;  %v1837_v55 = vcombine.high %v377_v50, %v381_v51 }
  0xb7   : > { %771 = vmatpush1.bf16.msra.mxu0 %v1830_v59  ;;  %814 = vmatpush1.bf16.msra.mxu1 %v1832_v60  ;;  %v389_v59 = vld [vmem:[#allocation5 + $0x1f8] sm:$0xff]  ;;  %v1834_v60 = vcombine.low %v376_v48, %v380_v49 }
  0xb8   : > { %772 = vmatprep.subr.bf16.mxu0 %v1839_v61  ;;  %815 = vmatprep.subr.bf16.mxu1 %v1841_v62  ;;  %v1836_v61 = vcombine.low %v377_v50, %v381_v51  ;;  %v1843_v62 = vcombine.high %v384_v56, %v388_v57  ;;  %v1845_v63 = vcombine.high %v385_v58, %v389_v59 }
  0xb9   : > { %v1844_v2 = vcombine.low %v385_v58, %v389_v59 }
  0xbb   : > { %773 = vmatpush1.bf16.msra.mxu0 %v1838_v4  ;;  %816 = vmatpush1.bf16.msra.mxu1 %v1840_v5  ;;  %v2613_v4 = vshrl.u32 %v392_v3, 7 }
  0xbc   : > { %844 = vmatprep.subr.bf16.mxu0 %v1787_v6  ;;  %887 = vmatprep.subr.bf16.mxu1 %v1789_v7  ;;  %v390_v6 = vld [vmem:[#allocation7] sm:$0xff] }
  0xbd   : > { %v394_v5 = vsub.s32 0, %v2613_v4  ;;  %v402_v7 = vsub.s32 2, %v2613_v4  ;;  %v398_v8 = vsub.s32 1, %v2613_v4  ;;  %v406_v9 = vsub.s32 3, %v2613_v4 }
  0xbe   : > { %791 = vmatmul.mubr.bf16.vlgmr.msra.gmra.mrb[0].mxu0 %v2605_v10  ;;  %834 = vmatmul.mubr.bf16.vlgmr.msra.gmra.mrb[0].mxu1 %v2605_v10  ;;  %v422_v33 = vsub.s32 7, %v2613_v4 }
  0xbf   : > { %845 = vmatpush1.bf16.msra.mxu0 %v1786_v13  ;;  %888 = vmatpush1.bf16.msra.mxu1 %v1788_v14  ;;  %v395_v11 = vrot.slane %v390_v6, %v394_v5  ;;  %v403_v12 = vrot.slane %v390_v6, %v402_v7  ;;  %v399_v13 = vrot.slane %v390_v6, %v398_v8 }
  0xc0   : > { %846 = vmatprep.subr.bf16.mxu0 %v1795_v15  ;;  %889 = vmatprep.subr.bf16.mxu1 %v1797_v16  ;;  %v407_v14 = vrot.slane %v390_v6, %v406_v9 }
  0xc1   : > { %876 = vmatprep.mubr.bf16.mxu0 %v2305_v0  ;;  %919 = vmatprep.mubr.bf16.mxu1 %v2305_v0  ;;  %v1821_v0 = vcombine.high %v361_v35, %v365_v36 }
  0xc3   : > { %847 = vmatpush1.bf16.msra.mxu0 %v1794_v21  ;;  %890 = vmatpush1.bf16.msra.mxu1 %v1796_v22 }
  0xc4   : > { %848 = vmatprep.subr.bf16.mxu0 %v1803_v23  ;;  %891 = vmatprep.subr.bf16.mxu1 %v1805_v24 }
  0xc7   : > { %849 = vmatpush1.bf16.msra.mxu0 %v1802_v29  ;;  %892 = vmatpush1.bf16.msra.mxu1 %v1804_v30  ;;  %v410_v30 = vsub.s32 4, %v2613_v4 }
  0xc8   : > { %850 = vmatprep.subr.bf16.mxu0 %v1811_v31  ;;  %893 = vmatprep.subr.bf16.mxu1 %v1813_v32  ;;  %v418_v31 = vsub.s32 6, %v2613_v4  ;;  %v414_v32 = vsub.s32 5, %v2613_v4 }
  0xc9   : > { %v411_v34 = vrot.slane %v390_v6, %v410_v30 }
  0xca   : > { %v419_v35 = vrot.slane %v390_v6, %v418_v31  ;;  %v415_v36 = vrot.slane %v390_v6, %v414_v32 }
  0xcb   : > { %851 = vmatpush1.bf16.msra.mxu0 %v1810_v37  ;;  %894 = vmatpush1.bf16.msra.mxu1 %v1812_v38  ;;  %v423_v37 = vrot.slane %v390_v6, %v422_v33 }
  0xcc   : > { %852 = vmatprep.subr.bf16.mxu0 %v1819_v39  ;;  %895 = vmatprep.subr.bf16.mxu1 %v1821_v0 }
  0xcf   : > { %853 = vmatpush1.bf16.msra.mxu0 %v1818_v44  ;;  %896 = vmatpush1.bf16.msra.mxu1 %v1820_v45 }
  0xd0   : > { %854 = vmatprep.subr.bf16.mxu0 %v1827_v46  ;;  %897 = vmatprep.subr.bf16.mxu1 %v1829_v47 }
  0xd3   : > { %855 = vmatpush1.bf16.msra.mxu0 %v1826_v52  ;;  %898 = vmatpush1.bf16.msra.mxu1 %v1828_v53  ;;  %v2306_v53 = vmov (!%p1846_p2), 0.0  }
  0xd4   : > { %856 = vmatprep.subr.bf16.mxu0 %v1835_v54  ;;  %899 = vmatprep.subr.bf16.mxu1 %v1837_v55  ;;  %934 = vst [vmem:[%s2660_s9] sm:$0xff] (!%p1846_p2), %v2306_v53  ;;  %935 = vst [vmem:[%s2663_s5] sm:$0xff] (!%p1846_p2), %v2306_v53 }
  0xd7   : > { %857 = vmatpush1.bf16.msra.mxu0 %v1834_v60  ;;  %900 = vmatpush1.bf16.msra.mxu1 %v1836_v61 }
  0xd8   : > { %858 = vmatprep.subr.bf16.mxu0 %v1843_v62  ;;  %901 = vmatprep.subr.bf16.mxu1 %v1845_v63 }
  0xdb   : > { %859 = vmatpush1.bf16.msra.mxu0 %v1842_v1  ;;  %902 = vmatpush1.bf16.msra.mxu1 %v1844_v2 }
  0xde   : > { %877 = vmatmul.mubr.bf16.vlgmr.msra.gmra.mrb[4].mxu0 %v2605_v10  ;;  %920 = vmatmul.mubr.bf16.vlgmr.msra.gmra.mrb[4].mxu1 %v2605_v10 }
 0x191   : > { %v792_v15 = vpop.f32.mrb[0].mxu0  ;;  %v835_v10 = vpop.f32.mrb[0].mxu1 }
 0x192   : > { %v2619_v16 = vadd.f32 %v792_v15, %v395_v11  ;;  %v794_v17 = vpop.f32.mrb[1].mxu0  ;;  %v2621_v18 = vadd.f32 %v835_v10, %v403_v12  ;;  %v837_v20 = vpop.f32.mrb[1].mxu1 }
 0x193   : > { %v2623_v19 = vadd.f32 %v794_v17, %v399_v13  ;;  %v796_v21 = vpop.f32.mrb[2].mxu0  ;;  %v2625_v22 = vadd.f32 %v837_v20, %v407_v14  ;;  %v839_v24 = vpop.f32.mrb[2].mxu1 }
 0x194   : > { %v2627_v23 = vadd.f32 %v796_v21, %v395_v11  ;;  %v798_v25 = vpop.f32.mrb[3].mxu0  ;;  %v2629_v26 = vadd.f32 %v839_v24, %v403_v12  ;;  %v841_v28 = vpop.f32.mrb[3].mxu1 }
 0x195   : > { %v2631_v27 = vadd.f32 %v798_v25, %v399_v13  ;;  %v2633_v29 = vadd.f32 %v841_v28, %v407_v14 }
 0x1b1   : > { %v878_v38 = vpop.f32.mrb[4].mxu0  ;;  %v921_v0 = vpop.f32.mrb[4].mxu1  ;;  %933 = sbr.rel (%p1846_p2) target bundleno = 440 (0x1b8), region = 48 }
 0x1b2   : > { %v2639_v39 = vadd.f32 %v878_v38, %v411_v34  ;;  %v880_v40 = vpop.f32.mrb[5].mxu0  ;;  %v2641_v41 = vadd.f32 %v921_v0, %v419_v35  ;;  %v923_v43 = vpop.f32.mrb[5].mxu1 }
 0x1b3   : > { %v2643_v42 = vadd.f32 %v880_v40, %v415_v36  ;;  %v882_v44 = vpop.f32.mrb[6].mxu0  ;;  %v2645_v45 = vadd.f32 %v923_v43, %v423_v37  ;;  %v925_v47 = vpop.f32.mrb[6].mxu1 }
 0x1b4   : > { %3087 = vst [vmem:[#allocation25_spill] sm:$0xff] %v2641_v41  ;;  %v2647_v46 = vadd.f32 %v882_v44, %v411_v34  ;;  %v884_v48 = vpop.f32.mrb[7].mxu0  ;;  %v2649_v49 = vadd.f32 %v925_v47, %v419_v35  ;;  %v927_v51 = vpop.f32.mrb[7].mxu1 }
 0x1b5   : > { %3088 = vst [vmem:[#allocation26_spill] sm:$0xff] %v2643_v42  ;;  %3089 = vst [vmem:[#allocation27_spill] sm:$0xff] %v2645_v45  ;;  %v2651_v50 = vadd.f32 %v884_v48, %v415_v36  ;;  %v2653_v52 = vadd.f32 %v927_v51, %v423_v37 }
 0x1b6   : > { %3090 = vst [vmem:[#allocation28_spill] sm:$0xff] %v2649_v49 }
 0x1b7   : > { %3091 = vst [vmem:[#allocation29_spill] sm:$0xff] %v2651_v50  ;;  %3092 = vst [vmem:[#allocation30_spill] sm:$0xff] %v2653_v52 }
 0x1b8 PF: > { %p1847_p4 = scmp.ne.s32.totalorder %s2280_s24, 2 }
 0x1b9   : > { %v942_v54 = vadd.s32 (!%p1847_p4), 8, %v2613_v4  ;;  %s1848_s17 = sshll.u32 (!%p1847_p4), %s2280_s24, 4  ;;  %v2307_v56 = vmov (!%p1847_p4), 1966171168  }
 0x1ba   : > { %939 = sbr.rel (%p1847_p4) target bundleno = 505 (0x1f9), region = 52  ;;  %v944_v55 = vstv (!%p1847_p4), %s1848_s17  ;;  %v2671_v57 = vunpack.c.l.s4 (!%p1847_p4), %v2307_v56 }
 0x1bb   : > { %v945_v58 = vadd.s32 (!%p1847_p4), %v944_v55, %v2613_v4  ;;  %v946_v59 = vadd.s32 (!%p1847_p4), %v944_v55, %v942_v54 }
 0x1bd   : > { %vm947_vm0 = vcmp.lt.s32.totalorder (!%p1847_p4), %v945_v58, 36  ;;  %vm948_vm1 = vcmp.lt.s32.totalorder (!%p1847_p4), %v946_v59, 36 }
 0x1be   : > { %v2676_v61 = vsel (!%p1847_p4), %vm947_vm0, %v2619_v16, 0.0  ;;  %v2679_v62 = vsel (!%p1847_p4), %vm947_vm0, %v2623_v19, 0.0  ;;  %v2682_v63 = vsel (!%p1847_p4), %vm947_vm0, %v2621_v18, 0.0  ;;  %v2685_v1 = vsel (!%p1847_p4), %vm947_vm0, %v2625_v22, 0.0 }
 0x1bf   : > { %v2688_v2 = vsel (!%p1847_p4), %vm947_vm0, %v2639_v39, 0.0  ;;  %v2691_v3 = vsel (!%p1847_p4), %vm947_vm0, %v2643_v42, 0.0  ;;  %v2694_v5 = vsel (!%p1847_p4), %vm947_vm0, %v2641_v41, 0.0  ;;  %v2697_v6 = vsel (!%p1847_p4), %vm947_vm0, %v2645_v45, 0.0 }
 0x1c0   : > { %v2701_v7 = vsel (!%p1847_p4), %vm948_vm1, %v2627_v23, 0.0  ;;  %v2705_v8 = vsel (!%p1847_p4), %vm948_vm1, %v2631_v27, 0.0  ;;  %v2709_v9 = vsel (!%p1847_p4), %vm948_vm1, %v2629_v26, 0.0  ;;  %v2713_v11 = vsel (!%p1847_p4), %vm948_vm1, %v2633_v29, 0.0 }
 0x1c1   : > { %v2717_v12 = vsel %vm948_vm1, %v2647_v46, 0.0  ;;  %v2721_v13 = vsel %vm948_vm1, %v2651_v50, 0.0  ;;  %v2725_v14 = vsel %vm948_vm1, %v2649_v49, 0.0  ;;  %v2729_v15 = vsel %vm948_vm1, %v2653_v52, 0.0 }
 0x1c2   : > { %v970_v10 = vadd.f32 %v2701_v7, %v2676_v61  ;;  %v977_v17 = vadd.f32 %v2705_v8, %v2679_v62  ;;  %v984_v20 = vadd.f32 %v2709_v9, %v2682_v63  ;;  %v991_v21 = vadd.f32 %v2713_v11, %v2685_v1 }
 0x1c3   : > { %v998_v24 = vadd.f32 %v2717_v12, %v2688_v2  ;;  %v1005_v25 = vadd.f32 %v2721_v13, %v2691_v3  ;;  %v1012_v28 = vadd.f32 %v2725_v14, %v2694_v5  ;;  %v1019_v30 = vadd.f32 %v2729_v15, %v2697_v6 }
 0x1c4   : > { %v971_v31 = vrot.slane %v970_v10, 4  ;;  %v978_v32 = vrot.slane %v977_v17, 4  ;;  %v985_v33 = vrot.slane %v984_v20, 4  ;;  %v992_v34 = vrot.slane %v991_v21, 4 }
 0x1c5   : > { %v999_v35 = vrot.slane %v998_v24, 4  ;;  %v1006_v36 = vrot.slane %v1005_v25, 4  ;;  %v1013_v37 = vrot.slane %v1012_v28, 4  ;;  %v1020_v38 = vrot.slane %v1019_v30, 4 }
 0x1c6   : > { %v972_v0 = vadd.f32 %v971_v31, %v970_v10  ;;  %v979_v40 = vadd.f32 %v978_v32, %v977_v17  ;;  %v986_v43 = vadd.f32 %v985_v33, %v984_v20  ;;  %v993_v44 = vadd.f32 %v992_v34, %v991_v21 }
 0x1c7   : > { %v1000_v47 = vadd.f32 %v999_v35, %v998_v24  ;;  %v1007_v48 = vadd.f32 %v1006_v36, %v1005_v25  ;;  %v1014_v51 = vadd.f32 %v1013_v37, %v1012_v28  ;;  %v1021_v53 = vadd.f32 %v1020_v38, %v1019_v30 }
 0x1c8   : > { %v973_v54 = vrot.slane %v972_v0, 2  ;;  %v980_v55 = vrot.slane %v979_v40, 2  ;;  %v987_v56 = vrot.slane %v986_v43, 2  ;;  %v994_v58 = vrot.slane %v993_v44, 2 }
 0x1c9   : > { %v1001_v59 = vrot.slane %v1000_v47, 2  ;;  %v1008_v60 = vrot.slane %v1007_v48, 2  ;;  %v1015_v52 = vrot.slane %v1014_v51, 2  ;;  %v1022_v45 = vrot.slane %v1021_v53, 2 }
 0x1ca   : > { %v974_v49 = vadd.f32 %v973_v54, %v972_v0  ;;  %v981_v41 = vadd.f32 %v980_v55, %v979_v40  ;;  %v988_v50 = vadd.f32 %v987_v56, %v986_v43  ;;  %v995_v42 = vadd.f32 %v994_v58, %v993_v44 }
 0x1cb   : > { %v1002_v10 = vadd.f32 %v1001_v59, %v1000_v47  ;;  %v1009_v17 = vadd.f32 %v1008_v60, %v1007_v48  ;;  %v1016_v20 = vadd.f32 %v1015_v52, %v1014_v51  ;;  %v1023_v21 = vadd.f32 %v1022_v45, %v1021_v53 }
 0x1cc   : > { %v975_v24 = vrot.slane %v974_v49, 1  ;;  %v982_v25 = vrot.slane %v981_v41, 1  ;;  %v989_v28 = vrot.slane %v988_v50, 1  ;;  %v996_v30 = vrot.slane %v995_v42, 1 }
 0x1cd   : > { %v1003_v31 = vrot.slane %v1002_v10, 1  ;;  %v1010_v32 = vrot.slane %v1009_v17, 1  ;;  %v1017_v33 = vrot.slane %v1016_v20, 1  ;;  %v1024_v34 = vrot.slane %v1023_v21, 1 }
 0x1ce   : > { %v976_v35 = vadd.f32 %v975_v24, %v974_v49  ;;  %v983_v36 = vadd.f32 %v982_v25, %v981_v41  ;;  %v990_v37 = vadd.f32 %v989_v28, %v988_v50  ;;  %v997_v38 = vadd.f32 %v996_v30, %v995_v42 }
 0x1cf   : > { %v1004_v0 = vadd.f32 %v1003_v31, %v1002_v10  ;;  %v1011_v40 = vadd.f32 %v1010_v32, %v1009_v17  ;;  %v1018_v43 = vadd.f32 %v1017_v33, %v1016_v20  ;;  %v1025_v44 = vadd.f32 %v1024_v34, %v1023_v21 }
 0x1d0   : > { %v1034_v47 = vcombine.low %v976_v35, %v983_v36  ;;  %v1035_v60 = vcombine.low %v990_v37, %v997_v38  ;;  %v3093_v45 = vunpack.c.0.s8 %v2671_v57  ;;  %v1087_v48 = vmul.f32 %v2676_v61, %v2676_v61 }
 0x1d1   : > { %v1036_v51 = vcombine.low %v1004_v0, %v1011_v40  ;;  %v1037_v53 = vcombine.low %v1018_v43, %v1025_v44  ;;  %v1088_v41 = vmul.f32 %v2679_v62, %v2679_v62  ;;  %v1089_v42 = vmul.f32 %v2682_v63, %v2682_v63 }
 0x1d2   : > { %v2750_v52 = vsub.s32 %v3093_v45, %v2613_v4  ;;  %v1090_v57 = vmul.f32 %v2685_v1, %v2685_v1  ;;  %v1091_v54 = vmul.f32 %v2688_v2, %v2688_v2  ;;  %v1092_v62 = vmul.f32 %v2691_v3, %v2691_v3 }
 0x1d3   : > { %v1093_v63 = vmul.f32 %v2694_v5, %v2694_v5  ;;  %v1094_v58 = vmul.f32 %v2697_v6, %v2697_v6  ;;  %v1095_v1 = vmul.f32 %v2701_v7, %v2701_v7  ;;  %v1096_v2 = vmul.f32 %v2705_v8, %v2705_v8 }
 0x1d4   : > { %v1044_v49 = vrot.slane %v1034_v47, %v2750_v52  ;;  %v1051_v50 = vrot.slane %v1035_v60, %v2750_v52  ;;  %v1058_v61 = vrot.slane %v1036_v51, %v2750_v52  ;;  %v1065_v55 = vrot.slane %v1037_v53, %v2750_v52 }
 0x1d5   : > { %v1097_v10 = vmul.f32 %v2709_v9, %v2709_v9  ;;  %v1098_v3 = vmul.f32 %v2713_v11, %v2713_v11  ;;  %v1099_v5 = vmul.f32 %v2717_v12, %v2717_v12  ;;  %v1100_v6 = vmul.f32 %v2721_v13, %v2721_v13  ;;  %v969_v11 = vld [vmem:[%s2660_s9] sm:$0xff] }
 0x1d6   : > { %v1066_v56 = vcombine.low %v1044_v49, %v1051_v50  ;;  %v1067_v59 = vcombine.low %v1058_v61, %v1065_v55  ;;  %v1101_v7 = vmul.f32 %v2725_v14, %v2725_v14  ;;  %v1102_v8 = vmul.f32 %v2729_v15, %v2729_v15 }
 0x1d7   : > { %v1103_v9 = vadd.f32 %v1095_v1, %v1087_v48  ;;  %v1110_v21 = vadd.f32 %v1096_v2, %v1088_v41  ;;  %v1117_v24 = vadd.f32 %v1097_v10, %v1089_v42  ;;  %v1124_v25 = vadd.f32 %v1098_v3, %v1090_v57 }
 0x1d8   : > { %v1074_v17 = vrot.slane %v1066_v56, %v2750_v52  ;;  %v1081_v20 = vrot.slane %v1067_v59, %v2750_v52  ;;  %v1131_v28 = vadd.f32 %v1099_v5, %v1091_v54  ;;  %v1138_v12 = vadd.f32 %v1100_v6, %v1092_v62 }
 0x1d9   : > { %v1145_v30 = vadd.f32 %v1101_v7, %v1093_v63  ;;  %v1104_v32 = vrot.slane %v1103_v9, 4  ;;  %v1111_v13 = vrot.slane %v1110_v21, 4  ;;  %v1118_v33 = vrot.slane %v1117_v24, 4 }
 0x1da   : > { %v1082_v31 = vcombine.low %v1074_v17, %v1081_v20  ;;  %v1125_v34 = vrot.slane %v1124_v25, 4  ;;  %v1132_v14 = vrot.slane %v1131_v28, 4  ;;  %v1139_v35 = vrot.slane %v1138_v12, 4 }
 0x1db   : > { %v1146_v36 = vrot.slane %v1145_v30, 4  ;;  %v1105_v37 = vadd.f32 %v1104_v32, %v1103_v9  ;;  %v1112_v38 = vadd.f32 %v1111_v13, %v1110_v21  ;;  %v1119_v0 = vadd.f32 %v1118_v33, %v1117_v24 }
 0x1dc   : > { %v1084_v15 = vadd.f32 %v1082_v31, %v969_v11  ;;  %v1126_v40 = vadd.f32 %v1125_v34, %v1124_v25  ;;  %v1133_v43 = vadd.f32 %v1132_v14, %v1131_v28  ;;  %v1140_v44 = vadd.f32 %v1139_v35, %v1138_v12 }
 0x1dd   : > { %v1147_v47 = vadd.f32 %v1146_v36, %v1145_v30  ;;  %v1106_v60 = vrot.slane %v1105_v37, 2  ;;  %v1113_v45 = vrot.slane %v1112_v38, 2  ;;  %v1120_v48 = vrot.slane %v1119_v0, 2 }
 0x1de   : > { %1085 = vst [vmem:[%s2660_s9] sm:$0xff] %v1084_v15  ;;  %v1152_v51 = vadd.f32 %v1102_v8, %v1094_v58  ;;  %v1127_v53 = vrot.slane %v1126_v40, 2  ;;  %v1134_v41 = vrot.slane %v1133_v43, 2  ;;  %v1141_v42 = vrot.slane %v1140_v44, 2 }
 0x1df   : > { %v1148_v49 = vrot.slane %v1147_v47, 2  ;;  %v1107_v50 = vadd.f32 %v1106_v60, %v1105_v37  ;;  %v1114_v57 = vadd.f32 %v1113_v45, %v1112_v38  ;;  %v1121_v54 = vadd.f32 %v1120_v48, %v1119_v0  ;;  %v1086_v0 = vld [vmem:[%s2663_s5] sm:$0xff] }
 0x1e0   : > { %v1153_v61 = vrot.slane %v1152_v51, 4  ;;  %v1128_v55 = vadd.f32 %v1127_v53, %v1126_v40  ;;  %v1135_v62 = vadd.f32 %v1134_v41, %v1133_v43  ;;  %v1142_v63 = vadd.f32 %v1141_v42, %v1140_v44 }
 0x1e1   : > { %v1149_v56 = vadd.f32 %v1148_v49, %v1147_v47  ;;  %v1108_v1 = vrot.slane %v1107_v50, 1  ;;  %v1115_v2 = vrot.slane %v1114_v57, 1  ;;  %v1122_v59 = vrot.slane %v1121_v54, 1 }
 0x1e2   : > { %v1154_v10 = vadd.f32 %v1153_v61, %v1152_v51  ;;  %v1129_v3 = vrot.slane %v1128_v55, 1  ;;  %v1136_v5 = vrot.slane %v1135_v62, 1  ;;  %v1143_v17 = vrot.slane %v1142_v63, 1 }
 0x1e3   : > { %v1150_v58 = vrot.slane %v1149_v56, 1  ;;  %v1109_v6 = vadd.f32 %v1108_v1, %v1107_v50  ;;  %v1116_v7 = vadd.f32 %v1115_v2, %v1114_v57  ;;  %v1123_v8 = vadd.f32 %v1122_v59, %v1121_v54 }
 0x1e4   : > { %v1155_v20 = vrot.slane %v1154_v10, 2  ;;  %v1130_v9 = vadd.f32 %v1129_v3, %v1128_v55  ;;  %v1137_v21 = vadd.f32 %v1136_v5, %v1135_v62  ;;  %v1144_v24 = vadd.f32 %v1143_v17, %v1142_v63 }
 0x1e5   : > { %v1167_v25 = vcombine.low %v1109_v6, %v1116_v7  ;;  %v1151_v12 = vadd.f32 %v1150_v58, %v1149_v56 }
 0x1e6   : > { %v1156_v11 = vadd.f32 %v1155_v20, %v1154_v10  ;;  %v1168_v28 = vcombine.low %v1123_v8, %v1130_v9  ;;  %v1169_v31 = vcombine.low %v1137_v21, %v1144_v24 }
 0x1e7   : > { %v1177_v32 = vrot.slane %v1167_v25, %v2750_v52 }
 0x1e8   : > { %v1157_v30 = vrot.slane %v1156_v11, 1  ;;  %v1184_v13 = vrot.slane %v1168_v28, %v2750_v52  ;;  %v1191_v14 = vrot.slane %v1169_v31, %v2750_v52 }
 0x1ea   : > { %v1158_v33 = vadd.f32 %v1157_v30, %v1156_v11  ;;  %v1199_v35 = vcombine.low %v1177_v32, %v1184_v13 }
 0x1ec   : > { %v1170_v34 = vcombine.low %v1151_v12, %v1158_v33  ;;  %v1207_v37 = vrot.slane %v1199_v35, %v2750_v52 }
 0x1ee   : > { %v1198_v36 = vrot.slane %v1170_v34, %v2750_v52 }
 0x1f0   : > { %v1200_v15 = vcombine.low %v1191_v14, %v1198_v36 }
 0x1f2   : > { %v1214_v38 = vrot.slane %v1200_v15, %v2750_v52 }
 0x1f4   : > { %v1215_v40 = vcombine.low %v1207_v37, %v1214_v38 }
 0x1f6   : > { %v1217_v43 = vadd.f32 %v1215_v40, %v1086_v0 }
 0x1f8   : > { %1218 = vst [vmem:[%s2663_s5] sm:$0xff] %v1217_v43 }
 0x1f9 PF: > { %p1849_p7 = scmp.eq.s32.totalorder %s2280_s24, 2 }
 0x1fa   : > { %v1224_v44 = vadd.f32 (!%p1849_p7), %v2627_v23, %v2619_v16  ;;  %v1231_v47 = vadd.f32 (!%p1849_p7), %v2631_v27, %v2623_v19  ;;  %v1238_v60 = vadd.f32 (!%p1849_p7), %v2629_v26, %v2621_v18  ;;  %v1245_v52 = vadd.f32 (!%p1849_p7), %v2633_v29, %v2625_v22  ;;  %v3094_v48 = vld [vmem:[#allocation26_spill] sm:$0xff] (!%p1849_p7)  ;;  %v3095_v51 = vld [vmem:[#allocation29_spill] sm:$0xff] (!%p1849_p7)  ;;  %v3097_v42 = vld [vmem:[#allocation28_spill] sm:$0xff] (!%p1849_p7) }
 0x1fb   : > { %1222 = sbr.rel (%p1849_p7) target bundleno = 565 (0x235), region = 56  ;;  %v1252_v45 = vadd.f32 (!%p1849_p7), %v2647_v46, %v2639_v39  ;;  %v1259_v53 = vadd.f32 (!%p1849_p7), %v3095_v51, %v3094_v48  ;;  %v3096_v41 = vld [vmem:[#allocation25_spill] sm:$0xff] (!%p1849_p7)  ;;  %v3098_v50 = vld [vmem:[#allocation27_spill] sm:$0xff] (!%p1849_p7)  ;;  %v3099_v57 = vld [vmem:[#allocation30_spill] sm:$0xff] (!%p1849_p7) }
 0x1fc   : > { %v1266_v49 = vadd.f32 (!%p1849_p7), %v3097_v42, %v3096_v41  ;;  %v1273_v54 = vadd.f32 (!%p1849_p7), %v3099_v57, %v3098_v50  ;;  %v1225_v61 = vrot.slane (!%p1849_p7), %v1224_v44, 4  ;;  %v1232_v55 = vrot.slane (!%p1849_p7), %v1231_v47, 4 }
 0x1fd   : > { %v1239_v62 = vrot.slane (!%p1849_p7), %v1238_v60, 4  ;;  %v1246_v63 = vrot.slane (!%p1849_p7), %v1245_v52, 4  ;;  %v1253_v56 = vrot.slane (!%p1849_p7), %v1252_v45, 4  ;;  %v1260_v1 = vrot.slane (!%p1849_p7), %v1259_v53, 4 }
 0x1fe   : > { %v1267_v2 = vrot.slane (!%p1849_p7), %v1266_v49, 4  ;;  %v1274_v59 = vrot.slane (!%p1849_p7), %v1273_v54, 4  ;;  %v1226_v10 = vadd.f32 (!%p1849_p7), %v1225_v61, %v1224_v44  ;;  %v1233_v3 = vadd.f32 (!%p1849_p7), %v1232_v55, %v1231_v47 }
 0x1ff   : > { %v1240_v5 = vadd.f32 (!%p1849_p7), %v1239_v62, %v1238_v60  ;;  %v1247_v17 = vadd.f32 (!%p1849_p7), %v1246_v63, %v1245_v52  ;;  %v1254_v58 = vadd.f32 (!%p1849_p7), %v1253_v56, %v1252_v45  ;;  %v1261_v6 = vadd.f32 (!%p1849_p7), %v1260_v1, %v1259_v53 }
 0x200   : > { %v1268_v7 = vadd.f32 (!%p1849_p7), %v1267_v2, %v1266_v49  ;;  %v1275_v8 = vadd.f32 (!%p1849_p7), %v1274_v59, %v1273_v54  ;;  %v1227_v20 = vrot.slane (!%p1849_p7), %v1226_v10, 2  ;;  %v1234_v9 = vrot.slane (!%p1849_p7), %v1233_v3, 2 }
 0x201   : > { %v1241_v21 = vrot.slane (!%p1849_p7), %v1240_v5, 2  ;;  %v1248_v24 = vrot.slane (!%p1849_p7), %v1247_v17, 2  ;;  %v1255_v11 = vrot.slane (!%p1849_p7), %v1254_v58, 2  ;;  %v1262_v25 = vrot.slane (!%p1849_p7), %v1261_v6, 2 }
 0x202   : > { %v1269_v28 = vrot.slane %v1268_v7, 2  ;;  %v1276_v12 = vrot.slane %v1275_v8, 2  ;;  %v1228_v30 = vadd.f32 %v1227_v20, %v1226_v10  ;;  %v1235_v31 = vadd.f32 %v1234_v9, %v1233_v3 }
 0x203   : > { %v1242_v32 = vadd.f32 %v1241_v21, %v1240_v5  ;;  %v1249_v13 = vadd.f32 %v1248_v24, %v1247_v17  ;;  %v1256_v33 = vadd.f32 %v1255_v11, %v1254_v58  ;;  %v1263_v34 = vadd.f32 %v1262_v25, %v1261_v6 }
 0x204   : > { %v1270_v14 = vadd.f32 %v1269_v28, %v1268_v7  ;;  %v1277_v35 = vadd.f32 %v1276_v12, %v1275_v8  ;;  %v1229_v36 = vrot.slane %v1228_v30, 1  ;;  %v1236_v15 = vrot.slane %v1235_v31, 1 }
 0x205   : > { %v1243_v37 = vrot.slane %v1242_v32, 1  ;;  %v1250_v38 = vrot.slane %v1249_v13, 1  ;;  %v1257_v0 = vrot.slane %v1256_v33, 1  ;;  %v1264_v40 = vrot.slane %v1263_v34, 1 }
 0x206   : > { %v1271_v43 = vrot.slane %v1270_v14, 1  ;;  %v1278_v44 = vrot.slane %v1277_v35, 1  ;;  %v1230_v47 = vadd.f32 %v1229_v36, %v1228_v30  ;;  %v1237_v60 = vadd.f32 %v1236_v15, %v1235_v31 }
 0x207   : > { %v1244_v52 = vadd.f32 %v1243_v37, %v1242_v32  ;;  %v1251_v45 = vadd.f32 %v1250_v38, %v1249_v13  ;;  %v1258_v53 = vadd.f32 %v1257_v0, %v1256_v33  ;;  %v1265_v49 = vadd.f32 %v1264_v40, %v1263_v34 }
 0x208   : > { %v1272_v54 = vadd.f32 %v1271_v43, %v1270_v14  ;;  %v1279_v61 = vadd.f32 %v1278_v44, %v1277_v35  ;;  %v1288_v55 = vcombine.low %v1230_v47, %v1237_v60  ;;  %v1341_v63 = vmul.f32 %v2619_v16, %v2619_v16 }
 0x209   : > { %v1289_v62 = vcombine.low %v1244_v52, %v1251_v45  ;;  %v1290_v56 = vcombine.low %v1258_v53, %v1265_v49  ;;  %v2308_v2 = vmov 1966171168   ;;  %v1342_v10 = vmul.f32 %v2623_v19, %v2623_v19  ;;  %v1223_v52 = vld [vmem:[%s2660_s9] sm:$0xff] }
 0x20a   : > { %v1291_v1 = vcombine.low %v1272_v54, %v1279_v61  ;;  %v1293_v59 = vunpack.c.l.s4 %v2308_v2  ;;  %v1343_v3 = vmul.f32 %v2621_v18, %v2621_v18  ;;  %v1344_v5 = vmul.f32 %v2625_v22, %v2625_v22 }
 0x20b   : > { %v1345_v17 = vmul.f32 %v2639_v39, %v2639_v39  ;;  %v1346_v58 = vmul.f32 %v3094_v48, %v3094_v48  ;;  %v1347_v7 = vmul.f32 %v3096_v41, %v3096_v41  ;;  %v1348_v8 = vmul.f32 %v3098_v50, %v3098_v50 }
 0x20c   : > { %v1294_v6 = vunpack.c.0.s8 %v1293_v59  ;;  %v1349_v20 = vmul.f32 %v2627_v23, %v2627_v23  ;;  %v1350_v9 = vmul.f32 %v2631_v27, %v2631_v27  ;;  %v1351_v21 = vmul.f32 %v2629_v26, %v2629_v26 }
 0x20d   : > { %v1352_v24 = vmul.f32 %v2633_v29, %v2633_v29  ;;  %v1353_v48 = vmul.f32 %v2647_v46, %v2647_v46  ;;  %v1354_v50 = vmul.f32 %v3095_v51, %v3095_v51  ;;  %v1355_v11 = vmul.f32 %v3097_v42, %v3097_v42 }
 0x20e   : > { %v2844_v41 = vsub.s32 %v1294_v6, %v2613_v4  ;;  %v1356_v25 = vmul.f32 %v3099_v57, %v3099_v57  ;;  %v1357_v28 = vadd.f32 %v1349_v20, %v1341_v63  ;;  %v1364_v12 = vadd.f32 %v1350_v9, %v1342_v10 }
 0x20f   : > { %v1371_v30 = vadd.f32 %v1351_v21, %v1343_v3  ;;  %v1378_v31 = vadd.f32 %v1352_v24, %v1344_v5  ;;  %v1385_v57 = vadd.f32 %v1353_v48, %v1345_v17  ;;  %v1392_v15 = vadd.f32 %v1354_v50, %v1346_v58 }
 0x210   : > { %v1298_v32 = vrot.slane %v1288_v55, %v2844_v41  ;;  %v1305_v13 = vrot.slane %v1289_v62, %v2844_v41  ;;  %v1312_v4 = vrot.slane %v1290_v56, %v2844_v41  ;;  %v1319_v33 = vrot.slane %v1291_v1, %v2844_v41 }
 0x211   : > { %v1358_v34 = vrot.slane %v1357_v28, 4  ;;  %v1365_v51 = vrot.slane %v1364_v12, 4  ;;  %v1372_v14 = vrot.slane %v1371_v30, 4  ;;  %v1379_v42 = vrot.slane %v1378_v31, 4 }
 0x212   : > { %v1320_v35 = vcombine.low %v1298_v32, %v1305_v13  ;;  %v1321_v36 = vcombine.low %v1312_v4, %v1319_v33  ;;  %v1386_v47 = vrot.slane %v1385_v57, 4  ;;  %v1393_v60 = vrot.slane %v1392_v15, 4 }
 0x213   : > { %v1359_v37 = vadd.f32 %v1358_v34, %v1357_v28  ;;  %v1366_v38 = vadd.f32 %v1365_v51, %v1364_v12  ;;  %v1373_v0 = vadd.f32 %v1372_v14, %v1371_v30  ;;  %v1380_v40 = vadd.f32 %v1379_v42, %v1378_v31 }
 0x214   : > { %v1328_v43 = vrot.slane %v1320_v35, %v2844_v41  ;;  %v1335_v44 = vrot.slane %v1321_v36, %v2844_v41  ;;  %v1387_v55 = vadd.f32 %v1386_v47, %v1385_v57  ;;  %v1394_v62 = vadd.f32 %v1393_v60, %v1392_v15 }
 0x215   : > { %v1360_v45 = vrot.slane %v1359_v37, 2  ;;  %v1367_v53 = vrot.slane %v1366_v38, 2  ;;  %v1374_v49 = vrot.slane %v1373_v0, 2  ;;  %v1381_v54 = vrot.slane %v1380_v40, 2 }
 0x216   : > { %v1336_v61 = vcombine.low %v1328_v43, %v1335_v44  ;;  %v1399_v63 = vadd.f32 %v1355_v11, %v1347_v7  ;;  %v1388_v3 = vrot.slane %v1387_v55, 2  ;;  %v1395_v5 = vrot.slane %v1394_v62, 2 }
 0x217   : > { %v1361_v56 = vadd.f32 %v1360_v45, %v1359_v37  ;;  %v1368_v1 = vadd.f32 %v1367_v53, %v1366_v38  ;;  %v1375_v2 = vadd.f32 %v1374_v49, %v1373_v0  ;;  %v1382_v59 = vadd.f32 %v1381_v54, %v1380_v40  ;;  %v1340_v53 = vld [vmem:[%s2663_s5] sm:$0xff] }
 0x218   : > { %v1338_v10 = vadd.f32 %v1336_v61, %v1223_v52  ;;  %v1400_v17 = vrot.slane %v1399_v63, 4  ;;  %v1389_v21 = vadd.f32 %v1388_v3, %v1387_v55  ;;  %v1396_v24 = vadd.f32 %v1395_v5, %v1394_v62 }
 0x219   : > { %v1362_v58 = vrot.slane %v1361_v56, 1  ;;  %v1369_v6 = vrot.slane %v1368_v1, 1  ;;  %v1376_v20 = vrot.slane %v1375_v2, 1  ;;  %v1383_v9 = vrot.slane %v1382_v59, 1 }
 0x21a   : > { %1339 = vst [vmem:[%s2660_s9] sm:$0xff] %v1338_v10  ;;  %v1401_v48 = vadd.f32 %v1400_v17, %v1399_v63  ;;  %v1406_v50 = vadd.f32 %v1356_v25, %v1348_v8  ;;  %v1390_v30 = vrot.slane %v1389_v21, 1  ;;  %v1397_v31 = vrot.slane %v1396_v24, 1 }
 0x21b   : > { %v1363_v28 = vadd.f32 %v1362_v58, %v1361_v56  ;;  %v1370_v12 = vadd.f32 %v1369_v6, %v1368_v1  ;;  %v1377_v7 = vadd.f32 %v1376_v20, %v1375_v2  ;;  %v1384_v11 = vadd.f32 %v1383_v9, %v1382_v59 }
 0x21c   : > { %v1402_v32 = vrot.slane %v1401_v48, 2  ;;  %v1407_v13 = vrot.slane %v1406_v50, 4  ;;  %v1391_v14 = vadd.f32 %v1390_v30, %v1389_v21  ;;  %v1398_v42 = vadd.f32 %v1397_v31, %v1396_v24 }
 0x21d   : > { %v1421_v34 = vcombine.low %v1363_v28, %v1370_v12  ;;  %v1422_v51 = vcombine.low %v1377_v7, %v1384_v11 }
 0x21e   : > { %v1403_v4 = vadd.f32 %v1402_v32, %v1401_v48  ;;  %v1408_v33 = vadd.f32 %v1407_v13, %v1406_v50  ;;  %v1423_v37 = vcombine.low %v1391_v14, %v1398_v42 }
 0x21f   : > { %v1431_v8 = vrot.slane %v1421_v34, %v2844_v41  ;;  %v1438_v38 = vrot.slane %v1422_v51, %v2844_v41 }
 0x220   : > { %v1404_v35 = vrot.slane %v1403_v4, 1  ;;  %v1409_v36 = vrot.slane %v1408_v33, 2  ;;  %v1445_v43 = vrot.slane %v1423_v37, %v2844_v41 }
 0x221   : > { %v1453_v44 = vcombine.low %v1431_v8, %v1438_v38 }
 0x222   : > { %v1410_v57 = vadd.f32 %v1409_v36, %v1408_v33  ;;  %v1405_v25 = vadd.f32 %v1404_v35, %v1403_v4 }
 0x223   : > { %v1461_v52 = vrot.slane %v1453_v44, %v2844_v41 }
 0x224   : > { %v1411_v15 = vrot.slane %v1410_v57, 1 }
 0x226   : > { %v1412_v0 = vadd.f32 %v1411_v15, %v1410_v57 }
 0x228   : > { %v1424_v40 = vcombine.low %v1405_v25, %v1412_v0 }
 0x22a   : > { %v1452_v47 = vrot.slane %v1424_v40, %v2844_v41 }
 0x22c   : > { %v1454_v60 = vcombine.low %v1445_v43, %v1452_v47 }
 0x22e   : > { %v1468_v45 = vrot.slane %v1454_v60, %v2844_v41 }
 0x230   : > { %v1469_v49 = vcombine.low %v1461_v52, %v1468_v45 }
 0x232   : > { %v1471_v54 = vadd.f32 %v1469_v49, %v1340_v53 }
 0x234   : > { %1472 = vst [vmem:[%s2663_s5] sm:$0xff] %v1471_v54 }
 0x235 PF: > { %v1875_v61 = vpack.c.bf16 %v2623_v19, %v2619_v16  ;;  %v1876_v41 = vpack.c.bf16 %v2625_v22, %v2621_v18  ;;  %v3100_v55 = vld [vmem:[#allocation26_spill] sm:$0xff]  ;;  %v3101_v63 = vld [vmem:[#allocation25_spill] sm:$0xff]  ;;  %v3102_v56 = vld [vmem:[#allocation27_spill] sm:$0xff]  ;;  %s1534_s10 = sand.u32 1, %s2400_s29   ;;  %v1879_v2 = vpack.c.bf16 %v2631_v27, %v2627_v23  ;;  %v1880_v59 = vpack.c.bf16 %v2633_v29, %v2629_v26  ;;  %s1530_s29 = scalar_lea.sflag [#allocation4], %s2584_s7 }
 0x236   : > { %v1877_v62 = vpack.c.bf16 %v3100_v55, %v2639_v39  ;;  %v1878_v1 = vpack.c.bf16 %v3102_v56, %v3101_v63  ;;  %v3103_v16 = vld [vmem:[#allocation29_spill] sm:$0xff]  ;;  %v3104_v10 = vld [vmem:[#allocation28_spill] sm:$0xff]  ;;  %v3105_v3 = vld [vmem:[#allocation30_spill] sm:$0xff]  ;;  %s2894_s8 = scalar_lea.sflag [#allocation10], %s1534_s10  ;;  %p3106_p11 = scmp.ne.s32.totalorder %s3069_s12, 0 }
 0x237   : > { %v1881_v19 = vpack.c.bf16 %v3103_v16, %v2647_v46  ;;  %v1882_v18 = vpack.c.bf16 %v3105_v3, %v3104_v10  ;;  %1521 = vst [vmem:[%s2657_s11] sm:$0xff] %v1875_v61  ;;  %1522 = vst [vmem:[%s2657_s11 + $0x8] sm:$0xff] %v1876_v41  ;;  %s1861_s14 = sshll.u32 (%p3106_p11), %s2280_s24, 1 }
 0x238   : > { %1523 = vst [vmem:[%s2657_s11 + $0x10] sm:$0xff] %v1877_v62  ;;  %1524 = vst [vmem:[%s2657_s11 + $0x18] sm:$0xff] %v1878_v1  ;;  %1546 = sbr.rel (!%p3106_p11) target bundleno = 605 (0x25d), region = 60  ;;  %s1548_s15 = ssub.s32 (%p3106_p11), 5, %s1861_s14 }
 0x239   : > { %1525 = vst [vmem:[%s2657_s11 + $0x20] sm:$0xff] %v1879_v2  ;;  %1526 = vst [vmem:[%s2657_s11 + $0x28] sm:$0xff] %v1880_v59  ;;  %p1549_p9 = scmp.lt.s32.totalorder (%p3106_p11), %s1548_s15, 2 }
 0x23a   : > { %1527 = vst [vmem:[%s2657_s11 + $0x30] sm:$0xff] %v1881_v19  ;;  %1528 = vst [vmem:[%s2657_s11 + $0x38] sm:$0xff] %v1882_v18 }
 0x23f   : > { %s3140_s15 = smov (!%p1549_p9, %s1548_s15), 2 }
 0x240   : > { %s2899_s4 = sshll.u32 %s3140_s15, 9 }
 0x241   : > { %s1554_s30 = ssub.s32 1024, %s2899_s4 }
 0x242   : > { %1555 = vsyncadd %s1530_s29, %s1554_s30  ;;  %p1864_p3 = scmp.ne.s32.totalorder %s2899_s4, 0  ;;  %s1884_s12 = sshll.u32 %s2280_s24, 4 }
 0x243   : > { %s1888_s20 = smul.u32 40, %s2284_s25  ;;  %s1563_s6 = sshll.u32 %s2657_s11, 4  ;;  %s2908_s6 = int_to_ptr.vmem [resolvable:$true] %s1563_s6 }
 0x244   : > { %s2110_s10 = scalar_lea.vmem %s2908_s6, %s2899_s4  ;;  %s2309_s24 = smov [#allocation8]  }
 0x245   : > { %s1559_s21 = sadd.s32 %s1888_s20, %s1884_s12  ;;  %p2111_p10 = scmp.ne.s32.totalorder %s2908_s6, %s2110_s10 }
 0x246   : > { %s1866_s13 = sshll.u32 %s1559_s21, 6  ;;  %s2114_s14 = sshll.u32 %s2309_s24, 4  ;;  %s2115_s14 = int_to_ptr.vmem [resolvable:$false] %s2114_s14 }
 0x247   : > { %s2913_s17 = scalar_lea.hbm %s3031_s3, %s1866_s13  ;;  %p2112_p8 = pnand %p2111_p10, %p1864_p3 }
 0x248   : > { %s2116_s11 = scalar_lea.vmem %s2115_s14, 2048  ;;  %p2117_p5 = scmp.lt.s32.totalorder %s2908_s6, %s2115_s14 }
 0x249   : > { %p2113_p13 = pneg %p2112_p8  ;;  %p2118_p1 = scmp.lt.s32.totalorder %s2116_s11, %s2110_s10 }
 0x24b   : > { %p2119_p6 = por %p2118_p1, %p2117_p5 }
 0x24d   : > { %p2120_p12 = pnand %p2119_p6, %p2113_p13 }
 0x24f   : > { %2123 = shalt.err (!%p2120_p12)
}
 0x250   : > { %s2124_s15 = scalar_lea.hbm %s2913_s17, %s2899_s4  ;;  %s2128_s20 = scalar_lea.hbm %s3031_s3, 5120 }
 0x251   : > { %p2125_p0 = scmp.ne.s32.totalorder %s2913_s17, %s2124_s15  ;;  %p2129_p7 = scmp.lt.u32.totalorder %s2913_s17, %s3031_s3 }
 0x252   : > { %p2130_p11 = scmp.lt.u32.totalorder %s2128_s20, %s2124_s15  ;;  %p2132_p10 = scmp.lt.u32.totalorder %s2124_s15, %s2913_s17 }
 0x253   : > { %p2126_p2 = pnand %p2125_p0, %p1864_p3 }
 0x254   : > { %p2131_p9 = por %p2130_p11, %p2129_p7 }
 0x255   : > { %p2127_p4 = pneg %p2126_p2 }
 0x256   : > { %p2133_p8 = por %p2132_p10, %p2131_p9 }
 0x258   : > { %p2134_p13 = pnand %p2133_p8, %p2127_p4 }
 0x25a   : > { %2137 = shalt.err (!%p2134_p13)
}
 0x25b   : > { %s2310_s18 = smov 512   ;;  %s2311_s16 = smov 32  }
 0x25c   : > { %1569 = dma.vmem_to_hbm [thread:$0]  (%p1864_p3), %s2908_s6, %s2899_s4, %s2913_s17, %s1530_s29, %s2310_s18, %s2310_s18, %s2311_s16  }
 0x25d PF: > { %s3107_s10 = sld [smem:[#allocation23_spill]]  ;;  %s1885_s24 = sshll.u32 %s2284_s25, 7 }
 0x25e   : > { %s1580_s14 = sshll.u32 %s2660_s9, 4  ;;  %s3108_s30 = sld [smem:[#allocation31_spill]]  ;;  %s1581_s14 = int_to_ptr.vmem [resolvable:$true] %s1580_s14 }
 0x25f   : > { %s2138_s20 = scalar_lea.vmem %s1581_s14, 128  ;;  %s2312_s7 = smov [#allocation9]  }
 0x260   : > { %p2139_p5 = scmp.ne.s32.totalorder %s1581_s14, %s2138_s20  ;;  %s2142_s29 = sshll.u32 %s2312_s7, 4  ;;  %s2143_s29 = int_to_ptr.vmem [resolvable:$false] %s2142_s29 }
 0x261   : > { %s2144_s4 = scalar_lea.vmem %s2143_s29, 256  ;;  %p2145_p3 = scmp.lt.s32.totalorder %s1581_s14, %s2143_s29 }
 0x262   : > { %p2146_p0 = scmp.lt.s32.totalorder %s2144_s4, %s2138_s20 }
 0x263   : > { %p3109_p1 = scmp.ne.s32.totalorder %s3107_s10, 0 }
 0x264   : > { %s1578_s12 = scalar_lea.hbm %s3108_s30, %s1885_s24  ;;  %p2147_p2 = por %p2146_p0, %p2145_p3 }
 0x265   : > { %p2140_p6 = pnand %p2139_p5, %p3109_p1 }
 0x267   : > { %p2141_p12 = pneg %p2140_p6 }
 0x269   : > { %p2148_p4 = pnand %p2147_p2, %p2141_p12 }
 0x26b   : > { %2151 = shalt.err (!%p2148_p4)
}
 0x26c   : > { %s2152_s9 = scalar_lea.hbm %s1578_s12, 128  ;;  %s2156_s21 = scalar_lea.hbm %s3108_s30, 256 }
 0x26d   : > { %p2153_p7 = scmp.ne.s32.totalorder %s1578_s12, %s2152_s9  ;;  %p2157_p10 = scmp.lt.u32.totalorder %s1578_s12, %s3108_s30 }
 0x26e   : > { %p2158_p8 = scmp.lt.u32.totalorder %s2156_s21, %s2152_s9  ;;  %p2160_p5 = scmp.lt.u32.totalorder %s2152_s9, %s1578_s12 }
 0x26f   : > { %p2154_p11 = pnand %p2153_p7, %p3109_p1 }
 0x270   : > { %p2159_p13 = por %p2158_p8, %p2157_p10 }
 0x271   : > { %p2155_p9 = pneg %p2154_p11 }
 0x272   : > { %p2161_p6 = por %p2160_p5, %p2159_p13 }
 0x274   : > { %p2162_p12 = pnand %p2161_p6, %p2155_p9 }
 0x276   : > { %2165 = shalt.err (!%p2162_p12)
}
 0x277   : > { %1898 = dma.vmem_to_hbm [thread:$0]  (%p3109_p1), %s1581_s14, 128, %s1578_s12, %s2894_s8  }
 0x278   : > { %s3110_s15 = sld [smem:[#allocation32_spill]]  ;;  %s1594_s7 = sshll.u32 %s2663_s5, 4  ;;  %s1595_s7 = int_to_ptr.vmem [resolvable:$true] %s1594_s7 }
 0x279   : > { %s2166_s29 = scalar_lea.vmem %s1595_s7, 128  ;;  %s2313_s4 = smov [#allocation11]  }
 0x27a   : > { %p2167_p3 = scmp.ne.s32.totalorder %s1595_s7, %s2166_s29  ;;  %s2170_s9 = sshll.u32 %s2313_s4, 4  ;;  %s2171_s9 = int_to_ptr.vmem [resolvable:$false] %s2170_s9 }
 0x27b   : > { %s2172_s6 = scalar_lea.vmem %s2171_s9, 256  ;;  %p2173_p4 = scmp.lt.s32.totalorder %s1595_s7, %s2171_s9 }
 0x27c   : > { %p2168_p0 = pnand %p2167_p3, %p3109_p1  ;;  %p2174_p7 = scmp.lt.s32.totalorder %s2172_s6, %s2166_s29 }
 0x27e   : > { %s2966_s20 = scalar_lea.hbm %s3110_s15, %s1885_s24  ;;  %p2169_p2 = pneg %p2168_p0 }
 0x27f   : > { %p2175_p11 = por %p2174_p7, %p2173_p4 }
 0x281   : > { %p2176_p9 = pnand %p2175_p11, %p2169_p2 }
 0x283   : > { %2179 = shalt.err (!%p2176_p9)
}
 0x284   : > { %s2180_s25 = scalar_lea.hbm %s2966_s20, 128  ;;  %s2184_s14 = scalar_lea.hbm %s3110_s15, 256 }
 0x285   : > { %p2181_p10 = scmp.ne.s32.totalorder %s2966_s20, %s2180_s25  ;;  %p2185_p5 = scmp.lt.u32.totalorder %s2966_s20, %s3110_s15 }
 0x286   : > { %p2186_p6 = scmp.lt.u32.totalorder %s2184_s14, %s2180_s25  ;;  %p2188_p3 = scmp.lt.u32.totalorder %s2180_s25, %s2966_s20 }
 0x287   : > { %p2182_p8 = pnand %p2181_p10, %p3109_p1 }
 0x288   : > { %p2187_p12 = por %p2186_p6, %p2185_p5 }
 0x289   : > { %p2183_p13 = pneg %p2182_p8 }
 0x28a   : > { %p2189_p0 = por %p2188_p3, %p2187_p12 }
 0x28c   : > { %p2190_p2 = pnand %p2189_p0, %p2183_p13 }
 0x28e   : > { %2193 = shalt.err (!%p2190_p2)
}
 0x28f   : > { %1899 = dma.vmem_to_hbm [thread:$0]  (%p3109_p1), %s1595_s7, 128, %s2966_s20, %s2894_s8  }
 0x290 PF: > { %s3111_s21 = sld [smem:[#allocation17_spill]]  ;;  %s3112_s13 = sld [smem:[#allocation20_spill]] }
 0x291   : > { %p1924_p4 = scmp.ge.s32.totalorder %s2296_s28, 2 }
 0x296   : > { %s1606_s18 = sand.u32 1, %s3111_s21   ;;  %p3113_p7 = scmp.ne.s32.totalorder %s3112_s13, 0 }
 0x297   : > { %s1607_s16 = scalar_lea.sflag [#allocation4], %s1606_s18 }
 0x298   : > { %p1911_p11 = pnand %p1924_p4, %p3113_p7 }
 0x29a   : > { %2247 = dma.done.wait (!%p1911_p11), %s1607_s16, 1024  }
 0x29b   : > { %2249 = vsyncadd (!%p1911_p11), %s1607_s16, 4294966272  ;;  %s3114_s11 = sadd.s32 4294967294, %s2296_s28   ;;  %s3115_s29 = sld [smem:[#allocation24_spill]] }
 0x29c   : > { %s1615_s4 = sand.u32 1, %s3114_s11  }
 0x29d   : > { %s1616_s10 = scalar_lea.sflag [#allocation10], %s1615_s4 }
 0x2a1   : > { %p3116_p9 = scmp.ne.s32.totalorder %s3115_s29, 0 }
 0x2a3   : > { %p1914_p10 = pnand %p1924_p4, %p3116_p9 }
 0x2a5   : > { %2251 = dma.done.wait (!%p1914_p10), %s1616_s10, 256  }
 0x2a6   : > { %2253 = vsyncadd (!%p1914_p10), %s1616_s10, 4294967040  ;;  %s26_s28 = sadd.s32 1, %s2296_s28   ;;  %s3117_s8 = sld [smem:[#allocation16_spill]] }
 0x2a7   : > { %p23_p1 = scmp.ge.s32.totalorder %s26_s28, 8   ;;  %s3118_s20 = sld [smem:[#allocation22_spill]] }
 0x2a8   : > { %s3119_s7 = sld [smem:[#allocation21_spill]]  ;;  %s3120_s9 = sld [smem:[#allocation18_spill]] }
 0x2a9   : > { %s3121_s6 = sld [smem:[#allocation19_spill]]  ;;  %s3122_s18 = smov %s2260_s19 }
 0x2aa   : > { %s3124_s21 = smov %s2272_s22  ;;  %s3125_s22 = smov %s2276_s23 }
 0x2ab   : > { %s3127_s24 = smov %s2288_s26  ;;  %s3128_s25 = smov %s2292_s27 }
 0x2ac   : > { %s3123_s19 = smov %s3117_s8  ;;  %25 = sbr.rel (!%p23_p1) target bundleno = 15 (0xf), region = 129 }
 0x2ae   : > { %s3126_s23 = smov %s3119_s7  ;;  %s3129_s26 = smov %s3120_s9 }
 0x2af   : > { %s3130_s27 = smov %s3121_s6 }
 0x2b3   :  { %1630 = vsyncpa [#allocation3], 1 }
 0x2b4   :  { %1632 = vsyncpa [#allocation3 + $0x1], 1 }
 0x2b5   :  { %1633 = vsyncpa [#allocation6], 1 }
 0x2b6   :  { %1634 = vsyncpa [#allocation4], 1 }
 0x2b7   :  { %1636 = vsyncpa [#allocation4 + $0x1], 1 }
 0x2b8   :  { %1637 = vsyncpa [#allocation10], 1 }
 0x2b9   :  { %1639 = vsyncpa [#allocation10 + $0x1], 1 }

</bundles_post_ra>
